<compile_context>
chip_gen: v7x
topology: tpu7x:2x2x1
jax: 0.10.0
libtpu: 0.0.40
codegen_flags: <defaults>
</compile_context>

<pallas_src>
import jax
import jax.numpy as jnp
from jax.experimental import pallas as pl
from jax.experimental.pallas import tpu as pltpu


# ----------------------------- helpers ---------------------------------------
def _round_up(x, m):
    return ((x + m - 1) // m) * m


def _loop(S, body, init):
    """Run body(t, carry) for t in [0, S). Fully unrolled for small S so the
    scheduler sees the whole chain; partially-unrolled fori_loop for large S."""
    if S <= 32:
        carry = init
        for t in range(S):
            carry = body(t, carry)
        return carry
    return jax.lax.fori_loop(0, S, body, init, unroll=8)


# ----------------------------- Pallas kernel ---------------------------------
def _make_gru_kernel(num_layers, S, B, Gp):
    """Refs (positional):
         gi0      (S*B, 3Gp) bf16   layer-0 input projection (+ fused biases), time-major rows
         whh_all  (L, Gp, 3Gp) bf16 recurrent weights, gate-major r|z|n, 128-aligned gates
         bhn_all  (L, 1, Gp)  f32   hidden n-gate bias (stays inside r*(W_hn h + b_hn))
         [L > 1]
         wih_all  (L-1, Gp, 3Gp) bf16  deeper-layer input weights
         bgi_all  (L-1, 1, 3Gp)  f32   deeper-layer fused input biases
         out      (B, Gp) f32   last hidden state of last layer (padded)
       scratch [L > 1]:
         seq_sc   (S*B, Gp)   bf16  hidden sequence of the layer below
         gi_sc    (S*B, 3Gp)  bf16  input projections of the current layer
    """

    def kernel(*refs):
        if num_layers > 1:
            (gi0_ref, whh_ref, bhn_ref, wih_ref, bgi_ref,
             out_ref, seq_sc, gi_sc) = refs
        else:
            gi0_ref, whh_ref, bhn_ref, out_ref = refs
            wih_ref = bgi_ref = seq_sc = gi_sc = None

        h_last = None
        for layer in range(num_layers):
            whh = whh_ref[layer]                                   # (Gp, 3Gp) bf16
            # Hoist the (1,Gp)->(B,Gp) broadcast out of the unrolled time loop.
            bhn = jnp.broadcast_to(bhn_ref[layer], (B, Gp))        # (B, Gp) f32

            if layer == 0:
                gi_src = gi0_ref
            else:
                # Non-recurrent input projection for this layer: a single batched
                # (S*B, Gp) @ (Gp, 3Gp) MXU matmul, off the recurrence critical path.
                gi_sc[...] = (
                    jnp.dot(seq_sc[...], wih_ref[layer - 1],
                            preferred_element_type=jnp.float32)
                    + bgi_ref[layer - 1]
                ).astype(jnp.bfloat16)
                gi_src = gi_sc

            is_last = layer == num_layers - 1

            def rec_step(t, h_prev, gi_src=gi_src, whh=whh, bhn=bhn, is_last=is_last):
                row = t * B
                if not isinstance(t, int):                 # dynamic index (fori path)
                    row = pl.multiple_of(row, B)
                gi = gi_src[pl.ds(row, B), :]                              # (B, 3Gp) bf16
                gh = jnp.dot(h_prev.astype(jnp.bfloat16), whh,
                             preferred_element_type=jnp.float32)           # (B, 3Gp) f32
                # Gate sub-views are 128-lane aligned -> no cross-lane slicing.
                # Elementwise gate math stays in f32 (v5e has no bf16 VPU/EUP).
                r = jax.nn.sigmoid(gi[:, :Gp] + gh[:, :Gp])
                z = jax.nn.sigmoid(gi[:, Gp:2 * Gp] + gh[:, Gp:2 * Gp])
                # PyTorch GRU: b_hn stays inside r * (W_hn h + b_hn)
                n = jnp.tanh(gi[:, 2 * Gp:] + r * (gh[:, 2 * Gp:] + bhn))
                h_new = (1.0 - z) * n + z * h_prev
                if not is_last:
                    seq_sc[pl.ds(row, B), :] = h_new.astype(jnp.bfloat16)
                return h_new

            h_last = _loop(S, rec_step, jnp.zeros((B, Gp), jnp.float32))

        out_ref[...] = h_last

    return kernel


# ----------------------------- wrapper ----------------------------------------
def _fuse_pad_layer(wih, whh, bih, bhh, Gp, pad_in_rows):
    """PyTorch-layout (3, in, H)/(3, 1, H) params -> fused gate-major layout with
    every gate's columns zero-padded to a 128-aligned stride Gp."""
    H = whh.shape[-1]
    pad_c = Gp - H

    def pc(a):  # pad last dim H -> Gp with zeros
        return jnp.pad(a, [(0, 0)] * (a.ndim - 1) + [(0, pad_c)])

    wih_cat = jnp.concatenate([pc(wih[0]), pc(wih[1]), pc(wih[2])], axis=-1)  # (in, 3Gp)
    if pad_in_rows:
        wih_cat = jnp.pad(wih_cat, ((0, Gp - wih_cat.shape[0]), (0, 0)))      # (Gp, 3Gp)
    whh_cat = jnp.concatenate([pc(whh[0]), pc(whh[1]), pc(whh[2])], axis=-1)  # (H, 3Gp)
    whh_cat = jnp.pad(whh_cat, ((0, pad_c), (0, 0)))                          # (Gp, 3Gp)
    # r/z biases can be pre-summed; the n input-bias stays in gi, the n hidden-bias
    # (b_hn) must remain inside r * (...) so it is kept separate.
    bgi = jnp.concatenate([pc(bih[0] + bhh[0]), pc(bih[1] + bhh[1]), pc(bih[2])],
                          axis=-1)                                            # (1, 3Gp)
    bhn = pc(bhh[2])                                                          # (1, Gp)
    return wih_cat, whh_cat, bgi, bhn


def gru_forward(x_bsi, params):
    """Matches GRU.forward: x (B, S, I) batch_first, h0 = zeros, returns out[:, -1, :]."""
    B, S, _ = x_bsi.shape
    num_layers = len(params)
    H = params[0][1].shape[-1]
    Gp = _round_up(H, 128)                      # 128-lane-aligned gate stride

    wih0, whh0, bgi0, bhn0 = _fuse_pad_layer(*params[0], Gp=Gp, pad_in_rows=False)
    # Hoist the layer-0 input projection: one large batched matmul over all S steps,
    # emitted time-major and row-flattened so the kernel reads rows [t*B, t*B+B).
    gi0 = jnp.einsum("bsi,ig->sbg", x_bsi, wih0) + bgi0            # (S, B, 3Gp) f32
    gi0 = gi0.reshape(S * B, 3 * Gp).astype(jnp.bfloat16)

    whh_l, bhn_l, wih_l, bgi_l = [whh0], [bhn0], [], []
    for p in params[1:]:
        wih, whh, bgi, bhn = _fuse_pad_layer(*p, Gp=Gp, pad_in_rows=True)
        wih_l.append(wih); bgi_l.append(bgi); whh_l.append(whh); bhn_l.append(bhn)

    # Pack per-layer params into a few stacked arrays (fewer DMA descriptors).
    inputs = [gi0,
              jnp.stack(whh_l).astype(jnp.bfloat16),   # (L, Gp, 3Gp)
              jnp.stack(bhn_l)]                        # (L, 1, Gp) f32
    scratch = []
    if num_layers > 1:
        inputs += [jnp.stack(wih_l).astype(jnp.bfloat16),   # (L-1, Gp, 3Gp)
                   jnp.stack(bgi_l)]                        # (L-1, 1, 3Gp) f32
        scratch = [pltpu.VMEM((S * B, Gp), jnp.bfloat16),       # hidden seq (layer below)
                   pltpu.VMEM((S * B, 3 * Gp), jnp.bfloat16)]   # current-layer projections

    kernel = _make_gru_kernel(num_layers, S, B, Gp)
    out_pad = pl.pallas_call(
        kernel,
        out_shape=jax.ShapeDtypeStruct((B, Gp), jnp.float32),
        in_specs=[pl.BlockSpec(memory_space=pltpu.MemorySpace.VMEM)] * len(inputs),
        out_specs=pl.BlockSpec(memory_space=pltpu.MemorySpace.VMEM),
        scratch_shapes=scratch,
        # v5e's default scoped VMEM limit is 16 MiB; raise it (everything here is tiny,
        # but this is free headroom when scaling S/H).
        compiler_params=pltpu.CompilerParams(vmem_limit_bytes=32 * 1024 * 1024),
    )(*inputs)
    return out_pad[:, :H]


# -------------------------- parameter construction ---------------------------
def init_gru_params(key, input_size, hidden_size, num_layers):
    """Deterministic init, same shapes/scale as torch.nn.GRU (U(-1/sqrt(H), 1/sqrt(H)))."""
    params = []
    bound = 1.0 / jnp.sqrt(jnp.float32(hidden_size))
    for layer in range(num_layers):
        in_dim = input_size if layer == 0 else hidden_size
        key, k1, k2, k3, k4 = jax.random.split(key, 5)
        wih = jax.random.uniform(k1, (3, in_dim, hidden_size), jnp.float32, -bound, bound)
        whh = jax.random.uniform(k2, (3, hidden_size, hidden_size), jnp.float32, -bound, bound)
        bih = jax.random.uniform(k3, (3, 1, hidden_size), jnp.float32, -bound, bound)
        bhh = jax.random.uniform(k4, (3, 1, hidden_size), jnp.float32, -bound, bound)
        params.append((wih, whh, bih, bhh))
    return params


# ----------------------------- pure-JAX reference -----------------------------
def gru_reference(x_bsi, params):
    B = x_bsi.shape[0]
    h_seq = jnp.transpose(x_bsi, (1, 0, 2))  # (S, B, I)
    for (wih, whh, bih, bhh) in params:
        H = whh.shape[-1]
        h0 = jnp.zeros((B, H), jnp.float32)

        def step(h, x_t, wih=wih, whh=whh, bih=bih, bhh=bhh):
            r = jax.nn.sigmoid(x_t @ wih[0] + bih[0] + h @ whh[0] + bhh[0])
            z = jax.nn.sigmoid(x_t @ wih[1] + bih[1] + h @ whh[1] + bhh[1])
            n = jnp.tanh(x_t @ wih[2] + bih[2] + r * (h @ whh[2] + bhh[2]))
            h_new = (1.0 - z) * n + z * h
            return h_new, h_new

        _, h_seq = jax.lax.scan(step, h0, h_seq)
    return h_seq[-1]


# ----------------------------------- main --------------------------------------
if __name__ == "__main__":
    batch, seq, input_size, hidden_size, num_layers = 2, 8, 16, 32, 2

    key = jax.random.PRNGKey(0)
    key, xk = jax.random.split(key)
    x = jax.random.normal(xk, (batch, seq, input_size), jnp.float32)  # (B, S, I)

    params = init_gru_params(key, input_size, hidden_size, num_layers)

    out = jax.block_until_ready(gru_forward(x, params))   # (B, H)
    ref = jax.block_until_ready(gru_reference(x, params))

    assert out.shape == (batch, hidden_size), out.shape
    # bf16 MXU operands / bf16 gi storage with f32 accumulation -> loosened tolerance.
    max_diff = float(jnp.max(jnp.abs(out - ref)))
    assert jnp.allclose(out, ref, atol=5e-2, rtol=5e-2), f"mismatch vs reference: {max_diff}"
    print("KERNEL_OK")
</pallas_src>

<mosaic_0001>
module attributes {stable_mosaic.version = 11 : i64} {
  func.func @kernel(%arg0: memref<16x384xbf16, #tpu.memory_space<vmem>>, %arg1: memref<2x128x384xbf16, #tpu.memory_space<vmem>>, %arg2: memref<2x1x128xf32, #tpu.memory_space<vmem>>, %arg3: memref<1x128x384xbf16, #tpu.memory_space<vmem>>, %arg4: memref<1x1x384xf32, #tpu.memory_space<vmem>>, %arg5: memref<2x128xf32, #tpu.memory_space<vmem>>, %arg6: memref<16x128xbf16, #tpu.memory_space<vmem>>, %arg7: memref<16x384xbf16, #tpu.memory_space<vmem>>) attributes {dimension_semantics = [], scalar_prefetch = 0 : i64, scratch_operands = 2 : i64, tpu.core_type = #tpu.core_type<tc>} {
    %c0 = arith.constant 0 : index
    %c0_0 = arith.constant 0 : index
    %c0_1 = arith.constant 0 : index
    %0 = vector.load %arg1[%c0, %c0_0, %c0_1] : memref<2x128x384xbf16, #tpu.memory_space<vmem>>, vector<1x128x384xbf16>
    %1 = vector.shape_cast %0 : vector<1x128x384xbf16> to vector<128x384xbf16>
    %c0_2 = arith.constant 0 : index
    %c0_3 = arith.constant 0 : index
    %c0_4 = arith.constant 0 : index
    %2 = vector.load %arg2[%c0_2, %c0_3, %c0_4] : memref<2x1x128xf32, #tpu.memory_space<vmem>>, vector<1x1x128xf32>
    %3 = vector.shape_cast %2 : vector<1x1x128xf32> to vector<1x128xf32>
    %4 = vector.shape_cast %3 : vector<1x128xf32> to vector<1x128xf32>
    %5 = vector.broadcast %4 : vector<1x128xf32> to vector<2x128xf32>
    %cst = arith.constant 0.000000e+00 : f32
    %6 = vector.broadcast %cst : f32 to vector<2x128xf32>
    %c0_5 = arith.constant 0 : index
    %c0_6 = arith.constant 0 : index
    %7 = vector.load %arg0[%c0_5, %c0_6] : memref<16x384xbf16, #tpu.memory_space<vmem>>, vector<2x384xbf16>
    %8 = arith.truncf %6 : vector<2x128xf32> to vector<2x128xbf16>
    %cst_7 = arith.constant dense<0.000000e+00> : vector<2x384xf32>
    %9 = tpu.matmul %8, %1, %cst_7 {dimension_numbers = #tpu.dot_dimension_numbers<[1], [0], [0], [1], [0, 0, 1, 1], [], []>} : vector<2x128xbf16>, vector<128x384xbf16>, vector<2x384xf32> -> vector<2x384xf32>
    %10 = vector.extract_strided_slice %7 {offsets = [0, 0], sizes = [2, 128], strides = [1, 1]} : vector<2x384xbf16> to vector<2x128xbf16>
    %11 = vector.extract_strided_slice %9 {offsets = [0, 0], sizes = [2, 128], strides = [1, 1]} : vector<2x384xf32> to vector<2x128xf32>
    %12 = arith.extf %10 : vector<2x128xbf16> to vector<2x128xf32>
    %13 = arith.addf %12, %11 : vector<2x128xf32>
    %14 = arith.negf %13 : vector<2x128xf32>
    %15 = math.exp %14 : vector<2x128xf32>
    %cst_8 = arith.constant 1.000000e+00 : f32
    %16 = vector.broadcast %cst_8 : f32 to vector<2x128xf32>
    %17 = arith.addf %16, %15 : vector<2x128xf32>
    %18 = arith.divf %16, %17 : vector<2x128xf32>
    %19 = vector.extract_strided_slice %7 {offsets = [0, 128], sizes = [2, 128], strides = [1, 1]} : vector<2x384xbf16> to vector<2x128xbf16>
    %20 = vector.extract_strided_slice %9 {offsets = [0, 128], sizes = [2, 128], strides = [1, 1]} : vector<2x384xf32> to vector<2x128xf32>
    %21 = arith.extf %19 : vector<2x128xbf16> to vector<2x128xf32>
    %22 = arith.addf %21, %20 : vector<2x128xf32>
    %23 = arith.negf %22 : vector<2x128xf32>
    %24 = math.exp %23 : vector<2x128xf32>
    %cst_9 = arith.constant 1.000000e+00 : f32
    %25 = vector.broadcast %cst_9 : f32 to vector<2x128xf32>
    %26 = arith.addf %25, %24 : vector<2x128xf32>
    %27 = arith.divf %25, %26 : vector<2x128xf32>
    %28 = vector.extract_strided_slice %7 {offsets = [0, 256], sizes = [2, 128], strides = [1, 1]} : vector<2x384xbf16> to vector<2x128xbf16>
    %29 = vector.extract_strided_slice %9 {offsets = [0, 256], sizes = [2, 128], strides = [1, 1]} : vector<2x384xf32> to vector<2x128xf32>
    %30 = arith.addf %29, %5 : vector<2x128xf32>
    %31 = arith.mulf %18, %30 : vector<2x128xf32>
    %32 = arith.extf %28 : vector<2x128xbf16> to vector<2x128xf32>
    %33 = arith.addf %32, %31 : vector<2x128xf32>
    %34 = math.tanh %33 : vector<2x128xf32>
    %cst_10 = arith.constant 1.000000e+00 : f32
    %35 = vector.broadcast %cst_10 : f32 to vector<2x128xf32>
    %36 = arith.subf %35, %27 : vector<2x128xf32>
    %37 = arith.mulf %36, %34 : vector<2x128xf32>
    %38 = arith.mulf %27, %6 : vector<2x128xf32>
    %39 = arith.addf %37, %38 : vector<2x128xf32>
    %40 = arith.truncf %39 : vector<2x128xf32> to vector<2x128xbf16>
    %c0_11 = arith.constant 0 : index
    %c0_12 = arith.constant 0 : index
    %41 = vector.load %arg6[%c0_11, %c0_12] : memref<16x128xbf16, #tpu.memory_space<vmem>>, vector<2x128xbf16>
    tpu.vector_store %arg6[%c0_11, %c0_12], %40 {strides = array<i32>} : memref<16x128xbf16, #tpu.memory_space<vmem>>, vector<2x128xbf16>,
    %c2 = arith.constant 2 : index
    %c0_13 = arith.constant 0 : index
    %42 = vector.load %arg0[%c2, %c0_13] : memref<16x384xbf16, #tpu.memory_space<vmem>>, vector<2x384xbf16>
    %43 = arith.truncf %39 : vector<2x128xf32> to vector<2x128xbf16>
    %cst_14 = arith.constant dense<0.000000e+00> : vector<2x384xf32>
    %44 = tpu.matmul %43, %1, %cst_14 {dimension_numbers = #tpu.dot_dimension_numbers<[1], [0], [0], [1], [0, 0, 1, 1], [], []>} : vector<2x128xbf16>, vector<128x384xbf16>, vector<2x384xf32> -> vector<2x384xf32>
    %45 = vector.extract_strided_slice %42 {offsets = [0, 0], sizes = [2, 128], strides = [1, 1]} : vector<2x384xbf16> to vector<2x128xbf16>
    %46 = vector.extract_strided_slice %44 {offsets = [0, 0], sizes = [2, 128], strides = [1, 1]} : vector<2x384xf32> to vector<2x128xf32>
    %47 = arith.extf %45 : vector<2x128xbf16> to vector<2x128xf32>
    %48 = arith.addf %47, %46 : vector<2x128xf32>
    %49 = arith.negf %48 : vector<2x128xf32>
    %50 = math.exp %49 : vector<2x128xf32>
    %cst_15 = arith.constant 1.000000e+00 : f32
    %51 = vector.broadcast %cst_15 : f32 to vector<2x128xf32>
    %52 = arith.addf %51, %50 : vector<2x128xf32>
    %53 = arith.divf %51, %52 : vector<2x128xf32>
    %54 = vector.extract_strided_slice %42 {offsets = [0, 128], sizes = [2, 128], strides = [1, 1]} : vector<2x384xbf16> to vector<2x128xbf16>
    %55 = vector.extract_strided_slice %44 {offsets = [0, 128], sizes = [2, 128], strides = [1, 1]} : vector<2x384xf32> to vector<2x128xf32>
    %56 = arith.extf %54 : vector<2x128xbf16> to vector<2x128xf32>
    %57 = arith.addf %56, %55 : vector<2x128xf32>
    %58 = arith.negf %57 : vector<2x128xf32>
    %59 = math.exp %58 : vector<2x128xf32>
    %cst_16 = arith.constant 1.000000e+00 : f32
    %60 = vector.broadcast %cst_16 : f32 to vector<2x128xf32>
    %61 = arith.addf %60, %59 : vector<2x128xf32>
    %62 = arith.divf %60, %61 : vector<2x128xf32>
    %63 = vector.extract_strided_slice %42 {offsets = [0, 256], sizes = [2, 128], strides = [1, 1]} : vector<2x384xbf16> to vector<2x128xbf16>
    %64 = vector.extract_strided_slice %44 {offsets = [0, 256], sizes = [2, 128], strides = [1, 1]} : vector<2x384xf32> to vector<2x128xf32>
    %65 = arith.addf %64, %5 : vector<2x128xf32>
    %66 = arith.mulf %53, %65 : vector<2x128xf32>
    %67 = arith.extf %63 : vector<2x128xbf16> to vector<2x128xf32>
    %68 = arith.addf %67, %66 : vector<2x128xf32>
    %69 = math.tanh %68 : vector<2x128xf32>
    %cst_17 = arith.constant 1.000000e+00 : f32
    %70 = vector.broadcast %cst_17 : f32 to vector<2x128xf32>
    %71 = arith.subf %70, %62 : vector<2x128xf32>
    %72 = arith.mulf %71, %69 : vector<2x128xf32>
    %73 = arith.mulf %62, %39 : vector<2x128xf32>
    %74 = arith.addf %72, %73 : vector<2x128xf32>
    %75 = arith.truncf %74 : vector<2x128xf32> to vector<2x128xbf16>
    %c2_18 = arith.constant 2 : index
    %c0_19 = arith.constant 0 : index
    %76 = vector.load %arg6[%c2_18, %c0_19] : memref<16x128xbf16, #tpu.memory_space<vmem>>, vector<2x128xbf16>
    tpu.vector_store %arg6[%c2_18, %c0_19], %75 {strides = array<i32>} : memref<16x128xbf16, #tpu.memory_space<vmem>>, vector<2x128xbf16>,
    %c4 = arith.constant 4 : index
    %c0_20 = arith.constant 0 : index
    %77 = vector.load %arg0[%c4, %c0_20] : memref<16x384xbf16, #tpu.memory_space<vmem>>, vector<2x384xbf16>
    %78 = arith.truncf %74 : vector<2x128xf32> to vector<2x128xbf16>
    %cst_21 = arith.constant dense<0.000000e+00> : vector<2x384xf32>
    %79 = tpu.matmul %78, %1, %cst_21 {dimension_numbers = #tpu.dot_dimension_numbers<[1], [0], [0], [1], [0, 0, 1, 1], [], []>} : vector<2x128xbf16>, vector<128x384xbf16>, vector<2x384xf32> -> vector<2x384xf32>
    %80 = vector.extract_strided_slice %77 {offsets = [0, 0], sizes = [2, 128], strides = [1, 1]} : vector<2x384xbf16> to vector<2x128xbf16>
    %81 = vector.extract_strided_slice %79 {offsets = [0, 0], sizes = [2, 128], strides = [1, 1]} : vector<2x384xf32> to vector<2x128xf32>
    %82 = arith.extf %80 : vector<2x128xbf16> to vector<2x128xf32>
    %83 = arith.addf %82, %81 : vector<2x128xf32>
    %84 = arith.negf %83 : vector<2x128xf32>
    %85 = math.exp %84 : vector<2x128xf32>
    %cst_22 = arith.constant 1.000000e+00 : f32
    %86 = vector.broadcast %cst_22 : f32 to vector<2x128xf32>
    %87 = arith.addf %86, %85 : vector<2x128xf32>
    %88 = arith.divf %86, %87 : vector<2x128xf32>
    %89 = vector.extract_strided_slice %77 {offsets = [0, 128], sizes = [2, 128], strides = [1, 1]} : vector<2x384xbf16> to vector<2x128xbf16>
    %90 = vector.extract_strided_slice %79 {offsets = [0, 128], sizes = [2, 128], strides = [1, 1]} : vector<2x384xf32> to vector<2x128xf32>
    %91 = arith.extf %89 : vector<2x128xbf16> to vector<2x128xf32>
    %92 = arith.addf %91, %90 : vector<2x128xf32>
    %93 = arith.negf %92 : vector<2x128xf32>
    %94 = math.exp %93 : vector<2x128xf32>
    %cst_23 = arith.constant 1.000000e+00 : f32
    %95 = vector.broadcast %cst_23 : f32 to vector<2x128xf32>
    %96 = arith.addf %95, %94 : vector<2x128xf32>
    %97 = arith.divf %95, %96 : vector<2x128xf32>
    %98 = vector.extract_strided_slice %77 {offsets = [0, 256], sizes = [2, 128], strides = [1, 1]} : vector<2x384xbf16> to vector<2x128xbf16>
    %99 = vector.extract_strided_slice %79 {offsets = [0, 256], sizes = [2, 128], strides = [1, 1]} : vector<2x384xf32> to vector<2x128xf32>
    %100 = arith.addf %99, %5 : vector<2x128xf32>
    %101 = arith.mulf %88, %100 : vector<2x128xf32>
    %102 = arith.extf %98 : vector<2x128xbf16> to vector<2x128xf32>
    %103 = arith.addf %102, %101 : vector<2x128xf32>
    %104 = math.tanh %103 : vector<2x128xf32>
    %cst_24 = arith.constant 1.000000e+00 : f32
    %105 = vector.broadcast %cst_24 : f32 to vector<2x128xf32>
    %106 = arith.subf %105, %97 : vector<2x128xf32>
    %107 = arith.mulf %106, %104 : vector<2x128xf32>
    %108 = arith.mulf %97, %74 : vector<2x128xf32>
    %109 = arith.addf %107, %108 : vector<2x128xf32>
    %110 = arith.truncf %109 : vector<2x128xf32> to vector<2x128xbf16>
    %c4_25 = arith.constant 4 : index
    %c0_26 = arith.constant 0 : index
    %111 = vector.load %arg6[%c4_25, %c0_26] : memref<16x128xbf16, #tpu.memory_space<vmem>>, vector<2x128xbf16>
    tpu.vector_store %arg6[%c4_25, %c0_26], %110 {strides = array<i32>} : memref<16x128xbf16, #tpu.memory_space<vmem>>, vector<2x128xbf16>,
    %c6 = arith.constant 6 : index
    %c0_27 = arith.constant 0 : index
    %112 = vector.load %arg0[%c6, %c0_27] : memref<16x384xbf16, #tpu.memory_space<vmem>>, vector<2x384xbf16>
    %113 = arith.truncf %109 : vector<2x128xf32> to vector<2x128xbf16>
    %cst_28 = arith.constant dense<0.000000e+00> : vector<2x384xf32>
    %114 = tpu.matmul %113, %1, %cst_28 {dimension_numbers = #tpu.dot_dimension_numbers<[1], [0], [0], [1], [0, 0, 1, 1], [], []>} : vector<2x128xbf16>, vector<128x384xbf16>, vector<2x384xf32> -> vector<2x384xf32>
    %115 = vector.extract_strided_slice %112 {offsets = [0, 0], sizes = [2, 128], strides = [1, 1]} : vector<2x384xbf16> to vector<2x128xbf16>
    %116 = vector.extract_strided_slice %114 {offsets = [0, 0], sizes = [2, 128], strides = [1, 1]} : vector<2x384xf32> to vector<2x128xf32>
    %117 = arith.extf %115 : vector<2x128xbf16> to vector<2x128xf32>
    %118 = arith.addf %117, %116 : vector<2x128xf32>
    %119 = arith.negf %118 : vector<2x128xf32>
    %120 = math.exp %119 : vector<2x128xf32>
    %cst_29 = arith.constant 1.000000e+00 : f32
    %121 = vector.broadcast %cst_29 : f32 to vector<2x128xf32>
    %122 = arith.addf %121, %120 : vector<2x128xf32>
    %123 = arith.divf %121, %122 : vector<2x128xf32>
    %124 = vector.extract_strided_slice %112 {offsets = [0, 128], sizes = [2, 128], strides = [1, 1]} : vector<2x384xbf16> to vector<2x128xbf16>
    %125 = vector.extract_strided_slice %114 {offsets = [0, 128], sizes = [2, 128], strides = [1, 1]} : vector<2x384xf32> to vector<2x128xf32>
    %126 = arith.extf %124 : vector<2x128xbf16> to vector<2x128xf32>
    %127 = arith.addf %126, %125 : vector<2x128xf32>
    %128 = arith.negf %127 : vector<2x128xf32>
    %129 = math.exp %128 : vector<2x128xf32>
    %cst_30 = arith.constant 1.000000e+00 : f32
    %130 = vector.broadcast %cst_30 : f32 to vector<2x128xf32>
    %131 = arith.addf %130, %129 : vector<2x128xf32>
    %132 = arith.divf %130, %131 : vector<2x128xf32>
    %133 = vector.extract_strided_slice %112 {offsets = [0, 256], sizes = [2, 128], strides = [1, 1]} : vector<2x384xbf16> to vector<2x128xbf16>
    %134 = vector.extract_strided_slice %114 {offsets = [0, 256], sizes = [2, 128], strides = [1, 1]} : vector<2x384xf32> to vector<2x128xf32>
    %135 = arith.addf %134, %5 : vector<2x128xf32>
    %136 = arith.mulf %123, %135 : vector<2x128xf32>
    %137 = arith.extf %133 : vector<2x128xbf16> to vector<2x128xf32>
    %138 = arith.addf %137, %136 : vector<2x128xf32>
    %139 = math.tanh %138 : vector<2x128xf32>
    %cst_31 = arith.constant 1.000000e+00 : f32
    %140 = vector.broadcast %cst_31 : f32 to vector<2x128xf32>
    %141 = arith.subf %140, %132 : vector<2x128xf32>
    %142 = arith.mulf %141, %139 : vector<2x128xf32>
    %143 = arith.mulf %132, %109 : vector<2x128xf32>
    %144 = arith.addf %142, %143 : vector<2x128xf32>
    %145 = arith.truncf %144 : vector<2x128xf32> to vector<2x128xbf16>
    %c6_32 = arith.constant 6 : index
    %c0_33 = arith.constant 0 : index
    %146 = vector.load %arg6[%c6_32, %c0_33] : memref<16x128xbf16, #tpu.memory_space<vmem>>, vector<2x128xbf16>
    tpu.vector_store %arg6[%c6_32, %c0_33], %145 {strides = array<i32>} : memref<16x128xbf16, #tpu.memory_space<vmem>>, vector<2x128xbf16>,
    %c8 = arith.constant 8 : index
    %c0_34 = arith.constant 0 : index
    %147 = vector.load %arg0[%c8, %c0_34] : memref<16x384xbf16, #tpu.memory_space<vmem>>, vector<2x384xbf16>
    %148 = arith.truncf %144 : vector<2x128xf32> to vector<2x128xbf16>
    %cst_35 = arith.constant dense<0.000000e+00> : vector<2x384xf32>
    %149 = tpu.matmul %148, %1, %cst_35 {dimension_numbers = #tpu.dot_dimension_numbers<[1], [0], [0], [1], [0, 0, 1, 1], [], []>} : vector<2x128xbf16>, vector<128x384xbf16>, vector<2x384xf32> -> vector<2x384xf32>
    %150 = vector.extract_strided_slice %147 {offsets = [0, 0], sizes = [2, 128], strides = [1, 1]} : vector<2x384xbf16> to vector<2x128xbf16>
    %151 = vector.extract_strided_slice %149 {offsets = [0, 0], sizes = [2, 128], strides = [1, 1]} : vector<2x384xf32> to vector<2x128xf32>
    %152 = arith.extf %150 : vector<2x128xbf16> to vector<2x128xf32>
    %153 = arith.addf %152, %151 : vector<2x128xf32>
    %154 = arith.negf %153 : vector<2x128xf32>
    %155 = math.exp %154 : vector<2x128xf32>
    %cst_36 = arith.constant 1.000000e+00 : f32
    %156 = vector.broadcast %cst_36 : f32 to vector<2x128xf32>
    %157 = arith.addf %156, %155 : vector<2x128xf32>
    %158 = arith.divf %156, %157 : vector<2x128xf32>
    %159 = vector.extract_strided_slice %147 {offsets = [0, 128], sizes = [2, 128], strides = [1, 1]} : vector<2x384xbf16> to vector<2x128xbf16>
    %160 = vector.extract_strided_slice %149 {offsets = [0, 128], sizes = [2, 128], strides = [1, 1]} : vector<2x384xf32> to vector<2x128xf32>
    %161 = arith.extf %159 : vector<2x128xbf16> to vector<2x128xf32>
    %162 = arith.addf %161, %160 : vector<2x128xf32>
    %163 = arith.negf %162 : vector<2x128xf32>
    %164 = math.exp %163 : vector<2x128xf32>
    %cst_37 = arith.constant 1.000000e+00 : f32
    %165 = vector.broadcast %cst_37 : f32 to vector<2x128xf32>
    %166 = arith.addf %165, %164 : vector<2x128xf32>
    %167 = arith.divf %165, %166 : vector<2x128xf32>
    %168 = vector.extract_strided_slice %147 {offsets = [0, 256], sizes = [2, 128], strides = [1, 1]} : vector<2x384xbf16> to vector<2x128xbf16>
    %169 = vector.extract_strided_slice %149 {offsets = [0, 256], sizes = [2, 128], strides = [1, 1]} : vector<2x384xf32> to vector<2x128xf32>
    %170 = arith.addf %169, %5 : vector<2x128xf32>
    %171 = arith.mulf %158, %170 : vector<2x128xf32>
    %172 = arith.extf %168 : vector<2x128xbf16> to vector<2x128xf32>
    %173 = arith.addf %172, %171 : vector<2x128xf32>
    %174 = math.tanh %173 : vector<2x128xf32>
    %cst_38 = arith.constant 1.000000e+00 : f32
    %175 = vector.broadcast %cst_38 : f32 to vector<2x128xf32>
    %176 = arith.subf %175, %167 : vector<2x128xf32>
    %177 = arith.mulf %176, %174 : vector<2x128xf32>
    %178 = arith.mulf %167, %144 : vector<2x128xf32>
    %179 = arith.addf %177, %178 : vector<2x128xf32>
    %180 = arith.truncf %179 : vector<2x128xf32> to vector<2x128xbf16>
    %c8_39 = arith.constant 8 : index
    %c0_40 = arith.constant 0 : index
    %181 = vector.load %arg6[%c8_39, %c0_40] : memref<16x128xbf16, #tpu.memory_space<vmem>>, vector<2x128xbf16>
    tpu.vector_store %arg6[%c8_39, %c0_40], %180 {strides = array<i32>} : memref<16x128xbf16, #tpu.memory_space<vmem>>, vector<2x128xbf16>,
    %c10 = arith.constant 10 : index
    %c0_41 = arith.constant 0 : index
    %182 = vector.load %arg0[%c10, %c0_41] : memref<16x384xbf16, #tpu.memory_space<vmem>>, vector<2x384xbf16>
    %183 = arith.truncf %179 : vector<2x128xf32> to vector<2x128xbf16>
    %cst_42 = arith.constant dense<0.000000e+00> : vector<2x384xf32>
    %184 = tpu.matmul %183, %1, %cst_42 {dimension_numbers = #tpu.dot_dimension_numbers<[1], [0], [0], [1], [0, 0, 1, 1], [], []>} : vector<2x128xbf16>, vector<128x384xbf16>, vector<2x384xf32> -> vector<2x384xf32>
    %185 = vector.extract_strided_slice %182 {offsets = [0, 0], sizes = [2, 128], strides = [1, 1]} : vector<2x384xbf16> to vector<2x128xbf16>
    %186 = vector.extract_strided_slice %184 {offsets = [0, 0], sizes = [2, 128], strides = [1, 1]} : vector<2x384xf32> to vector<2x128xf32>
    %187 = arith.extf %185 : vector<2x128xbf16> to vector<2x128xf32>
    %188 = arith.addf %187, %186 : vector<2x128xf32>
    %189 = arith.negf %188 : vector<2x128xf32>
    %190 = math.exp %189 : vector<2x128xf32>
    %cst_43 = arith.constant 1.000000e+00 : f32
    %191 = vector.broadcast %cst_43 : f32 to vector<2x128xf32>
    %192 = arith.addf %191, %190 : vector<2x128xf32>
    %193 = arith.divf %191, %192 : vector<2x128xf32>
    %194 = vector.extract_strided_slice %182 {offsets = [0, 128], sizes = [2, 128], strides = [1, 1]} : vector<2x384xbf16> to vector<2x128xbf16>
    %195 = vector.extract_strided_slice %184 {offsets = [0, 128], sizes = [2, 128], strides = [1, 1]} : vector<2x384xf32> to vector<2x128xf32>
    %196 = arith.extf %194 : vector<2x128xbf16> to vector<2x128xf32>
    %197 = arith.addf %196, %195 : vector<2x128xf32>
    %198 = arith.negf %197 : vector<2x128xf32>
    %199 = math.exp %198 : vector<2x128xf32>
    %cst_44 = arith.constant 1.000000e+00 : f32
    %200 = vector.broadcast %cst_44 : f32 to vector<2x128xf32>
    %201 = arith.addf %200, %199 : vector<2x128xf32>
    %202 = arith.divf %200, %201 : vector<2x128xf32>
    %203 = vector.extract_strided_slice %182 {offsets = [0, 256], sizes = [2, 128], strides = [1, 1]} : vector<2x384xbf16> to vector<2x128xbf16>
    %204 = vector.extract_strided_slice %184 {offsets = [0, 256], sizes = [2, 128], strides = [1, 1]} : vector<2x384xf32> to vector<2x128xf32>
    %205 = arith.addf %204, %5 : vector<2x128xf32>
    %206 = arith.mulf %193, %205 : vector<2x128xf32>
    %207 = arith.extf %203 : vector<2x128xbf16> to vector<2x128xf32>
    %208 = arith.addf %207, %206 : vector<2x128xf32>
    %209 = math.tanh %208 : vector<2x128xf32>
    %cst_45 = arith.constant 1.000000e+00 : f32
    %210 = vector.broadcast %cst_45 : f32 to vector<2x128xf32>
    %211 = arith.subf %210, %202 : vector<2x128xf32>
    %212 = arith.mulf %211, %209 : vector<2x128xf32>
    %213 = arith.mulf %202, %179 : vector<2x128xf32>
    %214 = arith.addf %212, %213 : vector<2x128xf32>
    %215 = arith.truncf %214 : vector<2x128xf32> to vector<2x128xbf16>
    %c10_46 = arith.constant 10 : index
    %c0_47 = arith.constant 0 : index
    %216 = vector.load %arg6[%c10_46, %c0_47] : memref<16x128xbf16, #tpu.memory_space<vmem>>, vector<2x128xbf16>
    tpu.vector_store %arg6[%c10_46, %c0_47], %215 {strides = array<i32>} : memref<16x128xbf16, #tpu.memory_space<vmem>>, vector<2x128xbf16>,
    %c12 = arith.constant 12 : index
    %c0_48 = arith.constant 0 : index
    %217 = vector.load %arg0[%c12, %c0_48] : memref<16x384xbf16, #tpu.memory_space<vmem>>, vector<2x384xbf16>
    %218 = arith.truncf %214 : vector<2x128xf32> to vector<2x128xbf16>
    %cst_49 = arith.constant dense<0.000000e+00> : vector<2x384xf32>
    %219 = tpu.matmul %218, %1, %cst_49 {dimension_numbers = #tpu.dot_dimension_numbers<[1], [0], [0], [1], [0, 0, 1, 1], [], []>} : vector<2x128xbf16>, vector<128x384xbf16>, vector<2x384xf32> -> vector<2x384xf32>
    %220 = vector.extract_strided_slice %217 {offsets = [0, 0], sizes = [2, 128], strides = [1, 1]} : vector<2x384xbf16> to vector<2x128xbf16>
    %221 = vector.extract_strided_slice %219 {offsets = [0, 0], sizes = [2, 128], strides = [1, 1]} : vector<2x384xf32> to vector<2x128xf32>
    %222 = arith.extf %220 : vector<2x128xbf16> to vector<2x128xf32>
    %223 = arith.addf %222, %221 : vector<2x128xf32>
    %224 = arith.negf %223 : vector<2x128xf32>
    %225 = math.exp %224 : vector<2x128xf32>
    %cst_50 = arith.constant 1.000000e+00 : f32
    %226 = vector.broadcast %cst_50 : f32 to vector<2x128xf32>
    %227 = arith.addf %226, %225 : vector<2x128xf32>
    %228 = arith.divf %226, %227 : vector<2x128xf32>
    %229 = vector.extract_strided_slice %217 {offsets = [0, 128], sizes = [2, 128], strides = [1, 1]} : vector<2x384xbf16> to vector<2x128xbf16>
    %230 = vector.extract_strided_slice %219 {offsets = [0, 128], sizes = [2, 128], strides = [1, 1]} : vector<2x384xf32> to vector<2x128xf32>
    %231 = arith.extf %229 : vector<2x128xbf16> to vector<2x128xf32>
    %232 = arith.addf %231, %230 : vector<2x128xf32>
    %233 = arith.negf %232 : vector<2x128xf32>
    %234 = math.exp %233 : vector<2x128xf32>
    %cst_51 = arith.constant 1.000000e+00 : f32
    %235 = vector.broadcast %cst_51 : f32 to vector<2x128xf32>
    %236 = arith.addf %235, %234 : vector<2x128xf32>
    %237 = arith.divf %235, %236 : vector<2x128xf32>
    %238 = vector.extract_strided_slice %217 {offsets = [0, 256], sizes = [2, 128], strides = [1, 1]} : vector<2x384xbf16> to vector<2x128xbf16>
    %239 = vector.extract_strided_slice %219 {offsets = [0, 256], sizes = [2, 128], strides = [1, 1]} : vector<2x384xf32> to vector<2x128xf32>
    %240 = arith.addf %239, %5 : vector<2x128xf32>
    %241 = arith.mulf %228, %240 : vector<2x128xf32>
    %242 = arith.extf %238 : vector<2x128xbf16> to vector<2x128xf32>
    %243 = arith.addf %242, %241 : vector<2x128xf32>
    %244 = math.tanh %243 : vector<2x128xf32>
    %cst_52 = arith.constant 1.000000e+00 : f32
    %245 = vector.broadcast %cst_52 : f32 to vector<2x128xf32>
    %246 = arith.subf %245, %237 : vector<2x128xf32>
    %247 = arith.mulf %246, %244 : vector<2x128xf32>
    %248 = arith.mulf %237, %214 : vector<2x128xf32>
    %249 = arith.addf %247, %248 : vector<2x128xf32>
    %250 = arith.truncf %249 : vector<2x128xf32> to vector<2x128xbf16>
    %c12_53 = arith.constant 12 : index
    %c0_54 = arith.constant 0 : index
    %251 = vector.load %arg6[%c12_53, %c0_54] : memref<16x128xbf16, #tpu.memory_space<vmem>>, vector<2x128xbf16>
    tpu.vector_store %arg6[%c12_53, %c0_54], %250 {strides = array<i32>} : memref<16x128xbf16, #tpu.memory_space<vmem>>, vector<2x128xbf16>,
    %c14 = arith.constant 14 : index
    %c0_55 = arith.constant 0 : index
    %252 = vector.load %arg0[%c14, %c0_55] : memref<16x384xbf16, #tpu.memory_space<vmem>>, vector<2x384xbf16>
    %253 = arith.truncf %249 : vector<2x128xf32> to vector<2x128xbf16>
    %cst_56 = arith.constant dense<0.000000e+00> : vector<2x384xf32>
    %254 = tpu.matmul %253, %1, %cst_56 {dimension_numbers = #tpu.dot_dimension_numbers<[1], [0], [0], [1], [0, 0, 1, 1], [], []>} : vector<2x128xbf16>, vector<128x384xbf16>, vector<2x384xf32> -> vector<2x384xf32>
    %255 = vector.extract_strided_slice %252 {offsets = [0, 0], sizes = [2, 128], strides = [1, 1]} : vector<2x384xbf16> to vector<2x128xbf16>
    %256 = vector.extract_strided_slice %254 {offsets = [0, 0], sizes = [2, 128], strides = [1, 1]} : vector<2x384xf32> to vector<2x128xf32>
    %257 = arith.extf %255 : vector<2x128xbf16> to vector<2x128xf32>
    %258 = arith.addf %257, %256 : vector<2x128xf32>
    %259 = arith.negf %258 : vector<2x128xf32>
    %260 = math.exp %259 : vector<2x128xf32>
    %cst_57 = arith.constant 1.000000e+00 : f32
    %261 = vector.broadcast %cst_57 : f32 to vector<2x128xf32>
    %262 = arith.addf %261, %260 : vector<2x128xf32>
    %263 = arith.divf %261, %262 : vector<2x128xf32>
    %264 = vector.extract_strided_slice %252 {offsets = [0, 128], sizes = [2, 128], strides = [1, 1]} : vector<2x384xbf16> to vector<2x128xbf16>
    %265 = vector.extract_strided_slice %254 {offsets = [0, 128], sizes = [2, 128], strides = [1, 1]} : vector<2x384xf32> to vector<2x128xf32>
    %266 = arith.extf %264 : vector<2x128xbf16> to vector<2x128xf32>
    %267 = arith.addf %266, %265 : vector<2x128xf32>
    %268 = arith.negf %267 : vector<2x128xf32>
    %269 = math.exp %268 : vector<2x128xf32>
    %cst_58 = arith.constant 1.000000e+00 : f32
    %270 = vector.broadcast %cst_58 : f32 to vector<2x128xf32>
    %271 = arith.addf %270, %269 : vector<2x128xf32>
    %272 = arith.divf %270, %271 : vector<2x128xf32>
    %273 = vector.extract_strided_slice %252 {offsets = [0, 256], sizes = [2, 128], strides = [1, 1]} : vector<2x384xbf16> to vector<2x128xbf16>
    %274 = vector.extract_strided_slice %254 {offsets = [0, 256], sizes = [2, 128], strides = [1, 1]} : vector<2x384xf32> to vector<2x128xf32>
    %275 = arith.addf %274, %5 : vector<2x128xf32>
    %276 = arith.mulf %263, %275 : vector<2x128xf32>
    %277 = arith.extf %273 : vector<2x128xbf16> to vector<2x128xf32>
    %278 = arith.addf %277, %276 : vector<2x128xf32>
    %279 = math.tanh %278 : vector<2x128xf32>
    %cst_59 = arith.constant 1.000000e+00 : f32
    %280 = vector.broadcast %cst_59 : f32 to vector<2x128xf32>
    %281 = arith.subf %280, %272 : vector<2x128xf32>
    %282 = arith.mulf %281, %279 : vector<2x128xf32>
    %283 = arith.mulf %272, %249 : vector<2x128xf32>
    %284 = arith.addf %282, %283 : vector<2x128xf32>
    %285 = arith.truncf %284 : vector<2x128xf32> to vector<2x128xbf16>
    %c14_60 = arith.constant 14 : index
    %c0_61 = arith.constant 0 : index
    %286 = vector.load %arg6[%c14_60, %c0_61] : memref<16x128xbf16, #tpu.memory_space<vmem>>, vector<2x128xbf16>
    tpu.vector_store %arg6[%c14_60, %c0_61], %285 {strides = array<i32>} : memref<16x128xbf16, #tpu.memory_space<vmem>>, vector<2x128xbf16>,
    %c1 = arith.constant 1 : index
    %c0_62 = arith.constant 0 : index
    %c0_63 = arith.constant 0 : index
    %287 = vector.load %arg1[%c1, %c0_62, %c0_63] : memref<2x128x384xbf16, #tpu.memory_space<vmem>>, vector<1x128x384xbf16>
    %288 = vector.shape_cast %287 : vector<1x128x384xbf16> to vector<128x384xbf16>
    %c1_64 = arith.constant 1 : index
    %c0_65 = arith.constant 0 : index
    %c0_66 = arith.constant 0 : index
    %289 = vector.load %arg2[%c1_64, %c0_65, %c0_66] : memref<2x1x128xf32, #tpu.memory_space<vmem>>, vector<1x1x128xf32>
    %290 = vector.shape_cast %289 : vector<1x1x128xf32> to vector<1x128xf32>
    %291 = vector.shape_cast %290 : vector<1x128xf32> to vector<1x128xf32>
    %292 = vector.broadcast %291 : vector<1x128xf32> to vector<2x128xf32>
    %c0_67 = arith.constant 0 : index
    %c0_68 = arith.constant 0 : index
    %293 = vector.load %arg6[%c0_67, %c0_68] : memref<16x128xbf16, #tpu.memory_space<vmem>>, vector<16x128xbf16>
    %c0_69 = arith.constant 0 : index
    %c0_70 = arith.constant 0 : index
    %c0_71 = arith.constant 0 : index
    %294 = vector.load %arg3[%c0_69, %c0_70, %c0_71] : memref<1x128x384xbf16, #tpu.memory_space<vmem>>, vector<1x128x384xbf16>
    %295 = vector.shape_cast %294 : vector<1x128x384xbf16> to vector<128x384xbf16>
    %cst_72 = arith.constant dense<0.000000e+00> : vector<16x384xf32>
    %296 = tpu.matmul %293, %295, %cst_72 {dimension_numbers = #tpu.dot_dimension_numbers<[1], [0], [0], [1], [0, 0, 1, 1], [], []>} : vector<16x128xbf16>, vector<128x384xbf16>, vector<16x384xf32> -> vector<16x384xf32>
    %c0_73 = arith.constant 0 : index
    %c0_74 = arith.constant 0 : index
    %c0_75 = arith.constant 0 : index
    %297 = vector.load %arg4[%c0_73, %c0_74, %c0_75] : memref<1x1x384xf32, #tpu.memory_space<vmem>>, vector<1x1x384xf32>
    %298 = vector.shape_cast %297 : vector<1x1x384xf32> to vector<1x384xf32>
    %299 = vector.broadcast %298 : vector<1x384xf32> to vector<16x384xf32>
    %300 = arith.addf %296, %299 : vector<16x384xf32>
    %301 = arith.truncf %300 : vector<16x384xf32> to vector<16x384xbf16>
    %c0_76 = arith.constant 0 : index
    %c0_77 = arith.constant 0 : index
    %302 = vector.load %arg7[%c0_76, %c0_77] : memref<16x384xbf16, #tpu.memory_space<vmem>>, vector<16x384xbf16>
    tpu.vector_store %arg7[%c0_76, %c0_77], %301 {strides = array<i32>} : memref<16x384xbf16, #tpu.memory_space<vmem>>, vector<16x384xbf16>,
    %cst_78 = arith.constant 0.000000e+00 : f32
    %303 = vector.broadcast %cst_78 : f32 to vector<2x128xf32>
    %c0_79 = arith.constant 0 : index
    %c0_80 = arith.constant 0 : index
    %304 = vector.load %arg7[%c0_79, %c0_80] : memref<16x384xbf16, #tpu.memory_space<vmem>>, vector<2x384xbf16>
    %305 = arith.truncf %303 : vector<2x128xf32> to vector<2x128xbf16>
    %cst_81 = arith.constant dense<0.000000e+00> : vector<2x384xf32>
    %306 = tpu.matmul %305, %288, %cst_81 {dimension_numbers = #tpu.dot_dimension_numbers<[1], [0], [0], [1], [0, 0, 1, 1], [], []>} : vector<2x128xbf16>, vector<128x384xbf16>, vector<2x384xf32> -> vector<2x384xf32>
    %307 = vector.extract_strided_slice %304 {offsets = [0, 0], sizes = [2, 128], strides = [1, 1]} : vector<2x384xbf16> to vector<2x128xbf16>
    %308 = vector.extract_strided_slice %306 {offsets = [0, 0], sizes = [2, 128], strides = [1, 1]} : vector<2x384xf32> to vector<2x128xf32>
    %309 = arith.extf %307 : vector<2x128xbf16> to vector<2x128xf32>
    %310 = arith.addf %309, %308 : vector<2x128xf32>
    %311 = arith.negf %310 : vector<2x128xf32>
    %312 = math.exp %311 : vector<2x128xf32>
    %cst_82 = arith.constant 1.000000e+00 : f32
    %313 = vector.broadcast %cst_82 : f32 to vector<2x128xf32>
    %314 = arith.addf %313, %312 : vector<2x128xf32>
    %315 = arith.divf %313, %314 : vector<2x128xf32>
    %316 = vector.extract_strided_slice %304 {offsets = [0, 128], sizes = [2, 128], strides = [1, 1]} : vector<2x384xbf16> to vector<2x128xbf16>
    %317 = vector.extract_strided_slice %306 {offsets = [0, 128], sizes = [2, 128], strides = [1, 1]} : vector<2x384xf32> to vector<2x128xf32>
    %318 = arith.extf %316 : vector<2x128xbf16> to vector<2x128xf32>
    %319 = arith.addf %318, %317 : vector<2x128xf32>
    %320 = arith.negf %319 : vector<2x128xf32>
    %321 = math.exp %320 : vector<2x128xf32>
    %cst_83 = arith.constant 1.000000e+00 : f32
    %322 = vector.broadcast %cst_83 : f32 to vector<2x128xf32>
    %323 = arith.addf %322, %321 : vector<2x128xf32>
    %324 = arith.divf %322, %323 : vector<2x128xf32>
    %325 = vector.extract_strided_slice %304 {offsets = [0, 256], sizes = [2, 128], strides = [1, 1]} : vector<2x384xbf16> to vector<2x128xbf16>
    %326 = vector.extract_strided_slice %306 {offsets = [0, 256], sizes = [2, 128], strides = [1, 1]} : vector<2x384xf32> to vector<2x128xf32>
    %327 = arith.addf %326, %292 : vector<2x128xf32>
    %328 = arith.mulf %315, %327 : vector<2x128xf32>
    %329 = arith.extf %325 : vector<2x128xbf16> to vector<2x128xf32>
    %330 = arith.addf %329, %328 : vector<2x128xf32>
    %331 = math.tanh %330 : vector<2x128xf32>
    %cst_84 = arith.constant 1.000000e+00 : f32
    %332 = vector.broadcast %cst_84 : f32 to vector<2x128xf32>
    %333 = arith.subf %332, %324 : vector<2x128xf32>
    %334 = arith.mulf %333, %331 : vector<2x128xf32>
    %335 = arith.mulf %324, %303 : vector<2x128xf32>
    %336 = arith.addf %334, %335 : vector<2x128xf32>
    %c2_85 = arith.constant 2 : index
    %c0_86 = arith.constant 0 : index
    %337 = vector.load %arg7[%c2_85, %c0_86] : memref<16x384xbf16, #tpu.memory_space<vmem>>, vector<2x384xbf16>
    %338 = arith.truncf %336 : vector<2x128xf32> to vector<2x128xbf16>
    %cst_87 = arith.constant dense<0.000000e+00> : vector<2x384xf32>
    %339 = tpu.matmul %338, %288, %cst_87 {dimension_numbers = #tpu.dot_dimension_numbers<[1], [0], [0], [1], [0, 0, 1, 1], [], []>} : vector<2x128xbf16>, vector<128x384xbf16>, vector<2x384xf32> -> vector<2x384xf32>
    %340 = vector.extract_strided_slice %337 {offsets = [0, 0], sizes = [2, 128], strides = [1, 1]} : vector<2x384xbf16> to vector<2x128xbf16>
    %341 = vector.extract_strided_slice %339 {offsets = [0, 0], sizes = [2, 128], strides = [1, 1]} : vector<2x384xf32> to vector<2x128xf32>
    %342 = arith.extf %340 : vector<2x128xbf16> to vector<2x128xf32>
    %343 = arith.addf %342, %341 : vector<2x128xf32>
    %344 = arith.negf %343 : vector<2x128xf32>
    %345 = math.exp %344 : vector<2x128xf32>
    %cst_88 = arith.constant 1.000000e+00 : f32
    %346 = vector.broadcast %cst_88 : f32 to vector<2x128xf32>
    %347 = arith.addf %346, %345 : vector<2x128xf32>
    %348 = arith.divf %346, %347 : vector<2x128xf32>
    %349 = vector.extract_strided_slice %337 {offsets = [0, 128], sizes = [2, 128], strides = [1, 1]} : vector<2x384xbf16> to vector<2x128xbf16>
    %350 = vector.extract_strided_slice %339 {offsets = [0, 128], sizes = [2, 128], strides = [1, 1]} : vector<2x384xf32> to vector<2x128xf32>
    %351 = arith.extf %349 : vector<2x128xbf16> to vector<2x128xf32>
    %352 = arith.addf %351, %350 : vector<2x128xf32>
    %353 = arith.negf %352 : vector<2x128xf32>
    %354 = math.exp %353 : vector<2x128xf32>
    %cst_89 = arith.constant 1.000000e+00 : f32
    %355 = vector.broadcast %cst_89 : f32 to vector<2x128xf32>
    %356 = arith.addf %355, %354 : vector<2x128xf32>
    %357 = arith.divf %355, %356 : vector<2x128xf32>
    %358 = vector.extract_strided_slice %337 {offsets = [0, 256], sizes = [2, 128], strides = [1, 1]} : vector<2x384xbf16> to vector<2x128xbf16>
    %359 = vector.extract_strided_slice %339 {offsets = [0, 256], sizes = [2, 128], strides = [1, 1]} : vector<2x384xf32> to vector<2x128xf32>
    %360 = arith.addf %359, %292 : vector<2x128xf32>
    %361 = arith.mulf %348, %360 : vector<2x128xf32>
    %362 = arith.extf %358 : vector<2x128xbf16> to vector<2x128xf32>
    %363 = arith.addf %362, %361 : vector<2x128xf32>
    %364 = math.tanh %363 : vector<2x128xf32>
    %cst_90 = arith.constant 1.000000e+00 : f32
    %365 = vector.broadcast %cst_90 : f32 to vector<2x128xf32>
    %366 = arith.subf %365, %357 : vector<2x128xf32>
    %367 = arith.mulf %366, %364 : vector<2x128xf32>
    %368 = arith.mulf %357, %336 : vector<2x128xf32>
    %369 = arith.addf %367, %368 : vector<2x128xf32>
    %c4_91 = arith.constant 4 : index
    %c0_92 = arith.constant 0 : index
    %370 = vector.load %arg7[%c4_91, %c0_92] : memref<16x384xbf16, #tpu.memory_space<vmem>>, vector<2x384xbf16>
    %371 = arith.truncf %369 : vector<2x128xf32> to vector<2x128xbf16>
    %cst_93 = arith.constant dense<0.000000e+00> : vector<2x384xf32>
    %372 = tpu.matmul %371, %288, %cst_93 {dimension_numbers = #tpu.dot_dimension_numbers<[1], [0], [0], [1], [0, 0, 1, 1], [], []>} : vector<2x128xbf16>, vector<128x384xbf16>, vector<2x384xf32> -> vector<2x384xf32>
    %373 = vector.extract_strided_slice %370 {offsets = [0, 0], sizes = [2, 128], strides = [1, 1]} : vector<2x384xbf16> to vector<2x128xbf16>
    %374 = vector.extract_strided_slice %372 {offsets = [0, 0], sizes = [2, 128], strides = [1, 1]} : vector<2x384xf32> to vector<2x128xf32>
    %375 = arith.extf %373 : vector<2x128xbf16> to vector<2x128xf32>
    %376 = arith.addf %375, %374 : vector<2x128xf32>
    %377 = arith.negf %376 : vector<2x128xf32>
    %378 = math.exp %377 : vector<2x128xf32>
    %cst_94 = arith.constant 1.000000e+00 : f32
    %379 = vector.broadcast %cst_94 : f32 to vector<2x128xf32>
    %380 = arith.addf %379, %378 : vector<2x128xf32>
    %381 = arith.divf %379, %380 : vector<2x128xf32>
    %382 = vector.extract_strided_slice %370 {offsets = [0, 128], sizes = [2, 128], strides = [1, 1]} : vector<2x384xbf16> to vector<2x128xbf16>
    %383 = vector.extract_strided_slice %372 {offsets = [0, 128], sizes = [2, 128], strides = [1, 1]} : vector<2x384xf32> to vector<2x128xf32>
    %384 = arith.extf %382 : vector<2x128xbf16> to vector<2x128xf32>
    %385 = arith.addf %384, %383 : vector<2x128xf32>
    %386 = arith.negf %385 : vector<2x128xf32>
    %387 = math.exp %386 : vector<2x128xf32>
    %cst_95 = arith.constant 1.000000e+00 : f32
    %388 = vector.broadcast %cst_95 : f32 to vector<2x128xf32>
    %389 = arith.addf %388, %387 : vector<2x128xf32>
    %390 = arith.divf %388, %389 : vector<2x128xf32>
    %391 = vector.extract_strided_slice %370 {offsets = [0, 256], sizes = [2, 128], strides = [1, 1]} : vector<2x384xbf16> to vector<2x128xbf16>
    %392 = vector.extract_strided_slice %372 {offsets = [0, 256], sizes = [2, 128], strides = [1, 1]} : vector<2x384xf32> to vector<2x128xf32>
    %393 = arith.addf %392, %292 : vector<2x128xf32>
    %394 = arith.mulf %381, %393 : vector<2x128xf32>
    %395 = arith.extf %391 : vector<2x128xbf16> to vector<2x128xf32>
    %396 = arith.addf %395, %394 : vector<2x128xf32>
    %397 = math.tanh %396 : vector<2x128xf32>
    %cst_96 = arith.constant 1.000000e+00 : f32
    %398 = vector.broadcast %cst_96 : f32 to vector<2x128xf32>
    %399 = arith.subf %398, %390 : vector<2x128xf32>
    %400 = arith.mulf %399, %397 : vector<2x128xf32>
    %401 = arith.mulf %390, %369 : vector<2x128xf32>
    %402 = arith.addf %400, %401 : vector<2x128xf32>
    %c6_97 = arith.constant 6 : index
    %c0_98 = arith.constant 0 : index
    %403 = vector.load %arg7[%c6_97, %c0_98] : memref<16x384xbf16, #tpu.memory_space<vmem>>, vector<2x384xbf16>
    %404 = arith.truncf %402 : vector<2x128xf32> to vector<2x128xbf16>
    %cst_99 = arith.constant dense<0.000000e+00> : vector<2x384xf32>
    %405 = tpu.matmul %404, %288, %cst_99 {dimension_numbers = #tpu.dot_dimension_numbers<[1], [0], [0], [1], [0, 0, 1, 1], [], []>} : vector<2x128xbf16>, vector<128x384xbf16>, vector<2x384xf32> -> vector<2x384xf32>
    %406 = vector.extract_strided_slice %403 {offsets = [0, 0], sizes = [2, 128], strides = [1, 1]} : vector<2x384xbf16> to vector<2x128xbf16>
    %407 = vector.extract_strided_slice %405 {offsets = [0, 0], sizes = [2, 128], strides = [1, 1]} : vector<2x384xf32> to vector<2x128xf32>
    %408 = arith.extf %406 : vector<2x128xbf16> to vector<2x128xf32>
    %409 = arith.addf %408, %407 : vector<2x128xf32>
    %410 = arith.negf %409 : vector<2x128xf32>
    %411 = math.exp %410 : vector<2x128xf32>
    %cst_100 = arith.constant 1.000000e+00 : f32
    %412 = vector.broadcast %cst_100 : f32 to vector<2x128xf32>
    %413 = arith.addf %412, %411 : vector<2x128xf32>
    %414 = arith.divf %412, %413 : vector<2x128xf32>
    %415 = vector.extract_strided_slice %403 {offsets = [0, 128], sizes = [2, 128], strides = [1, 1]} : vector<2x384xbf16> to vector<2x128xbf16>
    %416 = vector.extract_strided_slice %405 {offsets = [0, 128], sizes = [2, 128], strides = [1, 1]} : vector<2x384xf32> to vector<2x128xf32>
    %417 = arith.extf %415 : vector<2x128xbf16> to vector<2x128xf32>
    %418 = arith.addf %417, %416 : vector<2x128xf32>
    %419 = arith.negf %418 : vector<2x128xf32>
    %420 = math.exp %419 : vector<2x128xf32>
    %cst_101 = arith.constant 1.000000e+00 : f32
    %421 = vector.broadcast %cst_101 : f32 to vector<2x128xf32>
    %422 = arith.addf %421, %420 : vector<2x128xf32>
    %423 = arith.divf %421, %422 : vector<2x128xf32>
    %424 = vector.extract_strided_slice %403 {offsets = [0, 256], sizes = [2, 128], strides = [1, 1]} : vector<2x384xbf16> to vector<2x128xbf16>
    %425 = vector.extract_strided_slice %405 {offsets = [0, 256], sizes = [2, 128], strides = [1, 1]} : vector<2x384xf32> to vector<2x128xf32>
    %426 = arith.addf %425, %292 : vector<2x128xf32>
    %427 = arith.mulf %414, %426 : vector<2x128xf32>
    %428 = arith.extf %424 : vector<2x128xbf16> to vector<2x128xf32>
    %429 = arith.addf %428, %427 : vector<2x128xf32>
    %430 = math.tanh %429 : vector<2x128xf32>
    %cst_102 = arith.constant 1.000000e+00 : f32
    %431 = vector.broadcast %cst_102 : f32 to vector<2x128xf32>
    %432 = arith.subf %431, %423 : vector<2x128xf32>
    %433 = arith.mulf %432, %430 : vector<2x128xf32>
    %434 = arith.mulf %423, %402 : vector<2x128xf32>
    %435 = arith.addf %433, %434 : vector<2x128xf32>
    %c8_103 = arith.constant 8 : index
    %c0_104 = arith.constant 0 : index
    %436 = vector.load %arg7[%c8_103, %c0_104] : memref<16x384xbf16, #tpu.memory_space<vmem>>, vector<2x384xbf16>
    %437 = arith.truncf %435 : vector<2x128xf32> to vector<2x128xbf16>
    %cst_105 = arith.constant dense<0.000000e+00> : vector<2x384xf32>
    %438 = tpu.matmul %437, %288, %cst_105 {dimension_numbers = #tpu.dot_dimension_numbers<[1], [0], [0], [1], [0, 0, 1, 1], [], []>} : vector<2x128xbf16>, vector<128x384xbf16>, vector<2x384xf32> -> vector<2x384xf32>
    %439 = vector.extract_strided_slice %436 {offsets = [0, 0], sizes = [2, 128], strides = [1, 1]} : vector<2x384xbf16> to vector<2x128xbf16>
    %440 = vector.extract_strided_slice %438 {offsets = [0, 0], sizes = [2, 128], strides = [1, 1]} : vector<2x384xf32> to vector<2x128xf32>
    %441 = arith.extf %439 : vector<2x128xbf16> to vector<2x128xf32>
    %442 = arith.addf %441, %440 : vector<2x128xf32>
    %443 = arith.negf %442 : vector<2x128xf32>
    %444 = math.exp %443 : vector<2x128xf32>
    %cst_106 = arith.constant 1.000000e+00 : f32
    %445 = vector.broadcast %cst_106 : f32 to vector<2x128xf32>
    %446 = arith.addf %445, %444 : vector<2x128xf32>
    %447 = arith.divf %445, %446 : vector<2x128xf32>
    %448 = vector.extract_strided_slice %436 {offsets = [0, 128], sizes = [2, 128], strides = [1, 1]} : vector<2x384xbf16> to vector<2x128xbf16>
    %449 = vector.extract_strided_slice %438 {offsets = [0, 128], sizes = [2, 128], strides = [1, 1]} : vector<2x384xf32> to vector<2x128xf32>
    %450 = arith.extf %448 : vector<2x128xbf16> to vector<2x128xf32>
    %451 = arith.addf %450, %449 : vector<2x128xf32>
    %452 = arith.negf %451 : vector<2x128xf32>
    %453 = math.exp %452 : vector<2x128xf32>
    %cst_107 = arith.constant 1.000000e+00 : f32
    %454 = vector.broadcast %cst_107 : f32 to vector<2x128xf32>
    %455 = arith.addf %454, %453 : vector<2x128xf32>
    %456 = arith.divf %454, %455 : vector<2x128xf32>
    %457 = vector.extract_strided_slice %436 {offsets = [0, 256], sizes = [2, 128], strides = [1, 1]} : vector<2x384xbf16> to vector<2x128xbf16>
    %458 = vector.extract_strided_slice %438 {offsets = [0, 256], sizes = [2, 128], strides = [1, 1]} : vector<2x384xf32> to vector<2x128xf32>
    %459 = arith.addf %458, %292 : vector<2x128xf32>
    %460 = arith.mulf %447, %459 : vector<2x128xf32>
    %461 = arith.extf %457 : vector<2x128xbf16> to vector<2x128xf32>
    %462 = arith.addf %461, %460 : vector<2x128xf32>
    %463 = math.tanh %462 : vector<2x128xf32>
    %cst_108 = arith.constant 1.000000e+00 : f32
    %464 = vector.broadcast %cst_108 : f32 to vector<2x128xf32>
    %465 = arith.subf %464, %456 : vector<2x128xf32>
    %466 = arith.mulf %465, %463 : vector<2x128xf32>
    %467 = arith.mulf %456, %435 : vector<2x128xf32>
    %468 = arith.addf %466, %467 : vector<2x128xf32>
    %c10_109 = arith.constant 10 : index
    %c0_110 = arith.constant 0 : index
    %469 = vector.load %arg7[%c10_109, %c0_110] : memref<16x384xbf16, #tpu.memory_space<vmem>>, vector<2x384xbf16>
    %470 = arith.truncf %468 : vector<2x128xf32> to vector<2x128xbf16>
    %cst_111 = arith.constant dense<0.000000e+00> : vector<2x384xf32>
    %471 = tpu.matmul %470, %288, %cst_111 {dimension_numbers = #tpu.dot_dimension_numbers<[1], [0], [0], [1], [0, 0, 1, 1], [], []>} : vector<2x128xbf16>, vector<128x384xbf16>, vector<2x384xf32> -> vector<2x384xf32>
    %472 = vector.extract_strided_slice %469 {offsets = [0, 0], sizes = [2, 128], strides = [1, 1]} : vector<2x384xbf16> to vector<2x128xbf16>
    %473 = vector.extract_strided_slice %471 {offsets = [0, 0], sizes = [2, 128], strides = [1, 1]} : vector<2x384xf32> to vector<2x128xf32>
    %474 = arith.extf %472 : vector<2x128xbf16> to vector<2x128xf32>
    %475 = arith.addf %474, %473 : vector<2x128xf32>
    %476 = arith.negf %475 : vector<2x128xf32>
    %477 = math.exp %476 : vector<2x128xf32>
    %cst_112 = arith.constant 1.000000e+00 : f32
    %478 = vector.broadcast %cst_112 : f32 to vector<2x128xf32>
    %479 = arith.addf %478, %477 : vector<2x128xf32>
    %480 = arith.divf %478, %479 : vector<2x128xf32>
    %481 = vector.extract_strided_slice %469 {offsets = [0, 128], sizes = [2, 128], strides = [1, 1]} : vector<2x384xbf16> to vector<2x128xbf16>
    %482 = vector.extract_strided_slice %471 {offsets = [0, 128], sizes = [2, 128], strides = [1, 1]} : vector<2x384xf32> to vector<2x128xf32>
    %483 = arith.extf %481 : vector<2x128xbf16> to vector<2x128xf32>
    %484 = arith.addf %483, %482 : vector<2x128xf32>
    %485 = arith.negf %484 : vector<2x128xf32>
    %486 = math.exp %485 : vector<2x128xf32>
    %cst_113 = arith.constant 1.000000e+00 : f32
    %487 = vector.broadcast %cst_113 : f32 to vector<2x128xf32>
    %488 = arith.addf %487, %486 : vector<2x128xf32>
    %489 = arith.divf %487, %488 : vector<2x128xf32>
    %490 = vector.extract_strided_slice %469 {offsets = [0, 256], sizes = [2, 128], strides = [1, 1]} : vector<2x384xbf16> to vector<2x128xbf16>
    %491 = vector.extract_strided_slice %471 {offsets = [0, 256], sizes = [2, 128], strides = [1, 1]} : vector<2x384xf32> to vector<2x128xf32>
    %492 = arith.addf %491, %292 : vector<2x128xf32>
    %493 = arith.mulf %480, %492 : vector<2x128xf32>
    %494 = arith.extf %490 : vector<2x128xbf16> to vector<2x128xf32>
    %495 = arith.addf %494, %493 : vector<2x128xf32>
    %496 = math.tanh %495 : vector<2x128xf32>
    %cst_114 = arith.constant 1.000000e+00 : f32
    %497 = vector.broadcast %cst_114 : f32 to vector<2x128xf32>
    %498 = arith.subf %497, %489 : vector<2x128xf32>
    %499 = arith.mulf %498, %496 : vector<2x128xf32>
    %500 = arith.mulf %489, %468 : vector<2x128xf32>
    %501 = arith.addf %499, %500 : vector<2x128xf32>
    %c12_115 = arith.constant 12 : index
    %c0_116 = arith.constant 0 : index
    %502 = vector.load %arg7[%c12_115, %c0_116] : memref<16x384xbf16, #tpu.memory_space<vmem>>, vector<2x384xbf16>
    %503 = arith.truncf %501 : vector<2x128xf32> to vector<2x128xbf16>
    %cst_117 = arith.constant dense<0.000000e+00> : vector<2x384xf32>
    %504 = tpu.matmul %503, %288, %cst_117 {dimension_numbers = #tpu.dot_dimension_numbers<[1], [0], [0], [1], [0, 0, 1, 1], [], []>} : vector<2x128xbf16>, vector<128x384xbf16>, vector<2x384xf32> -> vector<2x384xf32>
    %505 = vector.extract_strided_slice %502 {offsets = [0, 0], sizes = [2, 128], strides = [1, 1]} : vector<2x384xbf16> to vector<2x128xbf16>
    %506 = vector.extract_strided_slice %504 {offsets = [0, 0], sizes = [2, 128], strides = [1, 1]} : vector<2x384xf32> to vector<2x128xf32>
    %507 = arith.extf %505 : vector<2x128xbf16> to vector<2x128xf32>
    %508 = arith.addf %507, %506 : vector<2x128xf32>
    %509 = arith.negf %508 : vector<2x128xf32>
    %510 = math.exp %509 : vector<2x128xf32>
    %cst_118 = arith.constant 1.000000e+00 : f32
    %511 = vector.broadcast %cst_118 : f32 to vector<2x128xf32>
    %512 = arith.addf %511, %510 : vector<2x128xf32>
    %513 = arith.divf %511, %512 : vector<2x128xf32>
    %514 = vector.extract_strided_slice %502 {offsets = [0, 128], sizes = [2, 128], strides = [1, 1]} : vector<2x384xbf16> to vector<2x128xbf16>
    %515 = vector.extract_strided_slice %504 {offsets = [0, 128], sizes = [2, 128], strides = [1, 1]} : vector<2x384xf32> to vector<2x128xf32>
    %516 = arith.extf %514 : vector<2x128xbf16> to vector<2x128xf32>
    %517 = arith.addf %516, %515 : vector<2x128xf32>
    %518 = arith.negf %517 : vector<2x128xf32>
    %519 = math.exp %518 : vector<2x128xf32>
    %cst_119 = arith.constant 1.000000e+00 : f32
    %520 = vector.broadcast %cst_119 : f32 to vector<2x128xf32>
    %521 = arith.addf %520, %519 : vector<2x128xf32>
    %522 = arith.divf %520, %521 : vector<2x128xf32>
    %523 = vector.extract_strided_slice %502 {offsets = [0, 256], sizes = [2, 128], strides = [1, 1]} : vector<2x384xbf16> to vector<2x128xbf16>
    %524 = vector.extract_strided_slice %504 {offsets = [0, 256], sizes = [2, 128], strides = [1, 1]} : vector<2x384xf32> to vector<2x128xf32>
    %525 = arith.addf %524, %292 : vector<2x128xf32>
    %526 = arith.mulf %513, %525 : vector<2x128xf32>
    %527 = arith.extf %523 : vector<2x128xbf16> to vector<2x128xf32>
    %528 = arith.addf %527, %526 : vector<2x128xf32>
    %529 = math.tanh %528 : vector<2x128xf32>
    %cst_120 = arith.constant 1.000000e+00 : f32
    %530 = vector.broadcast %cst_120 : f32 to vector<2x128xf32>
    %531 = arith.subf %530, %522 : vector<2x128xf32>
    %532 = arith.mulf %531, %529 : vector<2x128xf32>
    %533 = arith.mulf %522, %501 : vector<2x128xf32>
    %534 = arith.addf %532, %533 : vector<2x128xf32>
    %c14_121 = arith.constant 14 : index
    %c0_122 = arith.constant 0 : index
    %535 = vector.load %arg7[%c14_121, %c0_122] : memref<16x384xbf16, #tpu.memory_space<vmem>>, vector<2x384xbf16>
    %536 = arith.truncf %534 : vector<2x128xf32> to vector<2x128xbf16>
    %cst_123 = arith.constant dense<0.000000e+00> : vector<2x384xf32>
    %537 = tpu.matmul %536, %288, %cst_123 {dimension_numbers = #tpu.dot_dimension_numbers<[1], [0], [0], [1], [0, 0, 1, 1], [], []>} : vector<2x128xbf16>, vector<128x384xbf16>, vector<2x384xf32> -> vector<2x384xf32>
    %538 = vector.extract_strided_slice %535 {offsets = [0, 0], sizes = [2, 128], strides = [1, 1]} : vector<2x384xbf16> to vector<2x128xbf16>
    %539 = vector.extract_strided_slice %537 {offsets = [0, 0], sizes = [2, 128], strides = [1, 1]} : vector<2x384xf32> to vector<2x128xf32>
    %540 = arith.extf %538 : vector<2x128xbf16> to vector<2x128xf32>
    %541 = arith.addf %540, %539 : vector<2x128xf32>
    %542 = arith.negf %541 : vector<2x128xf32>
    %543 = math.exp %542 : vector<2x128xf32>
    %cst_124 = arith.constant 1.000000e+00 : f32
    %544 = vector.broadcast %cst_124 : f32 to vector<2x128xf32>
    %545 = arith.addf %544, %543 : vector<2x128xf32>
    %546 = arith.divf %544, %545 : vector<2x128xf32>
    %547 = vector.extract_strided_slice %535 {offsets = [0, 128], sizes = [2, 128], strides = [1, 1]} : vector<2x384xbf16> to vector<2x128xbf16>
    %548 = vector.extract_strided_slice %537 {offsets = [0, 128], sizes = [2, 128], strides = [1, 1]} : vector<2x384xf32> to vector<2x128xf32>
    %549 = arith.extf %547 : vector<2x128xbf16> to vector<2x128xf32>
    %550 = arith.addf %549, %548 : vector<2x128xf32>
    %551 = arith.negf %550 : vector<2x128xf32>
    %552 = math.exp %551 : vector<2x128xf32>
    %cst_125 = arith.constant 1.000000e+00 : f32
    %553 = vector.broadcast %cst_125 : f32 to vector<2x128xf32>
    %554 = arith.addf %553, %552 : vector<2x128xf32>
    %555 = arith.divf %553, %554 : vector<2x128xf32>
    %556 = vector.extract_strided_slice %535 {offsets = [0, 256], sizes = [2, 128], strides = [1, 1]} : vector<2x384xbf16> to vector<2x128xbf16>
    %557 = vector.extract_strided_slice %537 {offsets = [0, 256], sizes = [2, 128], strides = [1, 1]} : vector<2x384xf32> to vector<2x128xf32>
    %558 = arith.addf %557, %292 : vector<2x128xf32>
    %559 = arith.mulf %546, %558 : vector<2x128xf32>
    %560 = arith.extf %556 : vector<2x128xbf16> to vector<2x128xf32>
    %561 = arith.addf %560, %559 : vector<2x128xf32>
    %562 = math.tanh %561 : vector<2x128xf32>
    %cst_126 = arith.constant 1.000000e+00 : f32
    %563 = vector.broadcast %cst_126 : f32 to vector<2x128xf32>
    %564 = arith.subf %563, %555 : vector<2x128xf32>
    %565 = arith.mulf %564, %562 : vector<2x128xf32>
    %566 = arith.mulf %555, %534 : vector<2x128xf32>
    %567 = arith.addf %565, %566 : vector<2x128xf32>
    %c0_127 = arith.constant 0 : index
    %c0_128 = arith.constant 0 : index
    %568 = vector.load %arg5[%c0_127, %c0_128] : memref<2x128xf32, #tpu.memory_space<vmem>>, vector<2x128xf32>
    tpu.vector_store %arg5[%c0_127, %c0_128], %567 {strides = array<i32>} : memref<2x128xf32, #tpu.memory_space<vmem>>, vector<2x128xf32>,
    return
  }
}

</mosaic_0001>

<bundles_post_ra>
// kernel: tpu_custom_call.1
= control target key start
LH: loop header
LB: loop body
LE: loop exit
PB: predicated region body
PF: predicated region fallthrough
CT: control target
= control target key end

     0   :  { %10 = vsyncpa [#allocation5], 0  ;;  %s4568_s0 = inlined_call_operand.hbm [shape: bf16[16,384], index: 0, kind: input, shape index: {}]   ;;  %s4569_s1 = inlined_call_operand.hbm [shape: bf16[2,128,384], index: 1, kind: input, shape index: {}]   ;;  %s4570_s2 = inlined_call_operand.vmem [shape: f32[2,1,128], index: 2, kind: input, shape index: {}]   ;;  %s4571_s3 = inlined_call_operand.hbm [shape: bf16[1,128,384], index: 3, kind: input, shape index: {}]   ;;  %s4572_s4 = inlined_call_operand.vmem [shape: f32[1,1,384], index: 4, kind: input, shape index: {}]   ;;  %s4573_s5 = inlined_call_operand.hbm [shape: f32[2,128], index: 5, kind: output, shape index: {}]  }
   0x1   :  { %11 = vsyncpa [#allocation8], 0 }
   0x2   :  { %12 = vsyncpa [#allocation6], 0  ;;  %s3702_s18 = smov [#allocation7]   ;;  %s3703_s20 = smov [#allocation4]  }
   0x3   :  { %s30_s19 = sshll.u32 %s3702_s18, 4  ;;  %s18_s21 = sshll.u32 %s3703_s20, 4  ;;  %s31_s19 = int_to_ptr.vmem [resolvable:$true] %s30_s19  ;;  %s3741_s21 = int_to_ptr.vmem [resolvable:$true] %s18_s21 }
   0x4   :  { %s3608_s24 = scalar_lea.hbm %s4569_s1, 6144 }
   0x5   :  { %p3609_p0 = scmp.ne.s32.totalorder %s4569_s1, %s3608_s24  ;;  %p3612_p1 = scmp.lt.u32.totalorder %s3608_s24, %s4569_s1 }
   0x7   :  { %p3614_p2 = pnand %p3612_p1, %p3609_p0 }
   0x9   :  { %3617 = shalt.err (!%p3614_p2)
}
   0xa   :  { %s3618_s29 = scalar_lea.vmem %s31_s19, 6144  ;;  %p3623_p4 = scmp.lt.s32.totalorder %s31_s19, %s31_s19 }
   0xb   :  { %p3619_p3 = scmp.ne.s32.totalorder %s31_s19, %s3618_s29  ;;  %p3624_p5 = scmp.lt.s32.totalorder %s3618_s29, %s3618_s29 }
   0xd   :  { %p3625_p6 = por %p3624_p5, %p3623_p4 }
   0xf   :  { %p3626_p7 = pnand %p3625_p6, %p3619_p3 }
  0x11   :  { %3629 = shalt.err (!%p3626_p7)
}
  0x12   :  { %s3704_s30 = smov 192   ;;  %s3705_s6 = smov 12  }
  0x13   :  { %36 = dma.hbm_to_vmem [thread:$0]  %s4569_s1, 6144, %s31_s19, [#allocation8], %s3704_s30, %s3704_s30, %s3705_s6  }
  0x14   :  { %s3630_s11 = scalar_lea.hbm %s4568_s0, 384 }
  0x15   :  { %p3631_p8 = scmp.ne.s32.totalorder %s4568_s0, %s3630_s11  ;;  %p3634_p9 = scmp.lt.u32.totalorder %s3630_s11, %s4568_s0 }
  0x17   :  { %p3636_p10 = pnand %p3634_p9, %p3631_p8 }
  0x19   :  { %3639 = shalt.err (!%p3636_p10)
}
  0x1a   :  { %s3640_s16 = scalar_lea.vmem %s3741_s21, 384  ;;  %p3645_p12 = scmp.lt.s32.totalorder %s3741_s21, %s3741_s21 }
  0x1b   :  { %p3641_p11 = scmp.ne.s32.totalorder %s3741_s21, %s3640_s16  ;;  %p3646_p13 = scmp.lt.s32.totalorder %s3640_s16, %s3640_s16 }
  0x1d   :  { %p3647_p0 = por %p3646_p13, %p3645_p12 }
  0x1f   :  { %p3648_p1 = pnand %p3647_p0, %p3641_p11 }
  0x21   :  { %3651 = shalt.err (!%p3648_p1)
}
  0x22   :  { %24 = dma.hbm_to_vmem [thread:$0]  %s4568_s0, 384, %s3741_s21, [#allocation5], %s3704_s30, %s3704_s30, %s3705_s6  }
  0x23   :  { %s3706_s18 = smov [#allocation9]   ;;  %s3652_s23 = scalar_lea.hbm %s4571_s3, 3072 }
  0x24   :  { %s44_s19 = sshll.u32 %s3706_s18, 4  ;;  %p3653_p2 = scmp.ne.s32.totalorder %s4571_s3, %s3652_s23  ;;  %s45_s19 = int_to_ptr.vmem [resolvable:$true] %s44_s19 }
  0x25   :  { %p3656_p3 = scmp.lt.u32.totalorder %s3652_s23, %s4571_s3 }
  0x27   :  { %p3658_p4 = pnand %p3656_p3, %p3653_p2 }
  0x29   :  { %3661 = shalt.err (!%p3658_p4)
}
  0x2a   :  { %s3662_s28 = scalar_lea.vmem %s45_s19, 3072  ;;  %p3667_p6 = scmp.lt.s32.totalorder %s45_s19, %s45_s19 }
  0x2b   :  { %p3663_p5 = scmp.ne.s32.totalorder %s45_s19, %s3662_s28  ;;  %p3668_p7 = scmp.lt.s32.totalorder %s3662_s28, %s3662_s28 }
  0x2d   :  { %p3669_p8 = por %p3668_p7, %p3667_p6 }
  0x2f   :  { %p3670_p9 = pnand %p3669_p8, %p3663_p5 }
  0x31   :  { %3673 = shalt.err (!%p3670_p9)
}
  0x32   :  { %50 = dma.hbm_to_vmem [thread:$0]  %s4571_s3, 3072, %s45_s19, [#allocation8], %s3704_s30, %s3704_s30, %s3705_s6  }
  0x33   :  { %3696 = dma.done.wait [#allocation5], 384  }
  0x34   :  { %3697 = vsyncadd [#allocation5], 4294966912 }
  0x35   :  { %3698 = dma.done.wait [#allocation8], 9216  }
  0x36   :  { %3699 = vsyncadd [#allocation8], 4294958080  ;;  %v3707_v0 = vmov 0.0   ;;  %v3708_v1 = vmov 0   ;;  %vm3709_vm0 = vmmov 0   ;;  %s3710_s12 = smov [#allocation10]  }
  0x37   :  { %2953 = vmatprep.subr.bf16.mxu1 %v3707_v0  ;;  %264 = vmatprep.mubr.bf16.mxu0 %v3708_v1  ;;  %v3797_v2 = vld [vmem:[#allocation7 + $0x4] ss:$12 sps:$4 sm:$0xff]   ;;  %v3799_v3 = vld [vmem:[#allocation7] ss:$12 sps:$4 sm:$0xff]   ;;  %v3802_v4 = vld [vmem:[#allocation7 + $0x1c] ss:$12 sps:$4 sm:$0xff]  }
  0x38   :  { %2969 = vmatprep.mubr.msk.bf16.mxu1 %vm3709_vm0, %v3707_v0  ;;  %232 = vmatprep.subr.bf16.mxu0 %v3797_v2  ;;  %v3805_v5 = vld [vmem:[#allocation7 + $0x18] ss:$12 sps:$4 sm:$0xff]   ;;  %v3808_v6 = vld [vmem:[#allocation7 + $0x34] ss:$12 sps:$4 sm:$0xff]   ;;  %v3811_v7 = vld [vmem:[#allocation7 + $0x30] ss:$12 sps:$4 sm:$0xff]  }
  0x39   :  { %233 = vmatpush1.bf16.msra.mxu0 %v3799_v3  ;;  %v3814_v8 = vld [vmem:[#allocation7 + $0x4c] ss:$12 sps:$4 sm:$0xff]   ;;  %v3816_v9 = vld [vmem:[#allocation7 + $0x8] ss:$12 sps:$4 sm:$0xff]   ;;  %v3823_v11 = vld [vmem:[#allocation7 + $0x64] ss:$12 sps:$4 sm:$0xff]  }
  0x3a   :  { %234 = vmatprep.subr.bf16.mxu0 %v3802_v4  ;;  %v3819_v10 = vld [vmem:[#allocation7 + $0x48] ss:$12 sps:$4 sm:$0xff]   ;;  %2954 = vmatpush3.bf16.msra.mxu1 %v3816_v9  ;;  %v3826_v12 = vld [vmem:[#allocation7 + $0x20] ss:$12 sps:$4 sm:$0xff]   ;;  %v3832_v14 = vld [vmem:[#allocation7 + $0x38] ss:$12 sps:$4 sm:$0xff]  }
  0x3b   :  { %2955 = vmatprep.subr.bf16.mxu1 %v3707_v0  ;;  %v3828_v13 = vld [vmem:[#allocation7 + $0x60] ss:$12 sps:$4 sm:$0xff]   ;;  %v3835_v15 = vld [vmem:[#allocation7 + $0x7c] ss:$12 sps:$4 sm:$0xff]   ;;  %v3838_v16 = vld [vmem:[#allocation7 + $0x78] ss:$12 sps:$4 sm:$0xff]  }
  0x3c   :  { %v3840_v17 = vld [vmem:[#allocation7 + $0x94] ss:$12 sps:$4 sm:$0xff]   ;;  %v3842_v18 = vld [vmem:[#allocation7 + $0x50] ss:$12 sps:$4 sm:$0xff]   ;;  %v3852_v21 = vld [vmem:[#allocation7 + $0xac] ss:$12 sps:$4 sm:$0xff]  }
  0x3d   :  { %235 = vmatpush1.bf16.msra.mxu0 %v3805_v5  ;;  %v3848_v19 = vld [vmem:[#allocation7 + $0x90] ss:$12 sps:$4 sm:$0xff]   ;;  %v3850_v20 = vld [vmem:[#allocation7 + $0x68] ss:$12 sps:$4 sm:$0xff]   ;;  %v3860_v23 = vld [vmem:[#allocation7 + $0x80] ss:$12 sps:$4 sm:$0xff]  }
  0x3e   :  { %236 = vmatprep.subr.bf16.mxu0 %v3808_v6  ;;  %2956 = vmatpush3.bf16.msra.mxu1 %v3826_v12  ;;  %v3858_v22 = vld [vmem:[#allocation7 + $0xa8] ss:$12 sps:$4 sm:$0xff]   ;;  %v3866_v24 = vld [vmem:[#allocation7 + $0x98] ss:$12 sps:$4 sm:$0xff]   ;;  %v3872_v25 = vld [vmem:[#allocation7 + $0xb0] ss:$12 sps:$4 sm:$0xff]  }
  0x3f   :  { %2957 = vmatprep.subr.bf16.mxu1 %v3707_v0  ;;  %v102_v26 = vld [vmem:[#allocation4] sm:$0x11]  ;;  %v103_v46 = vld [vmem:[#allocation4 + $0x8] sm:$0x1]  ;;  %v343_v60 = vld [vmem:[#allocation4] sm:$0x22] }
  0x40   :  { %v322_v27 = vrot.slane %v102_v26, 4  ;;  %v313_v28 = vunpack.c.l.bf16 %v102_v26  ;;  %v3918_v45 = vld [vmem:[%s4570_s2] ss:$0 sm:$0xff]  ;;  %v334_v49 = vunpack.c.l.bf16 %v103_v46  ;;  %v438_v61 = vrot.slane %v343_v60, 4  ;;  %v344_v46 = vld [vmem:[#allocation4 + $0x8] sm:$0x2] }
  0x41   :  { %237 = vmatpush1.bf16.msra.mxu0 %v3811_v7  ;;  %v426_v62 = vunpack.c.l.bf16 %v343_v60  ;;  %s2683_s13 = sshll.u32 %s3710_s12, 4  ;;  %s2684_s13 = int_to_ptr.vmem [resolvable:$true] %s2683_s13 }
  0x42   :  { %238 = vmatprep.subr.bf16.mxu0 %v3814_v8  ;;  %2958 = vmatpush3.bf16.msra.mxu1 %v3832_v14  ;;  %v324_v30 = vunpack.c.l.bf16 %v322_v27  ;;  %v440_v27 = vunpack.c.l.bf16 %v438_v61  ;;  %p3679_p11 = scmp.lt.s32.totalorder %s2684_s13, %s2684_s13 }
  0x43   :  { %2959 = vmatprep.subr.bf16.mxu1 %v3707_v0 }
  0x45   :  { %239 = vmatpush1.bf16.msra.mxu0 %v3819_v10 }
  0x46   :  { %240 = vmatprep.subr.bf16.mxu0 %v3823_v11  ;;  %2960 = vmatpush3.bf16.msra.mxu1 %v3842_v18 }
  0x47   :  { %2961 = vmatprep.subr.bf16.mxu1 %v3707_v0 }
  0x49   :  { %241 = vmatpush1.bf16.msra.mxu0 %v3828_v13 }
  0x4a   :  { %242 = vmatprep.subr.bf16.mxu0 %v3835_v15  ;;  %2962 = vmatpush3.bf16.msra.mxu1 %v3850_v20 }
  0x4b   :  { %2963 = vmatprep.subr.bf16.mxu1 %v3707_v0 }
  0x4d   :  { %243 = vmatpush1.bf16.msra.mxu0 %v3838_v16 }
  0x4e   :  { %244 = vmatprep.subr.bf16.mxu0 %v3840_v17  ;;  %2964 = vmatpush3.bf16.msra.mxu1 %v3860_v23 }
  0x4f   :  { %2965 = vmatprep.subr.bf16.mxu1 %v3707_v0 }
  0x51   :  { %245 = vmatpush1.bf16.msra.mxu0 %v3848_v19 }
  0x52   :  { %246 = vmatprep.subr.bf16.mxu0 %v3852_v21  ;;  %2966 = vmatpush3.bf16.msra.mxu1 %v3866_v24 }
  0x53   :  { %2967 = vmatprep.subr.bf16.mxu1 %v3707_v0 }
  0x55   :  { %247 = vmatpush1.bf16.msra.mxu0 %v3858_v22 }
  0x56   :  { %345 = vmatprep.subr.bf16.mxu0 %v3797_v2  ;;  %2968 = vmatpush3.bf16.msra.mxu1 %v3872_v25 }
  0x57   :  { %2973 = vmatprep.subr.bf16.mxu1 %v3707_v0 }
  0x58   :  { %265 = vmatmul.mubr.bf16.vlgmr.msra.gmra.mrb[0].mxu0 %v3708_v1 }
  0x59   :  { %346 = vmatpush1.bf16.msra.mxu0 %v3799_v3  ;;  %377 = vmatprep.mubr.bf16.mxu0 %v3708_v1 }
  0x5a   :  { %347 = vmatprep.subr.bf16.mxu0 %v3802_v4  ;;  %2970 = vmatmul.mubr.bf16.vlgmr.msra.gmra.mrb[0].mxu1 %v3708_v1 }
  0x5b   :  { %2974 = vmatpush3.bf16.msra.mxu1 %v3816_v9  ;;  %2989 = vmatprep.mubr.msk.bf16.mxu1 %vm3709_vm0, %v3707_v0 }
  0x5c   :  { %2975 = vmatprep.subr.bf16.mxu1 %v3707_v0 }
  0x5d   :  { %348 = vmatpush1.bf16.msra.mxu0 %v3805_v5 }
  0x5e   :  { %349 = vmatprep.subr.bf16.mxu0 %v3808_v6 }
  0x5f   :  { %2976 = vmatpush3.bf16.msra.mxu1 %v3826_v12 }
  0x60   :  { %2977 = vmatprep.subr.bf16.mxu1 %v3707_v0 }
  0x61   :  { %350 = vmatpush1.bf16.msra.mxu0 %v3811_v7 }
  0x62   :  { %351 = vmatprep.subr.bf16.mxu0 %v3814_v8 }
  0x63   :  { %2978 = vmatpush3.bf16.msra.mxu1 %v3832_v14 }
  0x64   :  { %2979 = vmatprep.subr.bf16.mxu1 %v3707_v0 }
  0x65   :  { %352 = vmatpush1.bf16.msra.mxu0 %v3819_v10 }
  0x66   :  { %353 = vmatprep.subr.bf16.mxu0 %v3823_v11 }
  0x67   :  { %2980 = vmatpush3.bf16.msra.mxu1 %v3842_v18 }
  0x68   :  { %2981 = vmatprep.subr.bf16.mxu1 %v3707_v0 }
  0x69   :  { %354 = vmatpush1.bf16.msra.mxu0 %v3828_v13 }
  0x6a   :  { %355 = vmatprep.subr.bf16.mxu0 %v3835_v15 }
  0x6b   :  { %2982 = vmatpush3.bf16.msra.mxu1 %v3850_v20 }
  0x6c   :  { %2983 = vmatprep.subr.bf16.mxu1 %v3707_v0 }
  0x6d   :  { %356 = vmatpush1.bf16.msra.mxu0 %v3838_v16 }
  0x6e   :  { %357 = vmatprep.subr.bf16.mxu0 %v3840_v17 }
  0x6f   :  { %2984 = vmatpush3.bf16.msra.mxu1 %v3860_v23 }
  0x70   :  { %2985 = vmatprep.subr.bf16.mxu1 %v3707_v0 }
  0x71   :  { %358 = vmatpush1.bf16.msra.mxu0 %v3848_v19 }
  0x72   :  { %359 = vmatprep.subr.bf16.mxu0 %v3852_v21 }
  0x73   :  { %2986 = vmatpush3.bf16.msra.mxu1 %v3866_v24 }
  0x74   :  { %2987 = vmatprep.subr.bf16.mxu1 %v3707_v0 }
  0x75   :  { %360 = vmatpush1.bf16.msra.mxu0 %v3858_v22 }
  0x76   :  { %473 = vmatprep.subr.bf16.mxu0 %v3797_v2 }
  0x77   :  { %2988 = vmatpush3.bf16.msra.mxu1 %v3872_v25 }
  0x78   :  { %2993 = vmatprep.subr.bf16.mxu1 %v3707_v0 }
 0x12b   :  { %v266_v29 = vpop.f32.mrb[0].mxu0 }
 0x12c   :  { %v314_v31 = vadd.f32 %v313_v28, %v266_v29  ;;  %v268_v32 = vpop.f32.mrb[1].mxu0 }
 0x12d   :  { %v270_v33 = vpop.f32.mrb[2].mxu0  ;;  %v325_v36 = vadd.f32 %v324_v30, %v268_v32  ;;  %v307_v38 = vpop.f32.mrb[0].mxu1 }
 0x12e   :  { %v2718_v34 = vmul.f32 -1.442695, %v314_v31  ;;  %v271_v35 = vpop.f32.mrb[3].mxu0  ;;  %v2971_v39 = vpop.f32.mrb[1].mxu1  ;;  %v332_v48 = vadd.f32 %v3918_v45, %v307_v38 }
 0x12f   :  { %v2719_v37 = vmul.f32 -1.442695, %v325_v36  ;;  %v310_v40 = vpop.f32.mrb[2].mxu1 }
 0x130   :  { %3398 = vpow2.f32 %v2718_v34  ;;  %v2972_v41 = vpop.f32.mrb[3].mxu1 }
 0x131   :  { %3400 = vpow2.f32 %v2719_v37 }
 0x13a   :  { %v3399_v42 = vpop.eup %3398 }
 0x13b   :  { %v318_v43 = vadd.f32 1.0, %v3399_v42  ;;  %v3401_v44 = vpop.eup %3400 }
 0x13c   :  { %v329_v47 = vadd.f32 1.0, %v3401_v44 }
 0x13d   :  { %3402 = vrcp.f32 %v318_v43 }
 0x13e   :  { %3404 = vrcp.f32 %v329_v47 }
 0x147   :  { %v3403_v50 = vpop.eup %3402 }
 0x148   :  { %v333_v51 = vmul.f32 %v3403_v50, %v332_v48  ;;  %v3405_v53 = vpop.eup %3404  ;;  %v456_v48 = vunpack.c.l.bf16 %v344_v46 }
 0x149   :  { %v337_v54 = vsub.f32 1.0, %v3405_v53  ;;  %v339_v57 = vmul.f32 0.0, %v3405_v53 }
 0x14a   :  { %v335_v52 = vadd.f32 %v334_v49, %v333_v51 }
 0x14c   :  { %3406 = vtanh.f32 %v335_v52 }
 0x156   :  { %v3407_v55 = vpop.eup %3406 }
 0x157   :  { %v338_v56 = vmul.f32 %v3407_v55, %v337_v54 }
 0x159   :  { %v3921_v58 = vadd.f32 %v339_v57, %v338_v56 }
 0x15b   :  { %v341_v59 = vpack.c.bf16 %v3921_v58, %v3921_v58  ;;  %v462_v50 = vrot.slane %v3921_v58, 6  ;;  %v468_v58 = vld [vmem:[#allocation4] sm:$0x44] }
 0x15d   :  { %342 = vst [vmem:[#allocation2] sm:$0x1] %v341_v59  ;;  %378 = vmatmul.mubr.bf16.vlgmr.msra.gmra.mrb[4].mxu0 %v341_v59  ;;  %2990 = vmatmul.mubr.bf16.vlgmr.msra.gmra.mrb[4].mxu1 %v341_v59 }
 0x15e   :  { %474 = vmatpush1.bf16.msra.mxu0 %v3799_v3  ;;  %2994 = vmatpush3.bf16.msra.mxu1 %v3816_v9 }
 0x15f   :  { %475 = vmatprep.subr.bf16.mxu0 %v3802_v4  ;;  %2995 = vmatprep.subr.bf16.mxu1 %v3707_v0 }
 0x160   :  { %505 = vmatprep.mubr.bf16.mxu0 %v3708_v1  ;;  %3009 = vmatprep.mubr.msk.bf16.mxu1 %vm3709_vm0, %v3707_v0 }
 0x162   :  { %476 = vmatpush1.bf16.msra.mxu0 %v3805_v5  ;;  %2996 = vmatpush3.bf16.msra.mxu1 %v3826_v12 }
 0x163   :  { %477 = vmatprep.subr.bf16.mxu0 %v3808_v6  ;;  %2997 = vmatprep.subr.bf16.mxu1 %v3707_v0 }
 0x166   :  { %478 = vmatpush1.bf16.msra.mxu0 %v3811_v7  ;;  %2998 = vmatpush3.bf16.msra.mxu1 %v3832_v14 }
 0x167   :  { %479 = vmatprep.subr.bf16.mxu0 %v3814_v8  ;;  %2999 = vmatprep.subr.bf16.mxu1 %v3707_v0 }
 0x16a   :  { %480 = vmatpush1.bf16.msra.mxu0 %v3819_v10  ;;  %3000 = vmatpush3.bf16.msra.mxu1 %v3842_v18 }
 0x16b   :  { %481 = vmatprep.subr.bf16.mxu0 %v3823_v11  ;;  %3001 = vmatprep.subr.bf16.mxu1 %v3707_v0 }
 0x16e   :  { %482 = vmatpush1.bf16.msra.mxu0 %v3828_v13  ;;  %3002 = vmatpush3.bf16.msra.mxu1 %v3850_v20 }
 0x16f   :  { %483 = vmatprep.subr.bf16.mxu0 %v3835_v15  ;;  %3003 = vmatprep.subr.bf16.mxu1 %v3707_v0 }
 0x172   :  { %484 = vmatpush1.bf16.msra.mxu0 %v3838_v16  ;;  %3004 = vmatpush3.bf16.msra.mxu1 %v3860_v23 }
 0x173   :  { %485 = vmatprep.subr.bf16.mxu0 %v3840_v17  ;;  %3005 = vmatprep.subr.bf16.mxu1 %v3707_v0 }
 0x176   :  { %486 = vmatpush1.bf16.msra.mxu0 %v3848_v19  ;;  %3006 = vmatpush3.bf16.msra.mxu1 %v3866_v24 }
 0x177   :  { %487 = vmatprep.subr.bf16.mxu0 %v3852_v21  ;;  %3007 = vmatprep.subr.bf16.mxu1 %v3707_v0 }
 0x17a   :  { %488 = vmatpush1.bf16.msra.mxu0 %v3858_v22  ;;  %3008 = vmatpush3.bf16.msra.mxu1 %v3872_v25 }
 0x17b   :  { %601 = vmatprep.subr.bf16.mxu0 %v3797_v2  ;;  %3013 = vmatprep.subr.bf16.mxu1 %v3707_v0 }
 0x230   :  { %v379_v63 = vpop.f32.mrb[4].mxu0  ;;  %v420_v26 = vpop.f32.mrb[4].mxu1 }
 0x231   :  { %v428_v28 = vrot.slane %v379_v63, 6  ;;  %v381_v29 = vpop.f32.mrb[5].mxu0  ;;  %v2991_v30 = vpop.f32.mrb[5].mxu1  ;;  %v451_v44 = vadd.f32 %v3918_v45, %v420_v26  ;;  %v554_v63 = vunpack.c.l.bf16 %v468_v58 }
 0x232   :  { %v442_v31 = vrot.slane %v381_v29, 6  ;;  %v383_v32 = vpop.f32.mrb[6].mxu0  ;;  %v423_v33 = vpop.f32.mrb[6].mxu1 }
 0x233   :  { %v430_v34 = vadd.f32 %v428_v28, %v426_v62  ;;  %v384_v35 = vpop.f32.mrb[7].mxu0  ;;  %v2992_v36 = vpop.f32.mrb[7].mxu1  ;;  %v453_v47 = vrot.slane %v451_v44, 6  ;;  %v566_v62 = vrot.slane %v468_v58, 4 }
 0x234   :  { %v444_v37 = vadd.f32 %v442_v31, %v440_v27 }
 0x235   :  { %v2720_v38 = vmul.f32 -1.442695, %v430_v34  ;;  %v568_v28 = vunpack.c.l.bf16 %v566_v62 }
 0x236   :  { %v2721_v39 = vmul.f32 -1.442695, %v444_v37 }
 0x237   :  { %3408 = vpow2.f32 %v2720_v38 }
 0x238   :  { %3410 = vpow2.f32 %v2721_v39 }
 0x241   :  { %v3409_v40 = vpop.eup %3408 }
 0x242   :  { %v3411_v41 = vpop.eup %3410  ;;  %v434_v42 = vadd.f32 1.0, %v3409_v40 }
 0x243   :  { %v448_v43 = vadd.f32 1.0, %v3411_v41 }
 0x244   :  { %3412 = vrcp.f32 %v434_v42 }
 0x245   :  { %3414 = vrcp.f32 %v448_v43 }
 0x24e   :  { %v3413_v49 = vpop.eup %3412 }
 0x24f   :  { %v3415_v51 = vpop.eup %3414  ;;  %v455_v52 = vmul.f32 %v3413_v49, %v453_v47  ;;  %v469_v47 = vld [vmem:[#allocation4 + $0x8] sm:$0x4] }
 0x250   :  { %v464_v53 = vmul.f32 %v3415_v51, %v462_v50  ;;  %v459_v55 = vsub.f32 1.0, %v3415_v51  ;;  %v584_v49 = vunpack.c.l.bf16 %v469_v47 }
 0x251   :  { %v457_v54 = vadd.f32 %v456_v48, %v455_v52 }
 0x253   :  { %3416 = vtanh.f32 %v457_v54 }
 0x25d   :  { %v3417_v56 = vpop.eup %3416 }
 0x25e   :  { %v460_v57 = vmul.f32 %v3417_v56, %v459_v55 }
 0x260   :  { %v3962_v59 = vadd.f32 %v464_v53, %v460_v57 }
 0x262   :  { %v466_v60 = vpack.c.bf16 %v3962_v59, %v3962_v59  ;;  %v590_v51 = vrot.slane %v3962_v59, 6  ;;  %v596_v59 = vld [vmem:[#allocation4] sm:$0x88] }
 0x264   :  { %467 = vst [vmem:[#allocation2] sm:$0x2] %v466_v60  ;;  %v471_v61 = vrot.slane %v466_v60, 1 }
 0x266   :  { %506 = vmatmul.mubr.bf16.vlgmr.msra.gmra.mrb[8].mxu0 %v471_v61  ;;  %3010 = vmatmul.mubr.bf16.vlgmr.msra.gmra.mrb[8].mxu1 %v471_v61 }
 0x267   :  { %602 = vmatpush1.bf16.msra.mxu0 %v3799_v3  ;;  %3014 = vmatpush3.bf16.msra.mxu1 %v3816_v9 }
 0x268   :  { %603 = vmatprep.subr.bf16.mxu0 %v3802_v4  ;;  %3015 = vmatprep.subr.bf16.mxu1 %v3707_v0 }
 0x269   :  { %633 = vmatprep.mubr.bf16.mxu0 %v3708_v1  ;;  %3029 = vmatprep.mubr.msk.bf16.mxu1 %vm3709_vm0, %v3707_v0 }
 0x26b   :  { %604 = vmatpush1.bf16.msra.mxu0 %v3805_v5  ;;  %3016 = vmatpush3.bf16.msra.mxu1 %v3826_v12 }
 0x26c   :  { %605 = vmatprep.subr.bf16.mxu0 %v3808_v6  ;;  %3017 = vmatprep.subr.bf16.mxu1 %v3707_v0 }
 0x26f   :  { %606 = vmatpush1.bf16.msra.mxu0 %v3811_v7  ;;  %3018 = vmatpush3.bf16.msra.mxu1 %v3832_v14 }
 0x270   :  { %607 = vmatprep.subr.bf16.mxu0 %v3814_v8  ;;  %3019 = vmatprep.subr.bf16.mxu1 %v3707_v0 }
 0x273   :  { %608 = vmatpush1.bf16.msra.mxu0 %v3819_v10  ;;  %3020 = vmatpush3.bf16.msra.mxu1 %v3842_v18 }
 0x274   :  { %609 = vmatprep.subr.bf16.mxu0 %v3823_v11  ;;  %3021 = vmatprep.subr.bf16.mxu1 %v3707_v0 }
 0x277   :  { %610 = vmatpush1.bf16.msra.mxu0 %v3828_v13  ;;  %3022 = vmatpush3.bf16.msra.mxu1 %v3850_v20 }
 0x278   :  { %611 = vmatprep.subr.bf16.mxu0 %v3835_v15  ;;  %3023 = vmatprep.subr.bf16.mxu1 %v3707_v0 }
 0x27b   :  { %612 = vmatpush1.bf16.msra.mxu0 %v3838_v16  ;;  %3024 = vmatpush3.bf16.msra.mxu1 %v3860_v23 }
 0x27c   :  { %613 = vmatprep.subr.bf16.mxu0 %v3840_v17  ;;  %3025 = vmatprep.subr.bf16.mxu1 %v3707_v0 }
 0x27f   :  { %614 = vmatpush1.bf16.msra.mxu0 %v3848_v19  ;;  %3026 = vmatpush3.bf16.msra.mxu1 %v3866_v24 }
 0x280   :  { %615 = vmatprep.subr.bf16.mxu0 %v3852_v21  ;;  %3027 = vmatprep.subr.bf16.mxu1 %v3707_v0 }
 0x283   :  { %616 = vmatpush1.bf16.msra.mxu0 %v3858_v22  ;;  %3028 = vmatpush3.bf16.msra.mxu1 %v3872_v25 }
 0x284   :  { %729 = vmatprep.subr.bf16.mxu0 %v3797_v2  ;;  %3033 = vmatprep.subr.bf16.mxu1 %v3707_v0 }
 0x339   :  { %v507_v26 = vpop.f32.mrb[8].mxu0  ;;  %v548_v27 = vpop.f32.mrb[8].mxu1 }
 0x33a   :  { %v556_v29 = vrot.slane %v507_v26, 4  ;;  %v509_v30 = vpop.f32.mrb[9].mxu0  ;;  %v3011_v31 = vpop.f32.mrb[9].mxu1  ;;  %v579_v46 = vadd.f32 %v3918_v45, %v548_v27  ;;  %v682_v26 = vunpack.c.l.bf16 %v596_v59 }
 0x33b   :  { %v570_v32 = vrot.slane %v509_v30, 4  ;;  %v511_v33 = vpop.f32.mrb[10].mxu0  ;;  %v551_v34 = vpop.f32.mrb[10].mxu1 }
 0x33c   :  { %v558_v35 = vadd.f32 %v556_v29, %v554_v63  ;;  %v512_v36 = vpop.f32.mrb[11].mxu0  ;;  %v3012_v37 = vpop.f32.mrb[11].mxu1  ;;  %v581_v48 = vrot.slane %v579_v46, 4  ;;  %v694_v63 = vrot.slane %v596_v59, 4 }
 0x33d   :  { %v572_v38 = vadd.f32 %v570_v32, %v568_v28 }
 0x33e   :  { %v2722_v39 = vmul.f32 -1.442695, %v558_v35  ;;  %v696_v29 = vunpack.c.l.bf16 %v694_v63 }
 0x33f   :  { %v2723_v40 = vmul.f32 -1.442695, %v572_v38 }
 0x340   :  { %3418 = vpow2.f32 %v2722_v39 }
 0x341   :  { %3420 = vpow2.f32 %v2723_v40 }
 0x34a   :  { %v3419_v41 = vpop.eup %3418 }
 0x34b   :  { %v3421_v42 = vpop.eup %3420  ;;  %v562_v43 = vadd.f32 1.0, %v3419_v41 }
 0x34c   :  { %v576_v44 = vadd.f32 1.0, %v3421_v42 }
 0x34d   :  { %3422 = vrcp.f32 %v562_v43 }
 0x34e   :  { %3424 = vrcp.f32 %v576_v44 }
 0x357   :  { %v3423_v50 = vpop.eup %3422 }
 0x358   :  { %v3425_v52 = vpop.eup %3424  ;;  %v583_v53 = vmul.f32 %v3423_v50, %v581_v48  ;;  %v597_v48 = vld [vmem:[#allocation4 + $0x8] sm:$0x8] }
 0x359   :  { %v592_v54 = vmul.f32 %v3425_v52, %v590_v51  ;;  %v587_v56 = vsub.f32 1.0, %v3425_v52  ;;  %v712_v50 = vunpack.c.l.bf16 %v597_v48  ;;  %v4095_v48 = vld [vmem:[#allocation7 + $0x1c] ss:$12 sps:$4 sm:$0xff]  }
 0x35a   :  { %v585_v55 = vadd.f32 %v584_v49, %v583_v53 }
 0x35c   :  { %3426 = vtanh.f32 %v585_v55 }
 0x366   :  { %v3427_v57 = vpop.eup %3426 }
 0x367   :  { %v588_v60 = vmul.f32 %v3427_v57, %v587_v56 }
 0x369   :  { %v4003_v61 = vadd.f32 %v592_v54, %v588_v60 }
 0x36b   :  { %v594_v58 = vpack.c.bf16 %v4003_v61, %v4003_v61  ;;  %v718_v52 = vrot.slane %v4003_v61, 6 }
 0x36d   :  { %595 = vst [vmem:[#allocation2] sm:$0x4] %v594_v58  ;;  %v599_v62 = vrot.slane %v594_v58, 2 }
 0x36f   :  { %634 = vmatmul.mubr.bf16.vlgmr.msra.gmra.mrb[12].mxu0 %v599_v62  ;;  %3030 = vmatmul.mubr.bf16.vlgmr.msra.gmra.mrb[12].mxu1 %v599_v62 }
 0x370   :  { %730 = vmatpush1.bf16.msra.mxu0 %v3799_v3  ;;  %3034 = vmatpush3.bf16.msra.mxu1 %v3816_v9 }
 0x371   :  { %731 = vmatprep.subr.bf16.mxu0 %v3802_v4  ;;  %3035 = vmatprep.subr.bf16.mxu1 %v3707_v0 }
 0x372   :  { %761 = vmatprep.mubr.bf16.mxu0 %v3708_v1  ;;  %3049 = vmatprep.mubr.msk.bf16.mxu1 %vm3709_vm0, %v3707_v0 }
 0x374   :  { %732 = vmatpush1.bf16.msra.mxu0 %v3805_v5  ;;  %3036 = vmatpush3.bf16.msra.mxu1 %v3826_v12 }
 0x375   :  { %733 = vmatprep.subr.bf16.mxu0 %v3808_v6  ;;  %3037 = vmatprep.subr.bf16.mxu1 %v3707_v0 }
 0x378   :  { %734 = vmatpush1.bf16.msra.mxu0 %v3811_v7  ;;  %3038 = vmatpush3.bf16.msra.mxu1 %v3832_v14 }
 0x379   :  { %735 = vmatprep.subr.bf16.mxu0 %v3814_v8  ;;  %3039 = vmatprep.subr.bf16.mxu1 %v3707_v0 }
 0x37c   :  { %736 = vmatpush1.bf16.msra.mxu0 %v3819_v10  ;;  %3040 = vmatpush3.bf16.msra.mxu1 %v3842_v18 }
 0x37d   :  { %737 = vmatprep.subr.bf16.mxu0 %v3823_v11  ;;  %3041 = vmatprep.subr.bf16.mxu1 %v3707_v0 }
 0x380   :  { %738 = vmatpush1.bf16.msra.mxu0 %v3828_v13  ;;  %3042 = vmatpush3.bf16.msra.mxu1 %v3850_v20 }
 0x381   :  { %739 = vmatprep.subr.bf16.mxu0 %v3835_v15  ;;  %3043 = vmatprep.subr.bf16.mxu1 %v3707_v0 }
 0x384   :  { %740 = vmatpush1.bf16.msra.mxu0 %v3838_v16  ;;  %3044 = vmatpush3.bf16.msra.mxu1 %v3860_v23 }
 0x385   :  { %741 = vmatprep.subr.bf16.mxu0 %v3840_v17  ;;  %3045 = vmatprep.subr.bf16.mxu1 %v3707_v0 }
 0x388   :  { %742 = vmatpush1.bf16.msra.mxu0 %v3848_v19  ;;  %3046 = vmatpush3.bf16.msra.mxu1 %v3866_v24 }
 0x389   :  { %743 = vmatprep.subr.bf16.mxu0 %v3852_v21  ;;  %3047 = vmatprep.subr.bf16.mxu1 %v3707_v0 }
 0x38c   :  { %744 = vmatpush1.bf16.msra.mxu0 %v3858_v22  ;;  %3048 = vmatpush3.bf16.msra.mxu1 %v3872_v25 }
 0x38d   :  { %848 = vmatprep.subr.bf16.mxu0 %v3797_v2  ;;  %3053 = vmatprep.subr.bf16.mxu1 %v3707_v0 }
 0x442   :  { %v635_v27 = vpop.f32.mrb[12].mxu0  ;;  %v676_v28 = vpop.f32.mrb[12].mxu1 }
 0x443   :  { %v684_v30 = vrot.slane %v635_v27, 2  ;;  %v637_v31 = vpop.f32.mrb[13].mxu0  ;;  %v3031_v32 = vpop.f32.mrb[13].mxu1  ;;  %v707_v47 = vadd.f32 %v3918_v45, %v676_v28 }
 0x444   :  { %v698_v33 = vrot.slane %v637_v31, 2  ;;  %v639_v34 = vpop.f32.mrb[14].mxu0  ;;  %v679_v35 = vpop.f32.mrb[14].mxu1 }
 0x445   :  { %v686_v36 = vadd.f32 %v684_v30, %v682_v26  ;;  %v640_v37 = vpop.f32.mrb[15].mxu0  ;;  %v3032_v38 = vpop.f32.mrb[15].mxu1  ;;  %v709_v49 = vrot.slane %v707_v47, 2  ;;  %v725_v30 = vld [vmem:[#allocation4 + $0x14] sm:$0x1] }
 0x446   :  { %v700_v39 = vadd.f32 %v698_v33, %v696_v29  ;;  %v831_v32 = vunpack.c.l.bf16 %v725_v30  ;;  %v4092_v47 = vld [vmem:[#allocation7 + $0x8] ss:$12 sps:$4 sm:$0xff]  }
 0x447   :  { %v2724_v40 = vmul.f32 -1.442695, %v686_v36 }
 0x448   :  { %v2725_v41 = vmul.f32 -1.442695, %v700_v39 }
 0x449   :  { %3428 = vpow2.f32 %v2724_v40 }
 0x44a   :  { %3430 = vpow2.f32 %v2725_v41 }
 0x453   :  { %v3429_v42 = vpop.eup %3428 }
 0x454   :  { %v3431_v43 = vpop.eup %3430  ;;  %v690_v44 = vadd.f32 1.0, %v3429_v42 }
 0x455   :  { %v704_v46 = vadd.f32 1.0, %v3431_v43 }
 0x456   :  { %3432 = vrcp.f32 %v690_v44 }
 0x457   :  { %3434 = vrcp.f32 %v704_v46  ;;  %v4089_v46 = vld [vmem:[#allocation7] ss:$12 sps:$4 sm:$0xff]  }
 0x460   :  { %v3433_v51 = vpop.eup %3432 }
 0x461   :  { %v3435_v53 = vpop.eup %3434  ;;  %v711_v54 = vmul.f32 %v3433_v51, %v709_v49  ;;  %v4102_v49 = vld [vmem:[#allocation7 + $0x18] ss:$12 sps:$4 sm:$0xff]   ;;  %v4108_v51 = vld [vmem:[#allocation7 + $0x34] ss:$12 sps:$4 sm:$0xff]  }
 0x462   :  { %v720_v55 = vmul.f32 %v3435_v53, %v718_v52  ;;  %v715_v57 = vsub.f32 1.0, %v3435_v53  ;;  %v4112_v52 = vld [vmem:[#allocation7 + $0x30] ss:$12 sps:$4 sm:$0xff]   ;;  %v4116_v53 = vld [vmem:[#allocation7 + $0x4c] ss:$12 sps:$4 sm:$0xff]  }
 0x463   :  { %v713_v56 = vadd.f32 %v712_v50, %v711_v54  ;;  %v4105_v50 = vld [vmem:[#allocation7 + $0x20] ss:$12 sps:$4 sm:$0xff]   ;;  %v4120_v54 = vld [vmem:[#allocation7 + $0x48] ss:$12 sps:$4 sm:$0xff]  }
 0x465   :  { %3436 = vtanh.f32 %v713_v56  ;;  %v4128_v56 = vld [vmem:[#allocation7 + $0x60] ss:$12 sps:$4 sm:$0xff]  }
 0x46f   :  { %v3437_v60 = vpop.eup %3436 }
 0x470   :  { %v716_v58 = vmul.f32 %v3437_v60, %v715_v57  ;;  %v4136_v57 = vld [vmem:[#allocation7 + $0x78] ss:$12 sps:$4 sm:$0xff]  }
 0x472   :  { %v4044_v62 = vadd.f32 %v720_v55, %v716_v58  ;;  %v4124_v55 = vld [vmem:[#allocation7 + $0x64] ss:$12 sps:$4 sm:$0xff]  }
 0x474   :  { %v722_v59 = vpack.c.bf16 %v4044_v62, %v4044_v62  ;;  %v837_v34 = vrot.slane %v4044_v62, 6 }
 0x476   :  { %723 = vst [vmem:[#allocation2] sm:$0x8] %v722_v59  ;;  %v727_v63 = vrot.slane %v722_v59, 3 }
 0x478   :  { %762 = vmatmul.mubr.bf16.vlgmr.msra.gmra.mrb[16].mxu0 %v727_v63  ;;  %3050 = vmatmul.mubr.bf16.vlgmr.msra.gmra.mrb[16].mxu1 %v727_v63 }
 0x479   :  { %849 = vmatpush1.bf16.msra.mxu0 %v3799_v3  ;;  %3054 = vmatpush3.bf16.msra.mxu1 %v3816_v9  ;;  %v724_v3 = vld [vmem:[#allocation4 + $0xc] sm:$0x11] }
 0x47a   :  { %850 = vmatprep.subr.bf16.mxu0 %v3802_v4  ;;  %3055 = vmatprep.subr.bf16.mxu1 %v3707_v0  ;;  %v819_v4 = vrot.slane %v724_v3, 4 }
 0x47b   :  { %880 = vmatprep.mubr.bf16.mxu0 %v3708_v1  ;;  %3069 = vmatprep.mubr.msk.bf16.mxu1 %vm3709_vm0, %v3707_v0 }
 0x47d   :  { %851 = vmatpush1.bf16.msra.mxu0 %v3805_v5  ;;  %3056 = vmatpush3.bf16.msra.mxu1 %v3826_v12  ;;  %v810_v5 = vunpack.c.l.bf16 %v724_v3 }
 0x47e   :  { %852 = vmatprep.subr.bf16.mxu0 %v3808_v6  ;;  %3057 = vmatprep.subr.bf16.mxu1 %v3707_v0  ;;  %v821_v6 = vunpack.c.l.bf16 %v819_v4 }
 0x481   :  { %853 = vmatpush1.bf16.msra.mxu0 %v3811_v7  ;;  %3058 = vmatpush3.bf16.msra.mxu1 %v3832_v14 }
 0x482   :  { %854 = vmatprep.subr.bf16.mxu0 %v3814_v8  ;;  %3059 = vmatprep.subr.bf16.mxu1 %v3707_v0 }
 0x485   :  { %855 = vmatpush1.bf16.msra.mxu0 %v3819_v10  ;;  %3060 = vmatpush3.bf16.msra.mxu1 %v3842_v18 }
 0x486   :  { %856 = vmatprep.subr.bf16.mxu0 %v3823_v11  ;;  %3061 = vmatprep.subr.bf16.mxu1 %v3707_v0 }
 0x489   :  { %857 = vmatpush1.bf16.msra.mxu0 %v3828_v13  ;;  %3062 = vmatpush3.bf16.msra.mxu1 %v3850_v20 }
 0x48a   :  { %858 = vmatprep.subr.bf16.mxu0 %v3835_v15  ;;  %3063 = vmatprep.subr.bf16.mxu1 %v3707_v0 }
 0x48d   :  { %859 = vmatpush1.bf16.msra.mxu0 %v3838_v16  ;;  %3064 = vmatpush3.bf16.msra.mxu1 %v3860_v23 }
 0x48e   :  { %860 = vmatprep.subr.bf16.mxu0 %v3840_v17  ;;  %3065 = vmatprep.subr.bf16.mxu1 %v3707_v0 }
 0x491   :  { %861 = vmatpush1.bf16.msra.mxu0 %v3848_v19  ;;  %3066 = vmatpush3.bf16.msra.mxu1 %v3866_v24 }
 0x492   :  { %862 = vmatprep.subr.bf16.mxu0 %v3852_v21  ;;  %3067 = vmatprep.subr.bf16.mxu1 %v3707_v0 }
 0x495   :  { %863 = vmatpush1.bf16.msra.mxu0 %v3858_v22  ;;  %3068 = vmatpush3.bf16.msra.mxu1 %v3872_v25 }
 0x496   :  { %978 = vmatprep.subr.bf16.mxu0 %v3797_v2  ;;  %3073 = vmatprep.subr.bf16.mxu1 %v3707_v0 }
 0x54b   :  { %v763_v7 = vpop.f32.mrb[16].mxu0  ;;  %v804_v8 = vpop.f32.mrb[16].mxu1 }
 0x54c   :  { %v811_v9 = vadd.f32 %v810_v5, %v763_v7  ;;  %v765_v10 = vpop.f32.mrb[17].mxu0  ;;  %v3051_v11 = vpop.f32.mrb[17].mxu1  ;;  %v829_v31 = vadd.f32 %v3918_v45, %v804_v8 }
 0x54d   :  { %v822_v12 = vadd.f32 %v821_v6, %v765_v10  ;;  %v767_v13 = vpop.f32.mrb[18].mxu0  ;;  %v807_v15 = vpop.f32.mrb[18].mxu1 }
 0x54e   :  { %v2726_v16 = vmul.f32 -1.442695, %v811_v9  ;;  %v768_v17 = vpop.f32.mrb[19].mxu0  ;;  %v3052_v61 = vpop.f32.mrb[19].mxu1 }
 0x54f   :  { %v2727_v26 = vmul.f32 -1.442695, %v822_v12 }
 0x550   :  { %3438 = vpow2.f32 %v2726_v16  ;;  %v847_v16 = vld [vmem:[#allocation4 + $0x14] sm:$0x2] }
 0x551   :  { %3440 = vpow2.f32 %v2727_v26  ;;  %v959_v61 = vunpack.c.l.bf16 %v847_v16 }
 0x55a   :  { %v3439_v2 = vpop.eup %3438 }
 0x55b   :  { %v3441_v27 = vpop.eup %3440  ;;  %v815_v28 = vadd.f32 1.0, %v3439_v2 }
 0x55c   :  { %v826_v29 = vadd.f32 1.0, %v3441_v27 }
 0x55d   :  { %3442 = vrcp.f32 %v815_v28 }
 0x55e   :  { %3444 = vrcp.f32 %v826_v29 }
 0x567   :  { %v3443_v33 = vpop.eup %3442 }
 0x568   :  { %v3445_v35 = vpop.eup %3444  ;;  %v830_v36 = vmul.f32 %v3443_v33, %v829_v31 }
 0x569   :  { %v839_v37 = vmul.f32 %v3445_v35, %v837_v34  ;;  %v834_v39 = vsub.f32 1.0, %v3445_v35 }
 0x56a   :  { %v832_v38 = vadd.f32 %v831_v32, %v830_v36 }
 0x56c   :  { %3446 = vtanh.f32 %v832_v38  ;;  %v3573_v38 = vld [vmem:[#allocation7 + $0x38] ss:$12 sps:$4 sm:$0xff]  }
 0x576   :  { %v3447_v40 = vpop.eup %3446 }
 0x577   :  { %v835_v41 = vmul.f32 %v3447_v40, %v834_v39  ;;  %v3574_v39 = vld [vmem:[#allocation7 + $0x50] ss:$12 sps:$4 sm:$0xff]   ;;  %v3575_v40 = vld [vmem:[#allocation7 + $0x68] ss:$12 sps:$4 sm:$0xff]  }
 0x579   :  { %v4085_v42 = vadd.f32 %v839_v37, %v835_v41  ;;  %v3576_v41 = vld [vmem:[#allocation7 + $0x80] ss:$12 sps:$4 sm:$0xff]  }
 0x57b   :  { %v841_v43 = vpack.c.bf16 %v4085_v42, %v4085_v42  ;;  %v965_v2 = vrot.slane %v4085_v42, 6  ;;  %v3577_v42 = vld [vmem:[#allocation7 + $0x90] ss:$12 sps:$4 sm:$0xff]  }
 0x57d   :  { %v843_v44 = vrot.slane %v841_v43, 4  ;;  %881 = vmatmul.mubr.bf16.vlgmr.msra.gmra.mrb[20].mxu0 %v841_v43  ;;  %3070 = vmatmul.mubr.bf16.vlgmr.msra.gmra.mrb[20].mxu1 %v841_v43  ;;  %v3578_v43 = vld [vmem:[#allocation7 + $0x98] ss:$12 sps:$4 sm:$0xff]  }
 0x57e   :  { %979 = vmatpush1.bf16.msra.mxu0 %v4089_v46  ;;  %3074 = vmatpush3.bf16.msra.mxu1 %v4092_v47 }
 0x57f   :  { %845 = vst [vmem:[#allocation2] sm:$0x10] %v843_v44  ;;  %980 = vmatprep.subr.bf16.mxu0 %v4095_v48  ;;  %3075 = vmatprep.subr.bf16.mxu1 %v3707_v0  ;;  %v3579_v44 = vld [vmem:[#allocation7 + $0xac] ss:$12 sps:$4 sm:$0xff]  }
 0x580   :  { %1010 = vmatprep.mubr.bf16.mxu0 %v3708_v1  ;;  %3089 = vmatprep.mubr.msk.bf16.mxu1 %vm3709_vm0, %v3707_v0 }
 0x582   :  { %981 = vmatpush1.bf16.msra.mxu0 %v4102_v49  ;;  %3076 = vmatpush3.bf16.msra.mxu1 %v4105_v50 }
 0x583   :  { %982 = vmatprep.subr.bf16.mxu0 %v4108_v51  ;;  %3077 = vmatprep.subr.bf16.mxu1 %v3707_v0 }
 0x586   :  { %983 = vmatpush1.bf16.msra.mxu0 %v4112_v52  ;;  %3078 = vmatpush3.bf16.msra.mxu1 %v3832_v14  ;;  %v4132_v14 = vld [vmem:[#allocation7 + $0x7c] ss:$12 sps:$4 sm:$0xff]  }
 0x587   :  { %984 = vmatprep.subr.bf16.mxu0 %v4116_v53  ;;  %3079 = vmatprep.subr.bf16.mxu1 %v3707_v0 }
 0x58a   :  { %985 = vmatpush1.bf16.msra.mxu0 %v4120_v54  ;;  %3080 = vmatpush3.bf16.msra.mxu1 %v3842_v18  ;;  %v4140_v18 = vld [vmem:[#allocation7 + $0x94] ss:$12 sps:$4 sm:$0xff]  }
 0x58b   :  { %986 = vmatprep.subr.bf16.mxu0 %v4124_v55  ;;  %3081 = vmatprep.subr.bf16.mxu1 %v3707_v0 }
 0x58e   :  { %987 = vmatpush1.bf16.msra.mxu0 %v4128_v56  ;;  %3082 = vmatpush3.bf16.msra.mxu1 %v3850_v20  ;;  %v3572_v20 = vld [vmem:[#allocation7 + $0x4] ss:$12 sps:$4 sm:$0xff]  }
 0x58f   :  { %988 = vmatprep.subr.bf16.mxu0 %v4132_v14  ;;  %3083 = vmatprep.subr.bf16.mxu1 %v3707_v0 }
 0x592   :  { %989 = vmatpush1.bf16.msra.mxu0 %v4136_v57  ;;  %3084 = vmatpush3.bf16.msra.mxu1 %v3860_v23  ;;  %v846_v23 = vld [vmem:[#allocation4 + $0xc] sm:$0x22] }
 0x593   :  { %990 = vmatprep.subr.bf16.mxu0 %v4140_v18  ;;  %3085 = vmatprep.subr.bf16.mxu1 %v3707_v0  ;;  %v941_v60 = vrot.slane %v846_v23, 4  ;;  %v929_v58 = vunpack.c.l.bf16 %v846_v23 }
 0x596   :  { %991 = vmatpush1.bf16.msra.mxu0 %v3848_v19  ;;  %3086 = vmatpush3.bf16.msra.mxu1 %v3866_v24  ;;  %v943_v19 = vunpack.c.l.bf16 %v941_v60 }
 0x597   :  { %992 = vmatprep.subr.bf16.mxu0 %v3852_v21  ;;  %3087 = vmatprep.subr.bf16.mxu1 %v3707_v0 }
 0x59a   :  { %993 = vmatpush1.bf16.msra.mxu0 %v3858_v22  ;;  %3088 = vmatpush3.bf16.msra.mxu1 %v3872_v25 }
 0x59b   :  { %1108 = vmatprep.subr.bf16.mxu0 %v3572_v20  ;;  %3093 = vmatprep.subr.bf16.mxu1 %v3707_v0 }
 0x650   :  { %v882_v62 = vpop.f32.mrb[20].mxu0  ;;  %v923_v59 = vpop.f32.mrb[20].mxu1 }
 0x651   :  { %v931_v63 = vrot.slane %v882_v62, 6  ;;  %v884_v24 = vpop.f32.mrb[21].mxu0  ;;  %v3071_v3 = vpop.f32.mrb[21].mxu1  ;;  %v954_v15 = vadd.f32 %v3918_v45, %v923_v59 }
 0x652   :  { %v945_v21 = vrot.slane %v884_v24, 6  ;;  %v886_v4 = vpop.f32.mrb[22].mxu0  ;;  %v926_v5 = vpop.f32.mrb[22].mxu1 }
 0x653   :  { %v933_v6 = vadd.f32 %v931_v63, %v929_v58  ;;  %v887_v22 = vpop.f32.mrb[23].mxu0  ;;  %v3072_v7 = vpop.f32.mrb[23].mxu1  ;;  %v956_v17 = vrot.slane %v954_v15, 6  ;;  %v975_v4 = vld [vmem:[#allocation4 + $0x14] sm:$0x4] }
 0x654   :  { %v947_v25 = vadd.f32 %v945_v21, %v943_v19 }
 0x655   :  { %v2728_v8 = vmul.f32 -1.442695, %v933_v6  ;;  %v1089_v6 = vunpack.c.l.bf16 %v975_v4 }
 0x656   :  { %v2729_v9 = vmul.f32 -1.442695, %v947_v25 }
 0x657   :  { %3448 = vpow2.f32 %v2728_v8 }
 0x658   :  { %3450 = vpow2.f32 %v2729_v9 }
 0x661   :  { %v3449_v10 = vpop.eup %3448 }
 0x662   :  { %v3451_v11 = vpop.eup %3450  ;;  %v937_v12 = vadd.f32 1.0, %v3449_v10 }
 0x663   :  { %v951_v13 = vadd.f32 1.0, %v3451_v11 }
 0x664   :  { %3452 = vrcp.f32 %v937_v12 }
 0x665   :  { %3454 = vrcp.f32 %v951_v13 }
 0x66e   :  { %v3453_v26 = vpop.eup %3452 }
 0x66f   :  { %v3455_v27 = vpop.eup %3454  ;;  %v958_v28 = vmul.f32 %v3453_v26, %v956_v17  ;;  %v3334_v26 = vld [vmem:[#allocation9] ss:$12 sps:$4 sm:$0xff]  }
 0x670   :  { %v967_v29 = vmul.f32 %v3455_v27, %v965_v2  ;;  %v962_v31 = vsub.f32 1.0, %v3455_v27  ;;  %v3337_v2 = vld [vmem:[#allocation9 + $0x8] ss:$12 sps:$4 sm:$0xff]  }
 0x671   :  { %v960_v30 = vadd.f32 %v959_v61, %v958_v28  ;;  %v3336_v61 = vld [vmem:[#allocation9 + $0x4] ss:$12 sps:$4 sm:$0xff]   ;;  %v3340_v27 = vld [vmem:[#allocation9 + $0x1c] ss:$12 sps:$4 sm:$0xff]  }
 0x672   :  { %v3338_v28 = vld [vmem:[#allocation9 + $0x18] ss:$12 sps:$4 sm:$0xff]  }
 0x673   :  { %3456 = vtanh.f32 %v960_v30  ;;  %v3344_v30 = vld [vmem:[#allocation9 + $0x34] ss:$12 sps:$4 sm:$0xff]  }
 0x67d   :  { %v3457_v32 = vpop.eup %3456 }
 0x67e   :  { %v963_v33 = vmul.f32 %v3457_v32, %v962_v31  ;;  %v3342_v31 = vld [vmem:[#allocation9 + $0x30] ss:$12 sps:$4 sm:$0xff]   ;;  %v3345_v32 = vld [vmem:[#allocation9 + $0x38] ss:$12 sps:$4 sm:$0xff]  }
 0x680   :  { %v4153_v34 = vadd.f32 %v967_v29, %v963_v33  ;;  %v3341_v29 = vld [vmem:[#allocation9 + $0x20] ss:$12 sps:$4 sm:$0xff]  }
 0x681   :  { %v3348_v33 = vld [vmem:[#allocation9 + $0x4c] ss:$12 sps:$4 sm:$0xff]  }
 0x682   :  { %v969_v35 = vpack.c.bf16 %v4153_v34, %v4153_v34  ;;  %v1095_v7 = vrot.slane %v4153_v34, 6  ;;  %v3346_v34 = vld [vmem:[#allocation9 + $0x48] ss:$12 sps:$4 sm:$0xff]  }
 0x684   :  { %v971_v36 = vrot.slane %v969_v35, 4  ;;  %v976_v37 = vrot.slane %v969_v35, 1  ;;  %v3349_v35 = vld [vmem:[#allocation9 + $0x50] ss:$12 sps:$4 sm:$0xff]  }
 0x686   :  { %973 = vst [vmem:[#allocation2] sm:$0x20] %v971_v36  ;;  %1011 = vmatmul.mubr.bf16.vlgmr.msra.gmra.mrb[24].mxu0 %v976_v37  ;;  %3090 = vmatmul.mubr.bf16.vlgmr.msra.gmra.mrb[24].mxu1 %v976_v37  ;;  %v3352_v36 = vld [vmem:[#allocation9 + $0x64] ss:$12 sps:$4 sm:$0xff]   ;;  %v3350_v37 = vld [vmem:[#allocation9 + $0x60] ss:$12 sps:$4 sm:$0xff]  }
 0x687   :  { %1109 = vmatpush1.bf16.msra.mxu0 %v4089_v46  ;;  %3094 = vmatpush3.bf16.msra.mxu1 %v4092_v47  ;;  %v3580_v46 = vld [vmem:[#allocation7 + $0xa8] ss:$12 sps:$4 sm:$0xff]   ;;  %v3581_v47 = vld [vmem:[#allocation7 + $0xb0] ss:$12 sps:$4 sm:$0xff]  }
 0x688   :  { %1110 = vmatprep.subr.bf16.mxu0 %v4095_v48  ;;  %3095 = vmatprep.subr.bf16.mxu1 %v3707_v0  ;;  %v974_v48 = vld [vmem:[#allocation4 + $0xc] sm:$0x44] }
 0x689   :  { %1140 = vmatprep.mubr.bf16.mxu0 %v3708_v1  ;;  %3109 = vmatprep.mubr.msk.bf16.mxu1 %vm3709_vm0, %v3707_v0 }
 0x68b   :  { %1111 = vmatpush1.bf16.msra.mxu0 %v4102_v49  ;;  %3096 = vmatpush3.bf16.msra.mxu1 %v4105_v50  ;;  %v1071_v49 = vrot.slane %v974_v48, 4  ;;  %v1059_v50 = vunpack.c.l.bf16 %v974_v48  ;;  %v3365_v48 = vld [vmem:[#allocation9 + $0xb0] ss:$12 sps:$4 sm:$0xff]  }
 0x68c   :  { %1112 = vmatprep.subr.bf16.mxu0 %v4108_v51  ;;  %3097 = vmatprep.subr.bf16.mxu1 %v3707_v0 }
 0x68f   :  { %1113 = vmatpush1.bf16.msra.mxu0 %v4112_v52  ;;  %3098 = vmatpush3.bf16.msra.mxu1 %v3573_v38  ;;  %v3353_v38 = vld [vmem:[#allocation9 + $0x68] ss:$12 sps:$4 sm:$0xff]  }
 0x690   :  { %1114 = vmatprep.subr.bf16.mxu0 %v4116_v53  ;;  %3099 = vmatprep.subr.bf16.mxu1 %v3707_v0  ;;  %v1073_v53 = vunpack.c.l.bf16 %v1071_v49  ;;  %v4197_v49 = vld [vmem:[#allocation7 + $0xc4] ss:$12 sps:$4 sm:$0xff]  }
 0x693   :  { %1115 = vmatpush1.bf16.msra.mxu0 %v4120_v54  ;;  %3100 = vmatpush3.bf16.msra.mxu1 %v3574_v39  ;;  %v3356_v39 = vld [vmem:[#allocation9 + $0x7c] ss:$12 sps:$4 sm:$0xff]  }
 0x694   :  { %1116 = vmatprep.subr.bf16.mxu0 %v4124_v55  ;;  %3101 = vmatprep.subr.bf16.mxu1 %v3707_v0 }
 0x697   :  { %1117 = vmatpush1.bf16.msra.mxu0 %v4128_v56  ;;  %3102 = vmatpush3.bf16.msra.mxu1 %v3575_v40  ;;  %v3354_v40 = vld [vmem:[#allocation9 + $0x78] ss:$12 sps:$4 sm:$0xff]  }
 0x698   :  { %1118 = vmatprep.subr.bf16.mxu0 %v4132_v14  ;;  %3103 = vmatprep.subr.bf16.mxu1 %v3707_v0 }
 0x69b   :  { %1119 = vmatpush1.bf16.msra.mxu0 %v4136_v57  ;;  %3104 = vmatpush3.bf16.msra.mxu1 %v3576_v41  ;;  %v3357_v41 = vld [vmem:[#allocation9 + $0x80] ss:$12 sps:$4 sm:$0xff]  }
 0x69c   :  { %1120 = vmatprep.subr.bf16.mxu0 %v4140_v18  ;;  %3105 = vmatprep.subr.bf16.mxu1 %v3707_v0 }
 0x69f   :  { %1121 = vmatpush1.bf16.msra.mxu0 %v3577_v42  ;;  %3106 = vmatpush3.bf16.msra.mxu1 %v3578_v43  ;;  %v3360_v42 = vld [vmem:[#allocation9 + $0x94] ss:$12 sps:$4 sm:$0xff]   ;;  %v3358_v43 = vld [vmem:[#allocation9 + $0x90] ss:$12 sps:$4 sm:$0xff]  }
 0x6a0   :  { %1122 = vmatprep.subr.bf16.mxu0 %v3579_v44  ;;  %3107 = vmatprep.subr.bf16.mxu1 %v3707_v0  ;;  %v3361_v44 = vld [vmem:[#allocation9 + $0x98] ss:$12 sps:$4 sm:$0xff]  }
 0x6a3   :  { %1123 = vmatpush1.bf16.msra.mxu0 %v3580_v46  ;;  %3108 = vmatpush3.bf16.msra.mxu1 %v3581_v47  ;;  %v3362_v46 = vld [vmem:[#allocation9 + $0xa8] ss:$12 sps:$4 sm:$0xff]   ;;  %v3364_v47 = vld [vmem:[#allocation9 + $0xac] ss:$12 sps:$4 sm:$0xff]  }
 0x6a4   :  { %3113 = vmatprep.subr.bf16.mxu1 %v3707_v0  ;;  %1453 = vmatprep.subr.bf16.mxu0 %v3336_v61 }
 0x759   :  { %v1012_v51 = vpop.f32.mrb[24].mxu0  ;;  %v1053_v52 = vpop.f32.mrb[24].mxu1 }
 0x75a   :  { %v1061_v54 = vrot.slane %v1012_v51, 4  ;;  %v1014_v55 = vpop.f32.mrb[25].mxu0  ;;  %v3091_v56 = vpop.f32.mrb[25].mxu1  ;;  %v1084_v21 = vadd.f32 %v3918_v45, %v1053_v52 }
 0x75b   :  { %v1075_v14 = vrot.slane %v1014_v55, 4  ;;  %v1016_v57 = vpop.f32.mrb[26].mxu0  ;;  %v1056_v18 = vpop.f32.mrb[26].mxu1 }
 0x75c   :  { %v1063_v20 = vadd.f32 %v1061_v54, %v1059_v50  ;;  %v1017_v23 = vpop.f32.mrb[27].mxu0  ;;  %v3092_v60 = vpop.f32.mrb[27].mxu1  ;;  %v1086_v5 = vrot.slane %v1084_v21, 4  ;;  %v1104_v50 = vld [vmem:[#allocation4 + $0xc] sm:$0x88] }
 0x75d   :  { %v1077_v58 = vadd.f32 %v1075_v14, %v1073_v53  ;;  %v1201_v51 = vrot.slane %v1104_v50, 4  ;;  %v1189_v52 = vunpack.c.l.bf16 %v1104_v50  ;;  %v4276_v50 = vld [vmem:[#allocation7 + $0x168] ss:$12 sps:$4 sm:$0xff]  }
 0x75e   :  { %v2730_v62 = vmul.f32 -1.442695, %v1063_v20 }
 0x75f   :  { %v2731_v59 = vmul.f32 -1.442695, %v1077_v58  ;;  %v1203_v55 = vunpack.c.l.bf16 %v1201_v51  ;;  %v4279_v51 = vld [vmem:[#allocation7 + $0x170] ss:$12 sps:$4 sm:$0xff]  }
 0x760   :  { %3458 = vpow2.f32 %v2730_v62 }
 0x761   :  { %3460 = vpow2.f32 %v2731_v59 }
 0x76a   :  { %v3459_v19 = vpop.eup %3458 }
 0x76b   :  { %v3461_v63 = vpop.eup %3460  ;;  %v1067_v24 = vadd.f32 1.0, %v3459_v19 }
 0x76c   :  { %v1081_v3 = vadd.f32 1.0, %v3461_v63 }
 0x76d   :  { %3462 = vrcp.f32 %v1067_v24 }
 0x76e   :  { %3464 = vrcp.f32 %v1081_v3 }
 0x777   :  { %v3463_v22 = vpop.eup %3462 }
 0x778   :  { %v3465_v25 = vpop.eup %3464  ;;  %v1088_v8 = vmul.f32 %v3463_v22, %v1086_v5  ;;  %v3582_v5 = vld [vmem:[%s4570_s2] ss:$0 sm:$0xff]  ;;  %v1105_v22 = vld [vmem:[#allocation4 + $0x14] sm:$0x8] }
 0x779   :  { %v1097_v9 = vmul.f32 %v3465_v25, %v1095_v7  ;;  %v1092_v11 = vsub.f32 1.0, %v3465_v25  ;;  %v1219_v25 = vunpack.c.l.bf16 %v1105_v22 }
 0x77a   :  { %v1090_v10 = vadd.f32 %v1089_v6, %v1088_v8 }
 0x77c   :  { %3466 = vtanh.f32 %v1090_v10 }
 0x786   :  { %v3467_v12 = vpop.eup %3466 }
 0x787   :  { %v1093_v13 = vmul.f32 %v3467_v12, %v1092_v11 }
 0x789   :  { %v4184_v15 = vadd.f32 %v1097_v9, %v1093_v13 }
 0x78b   :  { %v1099_v16 = vpack.c.bf16 %v4184_v15, %v4184_v15  ;;  %v1225_v9 = vrot.slane %v4184_v15, 6  ;;  %v4213_v15 = vld [vmem:[#allocation7 + $0xd8] ss:$12 sps:$4 sm:$0xff]  }
 0x78d   :  { %v1101_v45 = vrot.slane %v1099_v16, 4  ;;  %v1106_v17 = vrot.slane %v1099_v16, 2 }
 0x78f   :  { %1103 = vst [vmem:[#allocation2] sm:$0x40] %v1101_v45  ;;  %1141 = vmatmul.mubr.bf16.vlgmr.msra.gmra.mrb[28].mxu0 %v1106_v17  ;;  %3110 = vmatmul.mubr.bf16.vlgmr.msra.gmra.mrb[28].mxu1 %v1106_v17 }
 0x790   :  { %1485 = vmatprep.mubr.bf16.mxu0 %v3708_v1  ;;  %3129 = vmatprep.mubr.msk.bf16.mxu1 %vm3709_vm0, %v3707_v0 }
 0x791   :  { %1454 = vmatpush1.bf16.msra.mxu0 %v3334_v26  ;;  %3114 = vmatpush3.bf16.msra.mxu1 %v3337_v2 }
 0x792   :  { %3115 = vmatprep.subr.bf16.mxu1 %v3707_v0  ;;  %1455 = vmatprep.subr.bf16.mxu0 %v3340_v27  ;;  %v4206_v27 = vld [vmem:[#allocation7 + $0xc0] ss:$12 sps:$4 sm:$0xff]  }
 0x795   :  { %1456 = vmatpush1.bf16.msra.mxu0 %v3338_v28  ;;  %3116 = vmatpush3.bf16.msra.mxu1 %v3341_v29  ;;  %v4208_v28 = vld [vmem:[#allocation7 + $0xc8] ss:$12 sps:$4 sm:$0xff]  }
 0x796   :  { %3117 = vmatprep.subr.bf16.mxu1 %v3707_v0  ;;  %1457 = vmatprep.subr.bf16.mxu0 %v3344_v30  ;;  %v4210_v29 = vld [vmem:[#allocation7 + $0xdc] ss:$12 sps:$4 sm:$0xff]  }
 0x799   :  { %1458 = vmatpush1.bf16.msra.mxu0 %v3342_v31  ;;  %3118 = vmatpush3.bf16.msra.mxu1 %v3345_v32  ;;  %v4216_v31 = vld [vmem:[#allocation7 + $0xe0] ss:$12 sps:$4 sm:$0xff]  }
 0x79a   :  { %3119 = vmatprep.subr.bf16.mxu1 %v3707_v0  ;;  %1459 = vmatprep.subr.bf16.mxu0 %v3348_v33  ;;  %v4219_v32 = vld [vmem:[#allocation7 + $0xf4] ss:$12 sps:$4 sm:$0xff]   ;;  %v4226_v33 = vld [vmem:[#allocation7 + $0xf0] ss:$12 sps:$4 sm:$0xff]  }
 0x79d   :  { %1460 = vmatpush1.bf16.msra.mxu0 %v3346_v34  ;;  %3120 = vmatpush3.bf16.msra.mxu1 %v3349_v35  ;;  %v4229_v34 = vld [vmem:[#allocation7 + $0xf8] ss:$12 sps:$4 sm:$0xff]  }
 0x79e   :  { %3121 = vmatprep.subr.bf16.mxu1 %v3707_v0  ;;  %1461 = vmatprep.subr.bf16.mxu0 %v3352_v36  ;;  %v4232_v35 = vld [vmem:[#allocation7 + $0x10c] ss:$12 sps:$4 sm:$0xff]   ;;  %v4236_v36 = vld [vmem:[#allocation7 + $0x108] ss:$12 sps:$4 sm:$0xff]  }
 0x7a1   :  { %1462 = vmatpush1.bf16.msra.mxu0 %v3350_v37  ;;  %3122 = vmatpush3.bf16.msra.mxu1 %v3353_v38  ;;  %v4239_v37 = vld [vmem:[#allocation7 + $0x110] ss:$12 sps:$4 sm:$0xff]  }
 0x7a2   :  { %3123 = vmatprep.subr.bf16.mxu1 %v3707_v0  ;;  %1463 = vmatprep.subr.bf16.mxu0 %v3356_v39  ;;  %v4242_v38 = vld [vmem:[#allocation7 + $0x124] ss:$12 sps:$4 sm:$0xff]   ;;  %v4246_v39 = vld [vmem:[#allocation7 + $0x120] ss:$12 sps:$4 sm:$0xff]  }
 0x7a5   :  { %1464 = vmatpush1.bf16.msra.mxu0 %v3354_v40  ;;  %3124 = vmatpush3.bf16.msra.mxu1 %v3357_v41  ;;  %v4249_v40 = vld [vmem:[#allocation7 + $0x128] ss:$12 sps:$4 sm:$0xff]  }
 0x7a6   :  { %3125 = vmatprep.subr.bf16.mxu1 %v3707_v0  ;;  %1465 = vmatprep.subr.bf16.mxu0 %v3360_v42  ;;  %v4252_v41 = vld [vmem:[#allocation7 + $0x13c] ss:$12 sps:$4 sm:$0xff]   ;;  %v4256_v42 = vld [vmem:[#allocation7 + $0x138] ss:$12 sps:$4 sm:$0xff]  }
 0x7a9   :  { %1466 = vmatpush1.bf16.msra.mxu0 %v3358_v43  ;;  %3126 = vmatpush3.bf16.msra.mxu1 %v3361_v44  ;;  %v4259_v43 = vld [vmem:[#allocation7 + $0x140] ss:$12 sps:$4 sm:$0xff]  }
 0x7aa   :  { %1467 = vmatprep.subr.bf16.mxu0 %v3364_v47  ;;  %3127 = vmatprep.subr.bf16.mxu1 %v3707_v0  ;;  %v4262_v44 = vld [vmem:[#allocation7 + $0x154] ss:$12 sps:$4 sm:$0xff]   ;;  %v4269_v47 = vld [vmem:[#allocation7 + $0x158] ss:$12 sps:$4 sm:$0xff]  }
 0x7ad   :  { %1468 = vmatpush1.bf16.msra.mxu0 %v3362_v46  ;;  %3128 = vmatpush3.bf16.msra.mxu1 %v3365_v48  ;;  %v4266_v46 = vld [vmem:[#allocation7 + $0x150] ss:$12 sps:$4 sm:$0xff]   ;;  %v4272_v48 = vld [vmem:[#allocation7 + $0x16c] ss:$12 sps:$4 sm:$0xff]  }
 0x7ae   :  { %1674 = vmatprep.subr.bf16.mxu0 %v4197_v49  ;;  %3133 = vmatprep.subr.bf16.mxu1 %v3707_v0 }
 0x862   :  { %v1142_v53 = vpop.f32.mrb[28].mxu0  ;;  %v1183_v54 = vpop.f32.mrb[28].mxu1 }
 0x863   :  { %v1191_v56 = vrot.slane %v1142_v53, 2  ;;  %v1144_v14 = vpop.f32.mrb[29].mxu0  ;;  %v3111_v57 = vpop.f32.mrb[29].mxu1  ;;  %v1214_v6 = vadd.f32 %v3582_v5, %v1183_v54 }
 0x864   :  { %v1205_v18 = vrot.slane %v1144_v14, 2  ;;  %v1146_v20 = vpop.f32.mrb[30].mxu0  ;;  %v1186_v23 = vpop.f32.mrb[30].mxu1 }
 0x865   :  { %v1193_v60 = vadd.f32 %v1191_v56, %v1189_v52  ;;  %v1147_v58 = vpop.f32.mrb[31].mxu0  ;;  %v3112_v62 = vpop.f32.mrb[31].mxu1  ;;  %v1216_v7 = vrot.slane %v1214_v6, 2  ;;  %v1310_v52 = vlaneseq  ;;  %v1308_v56 = vld [vmem:[%s4572_s4] sm:$0x7] }
 0x866   :  { %v1207_v59 = vadd.f32 %v1205_v18, %v1203_v55 }
 0x867   :  { %v2732_v19 = vmul.f32 -1.442695, %v1193_v60  ;;  %v1311_v53 = vshrl.u32 %v1310_v52, 7 }
 0x868   :  { %v2733_v63 = vmul.f32 -1.442695, %v1207_v59 }
 0x869   :  { %3468 = vpow2.f32 %v2732_v19  ;;  %v1312_v54 = vsub.s32 0, %v1311_v53  ;;  %v1320_v55 = vsub.s32 2, %v1311_v53  ;;  %v1316_v14 = vsub.s32 1, %v1311_v53 }
 0x86a   :  { %3470 = vpow2.f32 %v2733_v63 }
 0x86b   :  { %v1313_v57 = vrot.slane %v1308_v56, %v1312_v54  ;;  %v1321_v18 = vrot.slane %v1308_v56, %v1320_v55  ;;  %v1317_v60 = vrot.slane %v1308_v56, %v1316_v14 }
 0x873   :  { %v3469_v24 = vpop.eup %3468 }
 0x874   :  { %v3471_v3 = vpop.eup %3470  ;;  %v1197_v21 = vadd.f32 1.0, %v3469_v24 }
 0x875   :  { %v1211_v4 = vadd.f32 1.0, %v3471_v3 }
 0x876   :  { %3472 = vrcp.f32 %v1197_v21 }
 0x877   :  { %3474 = vrcp.f32 %v1211_v4 }
 0x880   :  { %v3473_v8 = vpop.eup %3472 }
 0x881   :  { %v3475_v10 = vpop.eup %3474  ;;  %v1218_v11 = vmul.f32 %v3473_v8, %v1216_v7 }
 0x882   :  { %v1227_v12 = vmul.f32 %v3475_v10, %v1225_v9  ;;  %v1222_v16 = vsub.f32 1.0, %v3475_v10 }
 0x883   :  { %v1220_v13 = vadd.f32 %v1219_v25, %v1218_v11 }
 0x885   :  { %3476 = vtanh.f32 %v1220_v13 }
 0x88f   :  { %v3477_v45 = vpop.eup %3476 }
 0x890   :  { %v1223_v17 = vmul.f32 %v3477_v45, %v1222_v16 }
 0x892   :  { %v1228_v61 = vadd.f32 %v1227_v12, %v1223_v17 }
 0x894   :  { %v1229_v26 = vpack.c.bf16 %v1228_v61, %v1228_v61 }
 0x896   :  { %v1231_v2 = vrot.slane %v1229_v26, 4 }
 0x898   :  { %1233 = vst [vmem:[#allocation2] sm:$0x80] %v1231_v2 }
 0x89f   :  { %v1275_v30 = vld [vmem:[#allocation2] sm:$0xff] }
 0x8a0   :  { %1486 = vmatmul.mubr.bf16.vlgmr.msra.gmra.mrb[32].mxu0 %v1275_v30  ;;  %3130 = vmatmul.mubr.bf16.vlgmr.msra.gmra.mrb[32].mxu1 %v1275_v30 }
 0x8a1   :  { %1675 = vmatpush1.bf16.msra.mxu0 %v4206_v27  ;;  %3134 = vmatpush3.bf16.msra.mxu1 %v4208_v28 }
 0x8a2   :  { %1676 = vmatprep.subr.bf16.mxu0 %v4210_v29  ;;  %3135 = vmatprep.subr.bf16.mxu1 %v3707_v0 }
 0x8a3   :  { %1706 = vmatprep.mubr.bf16.mxu0 %v3708_v1  ;;  %3149 = vmatprep.mubr.msk.bf16.mxu1 %vm3709_vm0, %v3707_v0 }
 0x8a5   :  { %1677 = vmatpush1.bf16.msra.mxu0 %v4213_v15  ;;  %3136 = vmatpush3.bf16.msra.mxu1 %v4216_v31 }
 0x8a6   :  { %1678 = vmatprep.subr.bf16.mxu0 %v4219_v32  ;;  %3137 = vmatprep.subr.bf16.mxu1 %v3707_v0 }
 0x8a9   :  { %1679 = vmatpush1.bf16.msra.mxu0 %v4226_v33  ;;  %3138 = vmatpush3.bf16.msra.mxu1 %v4229_v34 }
 0x8aa   :  { %1680 = vmatprep.subr.bf16.mxu0 %v4232_v35  ;;  %3139 = vmatprep.subr.bf16.mxu1 %v3707_v0 }
 0x8ad   :  { %1681 = vmatpush1.bf16.msra.mxu0 %v4236_v36  ;;  %3140 = vmatpush3.bf16.msra.mxu1 %v4239_v37 }
 0x8ae   :  { %1682 = vmatprep.subr.bf16.mxu0 %v4242_v38  ;;  %3141 = vmatprep.subr.bf16.mxu1 %v3707_v0 }
 0x8b1   :  { %1683 = vmatpush1.bf16.msra.mxu0 %v4246_v39  ;;  %3142 = vmatpush3.bf16.msra.mxu1 %v4249_v40 }
 0x8b2   :  { %1684 = vmatprep.subr.bf16.mxu0 %v4252_v41  ;;  %3143 = vmatprep.subr.bf16.mxu1 %v3707_v0 }
 0x8b5   :  { %1685 = vmatpush1.bf16.msra.mxu0 %v4256_v42  ;;  %3144 = vmatpush3.bf16.msra.mxu1 %v4259_v43 }
 0x8b6   :  { %1686 = vmatprep.subr.bf16.mxu0 %v4262_v44  ;;  %3145 = vmatprep.subr.bf16.mxu1 %v3707_v0 }
 0x8b9   :  { %1687 = vmatpush1.bf16.msra.mxu0 %v4266_v46  ;;  %3146 = vmatpush3.bf16.msra.mxu1 %v4269_v47 }
 0x8ba   :  { %1688 = vmatprep.subr.bf16.mxu0 %v4272_v48  ;;  %3147 = vmatprep.subr.bf16.mxu1 %v3707_v0 }
 0x8bd   :  { %1689 = vmatpush1.bf16.msra.mxu0 %v4276_v50  ;;  %3148 = vmatpush3.bf16.msra.mxu1 %v4279_v51 }
 0x8be   :  { %1784 = vmatprep.subr.bf16.mxu0 %v4197_v49  ;;  %3153 = vmatprep.subr.bf16.mxu1 %v3707_v0 }
 0x8c0   :  { %1707 = vmatmul.mubr.bf16.vlgmr.msra.gmra.mrb[36].mxu0 %v3708_v1  ;;  %3150 = vmatmul.mubr.bf16.vlgmr.msra.gmra.mrb[36].mxu1 %v3708_v1 }
 0x8c1   :  { %1785 = vmatpush1.bf16.msra.mxu0 %v4206_v27  ;;  %3154 = vmatpush3.bf16.msra.mxu1 %v4208_v28 }
 0x8c2   :  { %1786 = vmatprep.subr.bf16.mxu0 %v4210_v29  ;;  %3155 = vmatprep.subr.bf16.mxu1 %v3707_v0 }
 0x8c3   :  { %1816 = vmatprep.mubr.bf16.mxu0 %v3708_v1  ;;  %3169 = vmatprep.mubr.msk.bf16.mxu1 %vm3709_vm0, %v3707_v0 }
 0x8c5   :  { %1787 = vmatpush1.bf16.msra.mxu0 %v4213_v15  ;;  %3156 = vmatpush3.bf16.msra.mxu1 %v4216_v31 }
 0x8c6   :  { %1788 = vmatprep.subr.bf16.mxu0 %v4219_v32  ;;  %3157 = vmatprep.subr.bf16.mxu1 %v3707_v0 }
 0x8c9   :  { %1789 = vmatpush1.bf16.msra.mxu0 %v4226_v33  ;;  %3158 = vmatpush3.bf16.msra.mxu1 %v4229_v34 }
 0x8ca   :  { %1790 = vmatprep.subr.bf16.mxu0 %v4232_v35  ;;  %3159 = vmatprep.subr.bf16.mxu1 %v3707_v0 }
 0x8cd   :  { %1791 = vmatpush1.bf16.msra.mxu0 %v4236_v36  ;;  %3160 = vmatpush3.bf16.msra.mxu1 %v4239_v37 }
 0x8ce   :  { %1792 = vmatprep.subr.bf16.mxu0 %v4242_v38  ;;  %3161 = vmatprep.subr.bf16.mxu1 %v3707_v0 }
 0x8d1   :  { %1793 = vmatpush1.bf16.msra.mxu0 %v4246_v39  ;;  %3162 = vmatpush3.bf16.msra.mxu1 %v4249_v40 }
 0x8d2   :  { %1794 = vmatprep.subr.bf16.mxu0 %v4252_v41  ;;  %3163 = vmatprep.subr.bf16.mxu1 %v3707_v0 }
 0x8d5   :  { %1795 = vmatpush1.bf16.msra.mxu0 %v4256_v42  ;;  %3164 = vmatpush3.bf16.msra.mxu1 %v4259_v43 }
 0x8d6   :  { %1796 = vmatprep.subr.bf16.mxu0 %v4262_v44  ;;  %3165 = vmatprep.subr.bf16.mxu1 %v3707_v0 }
 0x8d9   :  { %1797 = vmatpush1.bf16.msra.mxu0 %v4266_v46  ;;  %3166 = vmatpush3.bf16.msra.mxu1 %v4269_v47 }
 0x8da   :  { %1798 = vmatprep.subr.bf16.mxu0 %v4272_v48  ;;  %3167 = vmatprep.subr.bf16.mxu1 %v3707_v0 }
 0x8dd   :  { %1799 = vmatpush1.bf16.msra.mxu0 %v4276_v50  ;;  %3168 = vmatpush3.bf16.msra.mxu1 %v4279_v51 }
 0x8de   :  { %1909 = vmatprep.subr.bf16.mxu0 %v4197_v49  ;;  %3173 = vmatprep.subr.bf16.mxu1 %v3707_v0 }
 0x973   :  { %v1487_v20 = vpop.f32.mrb[32].mxu0  ;;  %v1530_v23 = vpop.f32.mrb[32].mxu1 }
 0x974   :  { %v1489_v58 = vpop.f32.mrb[33].mxu0  ;;  %v3131_v62 = vpop.f32.mrb[33].mxu1  ;;  %v1488_v63 = vadd.f32 %v1487_v20, %v1313_v57  ;;  %v1531_v24 = vadd.f32 %v1530_v23, %v1321_v18 }
 0x975   :  { %v1491_v59 = vpop.f32.mrb[34].mxu0  ;;  %v1533_v19 = vpop.f32.mrb[34].mxu1  ;;  %v1490_v6 = vadd.f32 %v1489_v58, %v1317_v60 }
 0x976   :  { %v1492_v3 = vadd.f32 %v1491_v59, %v1313_v57  ;;  %v1534_v21 = vadd.f32 %v1533_v19, %v1321_v18  ;;  %v1493_v4 = vpop.f32.mrb[35].mxu0  ;;  %v3132_v5 = vpop.f32.mrb[35].mxu1  ;;  %v4330_v18 = vld [vmem:[%s4570_s2 + $0x1] ss:$0 sm:$0xff] }
 0x977   :  { %v1494_v22 = vadd.f32 %v1493_v4, %v1317_v60 }
 0x978   :  { %v1537_v7 = vpack.c.bf16 %v1492_v3, %v1488_v63  ;;  %v1539_v25 = vpack.c.bf16 %v1534_v21, %v1531_v24 }
 0x979   :  { %v1538_v8 = vpack.c.bf16 %v1494_v22, %v1490_v6 }
 0x97a   :  { %1540 = vst [vmem:[#allocation3] sm:$0xff] %v1537_v7  ;;  %1542 = vst [vmem:[#allocation3 + $0x10] sm:$0xff] %v1539_v25 }
 0x97b   :  { %1541 = vst [vmem:[#allocation3 + $0x8] sm:$0xff] %v1538_v8 }
 0x981   :  { %v1543_v9 = vld [vmem:[#allocation3] sm:$0x1]  ;;  %v1545_v60 = vld [vmem:[#allocation3 + $0x10] sm:$0x1]  ;;  %v1780_v22 = vld [vmem:[#allocation3] sm:$0x2] }
 0x982   :  { %v1755_v10 = vunpack.c.l.bf16 %v1543_v9  ;;  %v1544_v11 = vld [vmem:[#allocation3 + $0x8] sm:$0x1]  ;;  %v1773_v59 = vunpack.c.l.bf16 %v1545_v60  ;;  %v1781_v7 = vld [vmem:[#allocation3 + $0x8] sm:$0x2]  ;;  %v1865_v9 = vunpack.c.l.bf16 %v1780_v22 }
 0x983   :  { %v1763_v61 = vunpack.c.l.bf16 %v1544_v11 }
 0x993   :  { %v1708_v12 = vpop.f32.mrb[36].mxu0  ;;  %v1749_v13 = vpop.f32.mrb[36].mxu1 }
 0x994   :  { %v1756_v16 = vadd.f32 %v1755_v10, %v1708_v12  ;;  %v1710_v45 = vpop.f32.mrb[37].mxu0  ;;  %v3151_v17 = vpop.f32.mrb[37].mxu1  ;;  %v1771_v23 = vadd.f32 %v4330_v18, %v1749_v13  ;;  %v1876_v13 = vunpack.c.l.bf16 %v1781_v7 }
 0x995   :  { %v1712_v26 = vpop.f32.mrb[38].mxu0  ;;  %v1752_v2 = vpop.f32.mrb[38].mxu1  ;;  %v1764_v54 = vadd.f32 %v1763_v61, %v1710_v45 }
 0x996   :  { %v2784_v30 = vmul.f32 -1.442695, %v1756_v16  ;;  %v1713_v52 = vpop.f32.mrb[39].mxu0  ;;  %v3152_v53 = vpop.f32.mrb[39].mxu1 }
 0x997   :  { %v2785_v55 = vmul.f32 -1.442695, %v1764_v54 }
 0x998   :  { %3478 = vpow2.f32 %v2784_v30 }
 0x999   :  { %3480 = vpow2.f32 %v2785_v55 }
 0x9a2   :  { %v3479_v56 = vpop.eup %3478 }
 0x9a3   :  { %v1760_v14 = vadd.f32 1.0, %v3479_v56  ;;  %v3481_v57 = vpop.eup %3480 }
 0x9a4   :  { %v1768_v20 = vadd.f32 1.0, %v3481_v57 }
 0x9a5   :  { %3482 = vrcp.f32 %v1760_v14 }
 0x9a6   :  { %3484 = vrcp.f32 %v1768_v20  ;;  %v1782_v20 = vld [vmem:[#allocation3 + $0x10] sm:$0x2] }
 0x9af   :  { %v3483_v58 = vpop.eup %3482 }
 0x9b0   :  { %v1772_v62 = vmul.f32 %v3483_v58, %v1771_v23  ;;  %v3485_v63 = vpop.eup %3484 }
 0x9b1   :  { %v1776_v24 = vsub.f32 1.0, %v3485_v63  ;;  %v1778_v4 = vmul.f32 0.0, %v3485_v63 }
 0x9b2   :  { %v1774_v19 = vadd.f32 %v1773_v59, %v1772_v62 }
 0x9b4   :  { %3486 = vtanh.f32 %v1774_v19  ;;  %v1892_v19 = vunpack.c.l.bf16 %v1782_v20 }
 0x9be   :  { %v3487_v3 = vpop.eup %3486 }
 0x9bf   :  { %v1777_v21 = vmul.f32 %v3487_v3, %v1776_v24 }
 0x9c1   :  { %v4333_v5 = vadd.f32 %v1778_v4, %v1777_v21 }
 0x9c3   :  { %v1783_v6 = vpack.c.bf16 %v4333_v5, %v4333_v5  ;;  %v1898_v58 = vrot.slane %v4333_v5, 6  ;;  %v1902_v5 = vld [vmem:[#allocation3] sm:$0x4] }
 0x9c5   :  { %1817 = vmatmul.mubr.bf16.vlgmr.msra.gmra.mrb[40].mxu0 %v1783_v6  ;;  %3170 = vmatmul.mubr.bf16.vlgmr.msra.gmra.mrb[40].mxu1 %v1783_v6 }
 0x9c6   :  { %1910 = vmatpush1.bf16.msra.mxu0 %v4206_v27  ;;  %3174 = vmatpush3.bf16.msra.mxu1 %v4208_v28 }
 0x9c7   :  { %1911 = vmatprep.subr.bf16.mxu0 %v4210_v29  ;;  %3175 = vmatprep.subr.bf16.mxu1 %v3707_v0 }
 0x9c8   :  { %1941 = vmatprep.mubr.bf16.mxu0 %v3708_v1  ;;  %3189 = vmatprep.mubr.msk.bf16.mxu1 %vm3709_vm0, %v3707_v0 }
 0x9ca   :  { %1912 = vmatpush1.bf16.msra.mxu0 %v4213_v15  ;;  %3176 = vmatpush3.bf16.msra.mxu1 %v4216_v31 }
 0x9cb   :  { %1913 = vmatprep.subr.bf16.mxu0 %v4219_v32  ;;  %3177 = vmatprep.subr.bf16.mxu1 %v3707_v0 }
 0x9ce   :  { %1914 = vmatpush1.bf16.msra.mxu0 %v4226_v33  ;;  %3178 = vmatpush3.bf16.msra.mxu1 %v4229_v34 }
 0x9cf   :  { %1915 = vmatprep.subr.bf16.mxu0 %v4232_v35  ;;  %3179 = vmatprep.subr.bf16.mxu1 %v3707_v0 }
 0x9d2   :  { %1916 = vmatpush1.bf16.msra.mxu0 %v4236_v36  ;;  %3180 = vmatpush3.bf16.msra.mxu1 %v4239_v37 }
 0x9d3   :  { %1917 = vmatprep.subr.bf16.mxu0 %v4242_v38  ;;  %3181 = vmatprep.subr.bf16.mxu1 %v3707_v0 }
 0x9d6   :  { %1918 = vmatpush1.bf16.msra.mxu0 %v4246_v39  ;;  %3182 = vmatpush3.bf16.msra.mxu1 %v4249_v40 }
 0x9d7   :  { %1919 = vmatprep.subr.bf16.mxu0 %v4252_v41  ;;  %3183 = vmatprep.subr.bf16.mxu1 %v3707_v0 }
 0x9da   :  { %1920 = vmatpush1.bf16.msra.mxu0 %v4256_v42  ;;  %3184 = vmatpush3.bf16.msra.mxu1 %v4259_v43 }
 0x9db   :  { %1921 = vmatprep.subr.bf16.mxu0 %v4262_v44  ;;  %3185 = vmatprep.subr.bf16.mxu1 %v3707_v0 }
 0x9de   :  { %1922 = vmatpush1.bf16.msra.mxu0 %v4266_v46  ;;  %3186 = vmatpush3.bf16.msra.mxu1 %v4269_v47 }
 0x9df   :  { %1923 = vmatprep.subr.bf16.mxu0 %v4272_v48  ;;  %3187 = vmatprep.subr.bf16.mxu1 %v3707_v0 }
 0x9e2   :  { %1924 = vmatpush1.bf16.msra.mxu0 %v4276_v50  ;;  %3188 = vmatpush3.bf16.msra.mxu1 %v4279_v51 }
 0x9e3   :  { %2034 = vmatprep.subr.bf16.mxu0 %v4197_v49  ;;  %3193 = vmatprep.subr.bf16.mxu1 %v3707_v0 }
 0xa98   :  { %v1818_v25 = vpop.f32.mrb[40].mxu0  ;;  %v1859_v8 = vpop.f32.mrb[40].mxu1 }
 0xa99   :  { %v1867_v10 = vrot.slane %v1818_v25, 6  ;;  %v1820_v11 = vpop.f32.mrb[41].mxu0  ;;  %v3171_v12 = vpop.f32.mrb[41].mxu1  ;;  %v1887_v57 = vadd.f32 %v4330_v18, %v1859_v8  ;;  %v1903_v25 = vld [vmem:[#allocation3 + $0x8] sm:$0x4] }
 0xa9a   :  { %v1878_v16 = vrot.slane %v1820_v11, 6  ;;  %v1822_v45 = vpop.f32.mrb[42].mxu0  ;;  %v1862_v17 = vpop.f32.mrb[42].mxu1 }
 0xa9b   :  { %v1869_v61 = vadd.f32 %v1867_v10, %v1865_v9  ;;  %v1823_v26 = vpop.f32.mrb[43].mxu0  ;;  %v3172_v2 = vpop.f32.mrb[43].mxu1  ;;  %v1889_v23 = vrot.slane %v1887_v57, 6  ;;  %v1990_v10 = vunpack.c.l.bf16 %v1902_v5 }
 0xa9c   :  { %v1880_v30 = vadd.f32 %v1878_v16, %v1876_v13  ;;  %v2001_v16 = vunpack.c.l.bf16 %v1903_v25 }
 0xa9d   :  { %v2786_v52 = vmul.f32 -1.442695, %v1869_v61 }
 0xa9e   :  { %v2787_v53 = vmul.f32 -1.442695, %v1880_v30 }
 0xa9f   :  { %3488 = vpow2.f32 %v2786_v52 }
 0xaa0   :  { %3490 = vpow2.f32 %v2787_v53 }
 0xaa9   :  { %v3489_v54 = vpop.eup %3488 }
 0xaaa   :  { %v3491_v55 = vpop.eup %3490  ;;  %v1873_v56 = vadd.f32 1.0, %v3489_v54 }
 0xaab   :  { %v1884_v14 = vadd.f32 1.0, %v3491_v55 }
 0xaac   :  { %3492 = vrcp.f32 %v1873_v56 }
 0xaad   :  { %3494 = vrcp.f32 %v1884_v14 }
 0xab6   :  { %v3493_v60 = vpop.eup %3492 }
 0xab7   :  { %v3495_v62 = vpop.eup %3494  ;;  %v1891_v59 = vmul.f32 %v3493_v60, %v1889_v23  ;;  %v1904_v23 = vld [vmem:[#allocation3 + $0x10] sm:$0x4] }
 0xab8   :  { %v1900_v63 = vmul.f32 %v3495_v62, %v1898_v58  ;;  %v1895_v3 = vsub.f32 1.0, %v3495_v62 }
 0xab9   :  { %v1893_v24 = vadd.f32 %v1892_v19, %v1891_v59 }
 0xabb   :  { %3496 = vtanh.f32 %v1893_v24 }
 0xac5   :  { %v3497_v21 = vpop.eup %3496 }
 0xac6   :  { %v1896_v4 = vmul.f32 %v3497_v21, %v1895_v3 }
 0xac8   :  { %v4374_v6 = vadd.f32 %v1900_v63, %v1896_v4  ;;  %v2017_v63 = vunpack.c.l.bf16 %v1904_v23 }
 0xaca   :  { %v1905_v22 = vpack.c.bf16 %v4374_v6, %v4374_v6  ;;  %v2023_v62 = vrot.slane %v4374_v6, 6  ;;  %v2027_v6 = vld [vmem:[#allocation3] sm:$0x8] }
 0xacc   :  { %v1907_v7 = vrot.slane %v1905_v22, 1 }
 0xace   :  { %1942 = vmatmul.mubr.bf16.vlgmr.msra.gmra.mrb[44].mxu0 %v1907_v7  ;;  %3190 = vmatmul.mubr.bf16.vlgmr.msra.gmra.mrb[44].mxu1 %v1907_v7 }
 0xacf   :  { %2035 = vmatpush1.bf16.msra.mxu0 %v4206_v27  ;;  %3194 = vmatpush3.bf16.msra.mxu1 %v4208_v28 }
 0xad0   :  { %2036 = vmatprep.subr.bf16.mxu0 %v4210_v29  ;;  %3195 = vmatprep.subr.bf16.mxu1 %v3707_v0 }
 0xad1   :  { %2066 = vmatprep.mubr.bf16.mxu0 %v3708_v1  ;;  %3209 = vmatprep.mubr.msk.bf16.mxu1 %vm3709_vm0, %v3707_v0 }
 0xad3   :  { %2037 = vmatpush1.bf16.msra.mxu0 %v4213_v15  ;;  %3196 = vmatpush3.bf16.msra.mxu1 %v4216_v31 }
 0xad4   :  { %2038 = vmatprep.subr.bf16.mxu0 %v4219_v32  ;;  %3197 = vmatprep.subr.bf16.mxu1 %v3707_v0 }
 0xad7   :  { %2039 = vmatpush1.bf16.msra.mxu0 %v4226_v33  ;;  %3198 = vmatpush3.bf16.msra.mxu1 %v4229_v34 }
 0xad8   :  { %2040 = vmatprep.subr.bf16.mxu0 %v4232_v35  ;;  %3199 = vmatprep.subr.bf16.mxu1 %v3707_v0 }
 0xadb   :  { %2041 = vmatpush1.bf16.msra.mxu0 %v4236_v36  ;;  %3200 = vmatpush3.bf16.msra.mxu1 %v4239_v37 }
 0xadc   :  { %2042 = vmatprep.subr.bf16.mxu0 %v4242_v38  ;;  %3201 = vmatprep.subr.bf16.mxu1 %v3707_v0 }
 0xadf   :  { %2043 = vmatpush1.bf16.msra.mxu0 %v4246_v39  ;;  %3202 = vmatpush3.bf16.msra.mxu1 %v4249_v40 }
 0xae0   :  { %2044 = vmatprep.subr.bf16.mxu0 %v4252_v41  ;;  %3203 = vmatprep.subr.bf16.mxu1 %v3707_v0 }
 0xae3   :  { %2045 = vmatpush1.bf16.msra.mxu0 %v4256_v42  ;;  %3204 = vmatpush3.bf16.msra.mxu1 %v4259_v43 }
 0xae4   :  { %2046 = vmatprep.subr.bf16.mxu0 %v4262_v44  ;;  %3205 = vmatprep.subr.bf16.mxu1 %v3707_v0 }
 0xae7   :  { %2047 = vmatpush1.bf16.msra.mxu0 %v4266_v46  ;;  %3206 = vmatpush3.bf16.msra.mxu1 %v4269_v47 }
 0xae8   :  { %2048 = vmatprep.subr.bf16.mxu0 %v4272_v48  ;;  %3207 = vmatprep.subr.bf16.mxu1 %v3707_v0 }
 0xaeb   :  { %2049 = vmatpush1.bf16.msra.mxu0 %v4276_v50  ;;  %3208 = vmatpush3.bf16.msra.mxu1 %v4279_v51 }
 0xaec   :  { %2159 = vmatprep.subr.bf16.mxu0 %v4197_v49  ;;  %3213 = vmatprep.subr.bf16.mxu1 %v3707_v0 }
 0xba1   :  { %v1943_v8 = vpop.f32.mrb[44].mxu0  ;;  %v1984_v9 = vpop.f32.mrb[44].mxu1 }
 0xba2   :  { %v1992_v11 = vrot.slane %v1943_v8, 4  ;;  %v1945_v12 = vpop.f32.mrb[45].mxu0  ;;  %v3191_v13 = vpop.f32.mrb[45].mxu1  ;;  %v2012_v20 = vadd.f32 %v4330_v18, %v1984_v9  ;;  %v2028_v8 = vld [vmem:[#allocation3 + $0x8] sm:$0x8] }
 0xba3   :  { %v2003_v45 = vrot.slane %v1945_v12, 4  ;;  %v1947_v17 = vpop.f32.mrb[46].mxu0  ;;  %v1987_v61 = vpop.f32.mrb[46].mxu1 }
 0xba4   :  { %v1994_v26 = vadd.f32 %v1992_v11, %v1990_v10  ;;  %v1948_v2 = vpop.f32.mrb[47].mxu0  ;;  %v3192_v30 = vpop.f32.mrb[47].mxu1  ;;  %v2014_v60 = vrot.slane %v2012_v20, 4  ;;  %v2115_v11 = vunpack.c.l.bf16 %v2027_v6 }
 0xba5   :  { %v2005_v52 = vadd.f32 %v2003_v45, %v2001_v16  ;;  %v2126_v45 = vunpack.c.l.bf16 %v2028_v8 }
 0xba6   :  { %v2788_v53 = vmul.f32 -1.442695, %v1994_v26 }
 0xba7   :  { %v2789_v54 = vmul.f32 -1.442695, %v2005_v52 }
 0xba8   :  { %3498 = vpow2.f32 %v2788_v53 }
 0xba9   :  { %3500 = vpow2.f32 %v2789_v54 }
 0xbb2   :  { %v3499_v55 = vpop.eup %3498 }
 0xbb3   :  { %v3501_v56 = vpop.eup %3500  ;;  %v1998_v14 = vadd.f32 1.0, %v3499_v55 }
 0xbb4   :  { %v2009_v57 = vadd.f32 1.0, %v3501_v56 }
 0xbb5   :  { %3502 = vrcp.f32 %v1998_v14 }
 0xbb6   :  { %3504 = vrcp.f32 %v2009_v57 }
 0xbbf   :  { %v3503_v58 = vpop.eup %3502 }
 0xbc0   :  { %v3505_v59 = vpop.eup %3504  ;;  %v2016_v19 = vmul.f32 %v3503_v58, %v2014_v60  ;;  %v2029_v60 = vld [vmem:[#allocation3 + $0x10] sm:$0x8] }
 0xbc1   :  { %v2025_v24 = vmul.f32 %v3505_v59, %v2023_v62  ;;  %v2020_v21 = vsub.f32 1.0, %v3505_v59 }
 0xbc2   :  { %v2018_v3 = vadd.f32 %v2017_v63, %v2016_v19 }
 0xbc4   :  { %3506 = vtanh.f32 %v2018_v3 }
 0xbce   :  { %v3507_v4 = vpop.eup %3506 }
 0xbcf   :  { %v2021_v22 = vmul.f32 %v3507_v4, %v2020_v21 }
 0xbd1   :  { %v4415_v7 = vadd.f32 %v2025_v24, %v2021_v22  ;;  %v2142_v24 = vunpack.c.l.bf16 %v2029_v60 }
 0xbd3   :  { %v2030_v5 = vpack.c.bf16 %v4415_v7, %v4415_v7  ;;  %v2148_v59 = vrot.slane %v4415_v7, 6  ;;  %v2152_v7 = vld [vmem:[#allocation3] sm:$0x10] }
 0xbd5   :  { %v2032_v25 = vrot.slane %v2030_v5, 2 }
 0xbd7   :  { %2067 = vmatmul.mubr.bf16.vlgmr.msra.gmra.mrb[48].mxu0 %v2032_v25  ;;  %3210 = vmatmul.mubr.bf16.vlgmr.msra.gmra.mrb[48].mxu1 %v2032_v25 }
 0xbd8   :  { %2160 = vmatpush1.bf16.msra.mxu0 %v4206_v27  ;;  %3214 = vmatpush3.bf16.msra.mxu1 %v4208_v28 }
 0xbd9   :  { %2161 = vmatprep.subr.bf16.mxu0 %v4210_v29  ;;  %3215 = vmatprep.subr.bf16.mxu1 %v3707_v0 }
 0xbda   :  { %2191 = vmatprep.mubr.bf16.mxu0 %v3708_v1  ;;  %3229 = vmatprep.mubr.msk.bf16.mxu1 %vm3709_vm0, %v3707_v0 }
 0xbdc   :  { %2162 = vmatpush1.bf16.msra.mxu0 %v4213_v15  ;;  %3216 = vmatpush3.bf16.msra.mxu1 %v4216_v31 }
 0xbdd   :  { %2163 = vmatprep.subr.bf16.mxu0 %v4219_v32  ;;  %3217 = vmatprep.subr.bf16.mxu1 %v3707_v0 }
 0xbe0   :  { %2164 = vmatpush1.bf16.msra.mxu0 %v4226_v33  ;;  %3218 = vmatpush3.bf16.msra.mxu1 %v4229_v34 }
 0xbe1   :  { %2165 = vmatprep.subr.bf16.mxu0 %v4232_v35  ;;  %3219 = vmatprep.subr.bf16.mxu1 %v3707_v0 }
 0xbe4   :  { %2166 = vmatpush1.bf16.msra.mxu0 %v4236_v36  ;;  %3220 = vmatpush3.bf16.msra.mxu1 %v4239_v37 }
 0xbe5   :  { %2167 = vmatprep.subr.bf16.mxu0 %v4242_v38  ;;  %3221 = vmatprep.subr.bf16.mxu1 %v3707_v0 }
 0xbe8   :  { %2168 = vmatpush1.bf16.msra.mxu0 %v4246_v39  ;;  %3222 = vmatpush3.bf16.msra.mxu1 %v4249_v40 }
 0xbe9   :  { %2169 = vmatprep.subr.bf16.mxu0 %v4252_v41  ;;  %3223 = vmatprep.subr.bf16.mxu1 %v3707_v0 }
 0xbec   :  { %2170 = vmatpush1.bf16.msra.mxu0 %v4256_v42  ;;  %3224 = vmatpush3.bf16.msra.mxu1 %v4259_v43 }
 0xbed   :  { %2171 = vmatprep.subr.bf16.mxu0 %v4262_v44  ;;  %3225 = vmatprep.subr.bf16.mxu1 %v3707_v0 }
 0xbf0   :  { %2172 = vmatpush1.bf16.msra.mxu0 %v4266_v46  ;;  %3226 = vmatpush3.bf16.msra.mxu1 %v4269_v47 }
 0xbf1   :  { %2173 = vmatprep.subr.bf16.mxu0 %v4272_v48  ;;  %3227 = vmatprep.subr.bf16.mxu1 %v3707_v0 }
 0xbf4   :  { %2174 = vmatpush1.bf16.msra.mxu0 %v4276_v50  ;;  %3228 = vmatpush3.bf16.msra.mxu1 %v4279_v51 }
 0xbf5   :  { %2281 = vmatprep.subr.bf16.mxu0 %v4197_v49  ;;  %3233 = vmatprep.subr.bf16.mxu1 %v3707_v0 }
 0xcaa   :  { %v2068_v9 = vpop.f32.mrb[48].mxu0  ;;  %v2109_v10 = vpop.f32.mrb[48].mxu1 }
 0xcab   :  { %v2117_v12 = vrot.slane %v2068_v9, 2  ;;  %v2070_v13 = vpop.f32.mrb[49].mxu0  ;;  %v3211_v16 = vpop.f32.mrb[49].mxu1  ;;  %v2137_v23 = vadd.f32 %v4330_v18, %v2109_v10  ;;  %v2153_v9 = vld [vmem:[#allocation3 + $0x8] sm:$0x10]  ;;  %v2241_v10 = vrot.slane %v2152_v7, 4 }
 0xcac   :  { %v2128_v17 = vrot.slane %v2070_v13, 2  ;;  %v2072_v61 = vpop.f32.mrb[50].mxu0  ;;  %v2112_v26 = vpop.f32.mrb[50].mxu1 }
 0xcad   :  { %v2119_v2 = vadd.f32 %v2117_v12, %v2115_v11  ;;  %v2073_v30 = vpop.f32.mrb[51].mxu0  ;;  %v3212_v52 = vpop.f32.mrb[51].mxu1  ;;  %v2139_v58 = vrot.slane %v2137_v23, 2  ;;  %v2252_v11 = vrot.slane %v2153_v9, 4  ;;  %v2243_v12 = vunpack.c.l.bf16 %v2241_v10  ;;  %v2154_v23 = vld [vmem:[#allocation3 + $0x10] sm:$0x10] }
 0xcae   :  { %v2130_v53 = vadd.f32 %v2128_v17, %v2126_v45  ;;  %v2265_v60 = vrot.slane %v2154_v23, 4  ;;  %v2279_v9 = vld [vmem:[#allocation3 + $0x10] sm:$0x20]  ;;  %v3588_v23 = vld [vmem:[#allocation7 + $0xe0] ss:$12 sps:$4 sm:$0xff]  }
 0xcaf   :  { %v2790_v54 = vmul.f32 -1.442695, %v2119_v2  ;;  %v2254_v45 = vunpack.c.l.bf16 %v2252_v11  ;;  %v2396_v11 = vrot.slane %v2279_v9, 4 }
 0xcb0   :  { %v2791_v55 = vmul.f32 -1.442695, %v2130_v53 }
 0xcb1   :  { %3508 = vpow2.f32 %v2790_v54 }
 0xcb2   :  { %3510 = vpow2.f32 %v2791_v55 }
 0xcbb   :  { %v3509_v56 = vpop.eup %3508 }
 0xcbc   :  { %v3511_v14 = vpop.eup %3510  ;;  %v2123_v57 = vadd.f32 1.0, %v3509_v56 }
 0xcbd   :  { %v2134_v20 = vadd.f32 1.0, %v3511_v14 }
 0xcbe   :  { %3512 = vrcp.f32 %v2123_v57 }
 0xcbf   :  { %3514 = vrcp.f32 %v2134_v20 }
 0xcc8   :  { %v3513_v62 = vpop.eup %3512 }
 0xcc9   :  { %v3515_v19 = vpop.eup %3514  ;;  %v2141_v63 = vmul.f32 %v3513_v62, %v2139_v58 }
 0xcca   :  { %v2150_v3 = vmul.f32 %v3515_v19, %v2148_v59  ;;  %v2145_v4 = vsub.f32 1.0, %v3515_v19 }
 0xccb   :  { %v2143_v21 = vadd.f32 %v2142_v24, %v2141_v63  ;;  %v2267_v24 = vunpack.c.l.bf16 %v2265_v60  ;;  %v3589_v60 = vld [vmem:[#allocation7 + $0xf4] ss:$12 sps:$4 sm:$0xff]  }
 0xccd   :  { %3516 = vtanh.f32 %v2143_v21 }
 0xcd7   :  { %v3517_v22 = vpop.eup %3516 }
 0xcd8   :  { %v2146_v5 = vmul.f32 %v3517_v22, %v2145_v4 }
 0xcda   :  { %v4456_v25 = vadd.f32 %v2150_v3, %v2146_v5 }
 0xcdc   :  { %v2155_v6 = vpack.c.bf16 %v4456_v25, %v4456_v25  ;;  %v2273_v59 = vrot.slane %v4456_v25, 6 }
 0xcde   :  { %v2157_v8 = vrot.slane %v2155_v6, 3 }
 0xce0   :  { %2192 = vmatmul.mubr.bf16.vlgmr.msra.gmra.mrb[52].mxu0 %v2157_v8  ;;  %3230 = vmatmul.mubr.bf16.vlgmr.msra.gmra.mrb[52].mxu1 %v2157_v8 }
 0xce1   :  { %2282 = vmatpush1.bf16.msra.mxu0 %v4206_v27  ;;  %3234 = vmatpush3.bf16.msra.mxu1 %v4208_v28 }
 0xce2   :  { %2283 = vmatprep.subr.bf16.mxu0 %v4210_v29  ;;  %3235 = vmatprep.subr.bf16.mxu1 %v3707_v0 }
 0xce3   :  { %2313 = vmatprep.mubr.bf16.mxu0 %v3708_v1  ;;  %3249 = vmatprep.mubr.msk.bf16.mxu1 %vm3709_vm0, %v3707_v0 }
 0xce5   :  { %2284 = vmatpush1.bf16.msra.mxu0 %v4213_v15  ;;  %3236 = vmatpush3.bf16.msra.mxu1 %v4216_v31 }
 0xce6   :  { %2285 = vmatprep.subr.bf16.mxu0 %v4219_v32  ;;  %3237 = vmatprep.subr.bf16.mxu1 %v3707_v0 }
 0xce9   :  { %2286 = vmatpush1.bf16.msra.mxu0 %v4226_v33  ;;  %3238 = vmatpush3.bf16.msra.mxu1 %v4229_v34 }
 0xcea   :  { %2287 = vmatprep.subr.bf16.mxu0 %v4232_v35  ;;  %3239 = vmatprep.subr.bf16.mxu1 %v3707_v0 }
 0xced   :  { %2288 = vmatpush1.bf16.msra.mxu0 %v4236_v36  ;;  %3240 = vmatpush3.bf16.msra.mxu1 %v4239_v37 }
 0xcee   :  { %2289 = vmatprep.subr.bf16.mxu0 %v4242_v38  ;;  %3241 = vmatprep.subr.bf16.mxu1 %v3707_v0 }
 0xcf1   :  { %2290 = vmatpush1.bf16.msra.mxu0 %v4246_v39  ;;  %3242 = vmatpush3.bf16.msra.mxu1 %v4249_v40 }
 0xcf2   :  { %2291 = vmatprep.subr.bf16.mxu0 %v4252_v41  ;;  %3243 = vmatprep.subr.bf16.mxu1 %v3707_v0 }
 0xcf5   :  { %2292 = vmatpush1.bf16.msra.mxu0 %v4256_v42  ;;  %3244 = vmatpush3.bf16.msra.mxu1 %v4259_v43 }
 0xcf6   :  { %2293 = vmatprep.subr.bf16.mxu0 %v4262_v44  ;;  %3245 = vmatprep.subr.bf16.mxu1 %v3707_v0 }
 0xcf9   :  { %2294 = vmatpush1.bf16.msra.mxu0 %v4266_v46  ;;  %3246 = vmatpush3.bf16.msra.mxu1 %v4269_v47 }
 0xcfa   :  { %2295 = vmatprep.subr.bf16.mxu0 %v4272_v48  ;;  %3247 = vmatprep.subr.bf16.mxu1 %v3707_v0 }
 0xcfd   :  { %2296 = vmatpush1.bf16.msra.mxu0 %v4276_v50  ;;  %3248 = vmatpush3.bf16.msra.mxu1 %v4279_v51 }
 0xcfe   :  { %2415 = vmatprep.subr.bf16.mxu0 %v4197_v49  ;;  %3253 = vmatprep.subr.bf16.mxu1 %v3707_v0 }
 0xdb3   :  { %v2193_v13 = vpop.f32.mrb[52].mxu0  ;;  %v2234_v16 = vpop.f32.mrb[52].mxu1 }
 0xdb4   :  { %v2244_v17 = vadd.f32 %v2243_v12, %v2193_v13  ;;  %v2195_v61 = vpop.f32.mrb[53].mxu0  ;;  %v3231_v26 = vpop.f32.mrb[53].mxu1  ;;  %v2262_v58 = vadd.f32 %v4330_v18, %v2234_v16 }
 0xdb5   :  { %v2255_v2 = vadd.f32 %v2254_v45, %v2195_v61  ;;  %v2197_v30 = vpop.f32.mrb[54].mxu0  ;;  %v2237_v52 = vpop.f32.mrb[54].mxu1  ;;  %v2398_v61 = vunpack.c.l.bf16 %v2396_v11 }
 0xdb6   :  { %v2792_v53 = vmul.f32 -1.442695, %v2244_v17  ;;  %v2198_v54 = vpop.f32.mrb[55].mxu0  ;;  %v3232_v55 = vpop.f32.mrb[55].mxu1 }
 0xdb7   :  { %v2793_v49 = vmul.f32 -1.442695, %v2255_v2 }
 0xdb8   :  { %3518 = vpow2.f32 %v2792_v53 }
 0xdb9   :  { %3520 = vpow2.f32 %v2793_v49 }
 0xdc2   :  { %v3519_v56 = vpop.eup %3518 }
 0xdc3   :  { %v3521_v14 = vpop.eup %3520  ;;  %v2248_v57 = vadd.f32 1.0, %v3519_v56  ;;  %v3584_v56 = vld [vmem:[#allocation7 + $0xc0] ss:$12 sps:$4 sm:$0xff]  }
 0xdc4   :  { %v2259_v20 = vadd.f32 1.0, %v3521_v14  ;;  %v3585_v14 = vld [vmem:[#allocation7 + $0xc8] ss:$12 sps:$4 sm:$0xff]  }
 0xdc5   :  { %3522 = vrcp.f32 %v2248_v57  ;;  %v3586_v57 = vld [vmem:[#allocation7 + $0xdc] ss:$12 sps:$4 sm:$0xff]  }
 0xdc6   :  { %3524 = vrcp.f32 %v2259_v20  ;;  %v3587_v20 = vld [vmem:[#allocation7 + $0xd8] ss:$12 sps:$4 sm:$0xff]  }
 0xdcf   :  { %v3523_v62 = vpop.eup %3522 }
 0xdd0   :  { %v3525_v19 = vpop.eup %3524  ;;  %v2263_v63 = vmul.f32 %v3523_v62, %v2262_v58  ;;  %v3590_v58 = vld [vmem:[#allocation7 + $0xf0] ss:$12 sps:$4 sm:$0xff]   ;;  %v3591_v62 = vld [vmem:[#allocation7 + $0xf8] ss:$12 sps:$4 sm:$0xff]  }
 0xdd1   :  { %v2275_v3 = vmul.f32 %v3525_v19, %v2273_v59  ;;  %v2270_v4 = vsub.f32 1.0, %v3525_v19  ;;  %v3592_v59 = vld [vmem:[#allocation7 + $0x10c] ss:$12 sps:$4 sm:$0xff]   ;;  %v3594_v19 = vld [vmem:[#allocation7 + $0x110] ss:$12 sps:$4 sm:$0xff]  }
 0xdd2   :  { %v2268_v21 = vadd.f32 %v2267_v24, %v2263_v63  ;;  %v3595_v63 = vld [vmem:[#allocation7 + $0x124] ss:$12 sps:$4 sm:$0xff]   ;;  %v3596_v24 = vld [vmem:[#allocation7 + $0x120] ss:$12 sps:$4 sm:$0xff]  }
 0xdd4   :  { %3526 = vtanh.f32 %v2268_v21  ;;  %v3598_v21 = vld [vmem:[#allocation7 + $0x13c] ss:$12 sps:$4 sm:$0xff]  }
 0xdde   :  { %v3527_v22 = vpop.eup %3526 }
 0xddf   :  { %v2271_v5 = vmul.f32 %v3527_v22, %v2270_v4  ;;  %v3599_v4 = vld [vmem:[#allocation7 + $0x138] ss:$12 sps:$4 sm:$0xff]   ;;  %v3600_v22 = vld [vmem:[#allocation7 + $0x140] ss:$12 sps:$4 sm:$0xff]  }
 0xde1   :  { %v4497_v6 = vadd.f32 %v2275_v3, %v2271_v5  ;;  %v3597_v3 = vld [vmem:[#allocation7 + $0x128] ss:$12 sps:$4 sm:$0xff]  }
 0xde2   :  { %v3601_v5 = vld [vmem:[#allocation7 + $0x154] ss:$12 sps:$4 sm:$0xff]  }
 0xde3   :  { %v2280_v8 = vpack.c.bf16 %v4497_v6, %v4497_v6  ;;  %v2404_v16 = vrot.slane %v4497_v6, 6  ;;  %v3602_v6 = vld [vmem:[#allocation7 + $0x150] ss:$12 sps:$4 sm:$0xff]  }
 0xde5   :  { %2314 = vmatmul.mubr.bf16.vlgmr.msra.gmra.mrb[56].mxu0 %v2280_v8  ;;  %3250 = vmatmul.mubr.bf16.vlgmr.msra.gmra.mrb[56].mxu1 %v2280_v8  ;;  %v3603_v8 = vld [vmem:[#allocation7 + $0x158] ss:$12 sps:$4 sm:$0xff]  }
 0xde6   :  { %2416 = vmatpush1.bf16.msra.mxu0 %v4206_v27  ;;  %3254 = vmatpush3.bf16.msra.mxu1 %v4208_v28  ;;  %v3583_v27 = vld [vmem:[#allocation7 + $0xc4] ss:$12 sps:$4 sm:$0xff]   ;;  %v2277_v28 = vld [vmem:[#allocation3] sm:$0x20] }
 0xde7   :  { %2417 = vmatprep.subr.bf16.mxu0 %v4210_v29  ;;  %3255 = vmatprep.subr.bf16.mxu1 %v3707_v0  ;;  %v2278_v29 = vld [vmem:[#allocation3 + $0x8] sm:$0x20] }
 0xde8   :  { %2447 = vmatprep.mubr.bf16.mxu0 %v3708_v1  ;;  %3269 = vmatprep.mubr.msk.bf16.mxu1 %vm3709_vm0, %v3707_v0 }
 0xdea   :  { %2418 = vmatpush1.bf16.msra.mxu0 %v4213_v15  ;;  %3256 = vmatpush3.bf16.msra.mxu1 %v4216_v31  ;;  %v2363_v15 = vrot.slane %v2277_v28, 4  ;;  %v2377_v31 = vrot.slane %v2278_v29, 4  ;;  %v3605_v28 = vld [vmem:[#allocation7 + $0x168] ss:$12 sps:$4 sm:$0xff]   ;;  %v3606_v29 = vld [vmem:[#allocation7 + $0x170] ss:$12 sps:$4 sm:$0xff]  }
 0xdeb   :  { %2419 = vmatprep.subr.bf16.mxu0 %v4219_v32  ;;  %3257 = vmatprep.subr.bf16.mxu1 %v3707_v0 }
 0xdee   :  { %2420 = vmatpush1.bf16.msra.mxu0 %v4226_v33  ;;  %3258 = vmatpush3.bf16.msra.mxu1 %v4229_v34  ;;  %v2365_v34 = vunpack.c.l.bf16 %v2363_v15  ;;  %v2408_v15 = vld [vmem:[#allocation3] sm:$0x40] }
 0xdef   :  { %2421 = vmatprep.subr.bf16.mxu0 %v4232_v35  ;;  %3259 = vmatprep.subr.bf16.mxu1 %v3707_v0 }
 0xdf2   :  { %2422 = vmatpush1.bf16.msra.mxu0 %v4236_v36  ;;  %3260 = vmatpush3.bf16.msra.mxu1 %v4239_v37 }
 0xdf3   :  { %2423 = vmatprep.subr.bf16.mxu0 %v4242_v38  ;;  %3261 = vmatprep.subr.bf16.mxu1 %v3707_v0  ;;  %v2379_v38 = vunpack.c.l.bf16 %v2377_v31  ;;  %v2409_v31 = vld [vmem:[#allocation3 + $0x8] sm:$0x40] }
 0xdf6   :  { %2424 = vmatpush1.bf16.msra.mxu0 %v4246_v39  ;;  %3262 = vmatpush3.bf16.msra.mxu1 %v4249_v40 }
 0xdf7   :  { %2425 = vmatprep.subr.bf16.mxu0 %v4252_v41  ;;  %3263 = vmatprep.subr.bf16.mxu1 %v3707_v0 }
 0xdfa   :  { %2426 = vmatpush1.bf16.msra.mxu0 %v4256_v42  ;;  %3264 = vmatpush3.bf16.msra.mxu1 %v4259_v43 }
 0xdfb   :  { %2427 = vmatprep.subr.bf16.mxu0 %v4262_v44  ;;  %3265 = vmatprep.subr.bf16.mxu1 %v3707_v0 }
 0xdfe   :  { %2428 = vmatpush1.bf16.msra.mxu0 %v4266_v46  ;;  %3266 = vmatpush3.bf16.msra.mxu1 %v4269_v47 }
 0xdff   :  { %2429 = vmatprep.subr.bf16.mxu0 %v4272_v48  ;;  %3267 = vmatprep.subr.bf16.mxu1 %v3707_v0 }
 0xe02   :  { %2430 = vmatpush1.bf16.msra.mxu0 %v4276_v50  ;;  %3268 = vmatpush3.bf16.msra.mxu1 %v4279_v51 }
 0xe03   :  { %2549 = vmatprep.subr.bf16.mxu0 %v3583_v27  ;;  %3273 = vmatprep.subr.bf16.mxu1 %v3707_v0  ;;  %v3604_v27 = vld [vmem:[#allocation7 + $0x16c] ss:$12 sps:$4 sm:$0xff]  }
 0xeb8   :  { %v2315_v32 = vpop.f32.mrb[56].mxu0  ;;  %v2356_v33 = vpop.f32.mrb[56].mxu1 }
 0xeb9   :  { %v2367_v35 = vrot.slane %v2315_v32, 6  ;;  %v2317_v36 = vpop.f32.mrb[57].mxu0  ;;  %v3251_v37 = vpop.f32.mrb[57].mxu1  ;;  %v2390_v10 = vadd.f32 %v4330_v18, %v2356_v33  ;;  %v2497_v32 = vrot.slane %v2408_v15, 4  ;;  %v2511_v33 = vrot.slane %v2409_v31, 4 }
 0xeba   :  { %v2381_v39 = vrot.slane %v2317_v36, 6  ;;  %v2319_v40 = vpop.f32.mrb[58].mxu0  ;;  %v2359_v41 = vpop.f32.mrb[58].mxu1  ;;  %v2544_v31 = vld [vmem:[#allocation3 + $0x10] sm:$0x80] }
 0xebb   :  { %v2369_v42 = vadd.f32 %v2367_v35, %v2365_v34  ;;  %v2320_v43 = vpop.f32.mrb[59].mxu0  ;;  %v3252_v44 = vpop.f32.mrb[59].mxu1  ;;  %v2392_v12 = vrot.slane %v2390_v10, 6  ;;  %v2499_v36 = vunpack.c.l.bf16 %v2497_v32  ;;  %v2513_v40 = vunpack.c.l.bf16 %v2511_v33  ;;  %v2410_v10 = vld [vmem:[#allocation3 + $0x10] sm:$0x40] }
 0xebc   :  { %v2383_v46 = vadd.f32 %v2381_v39, %v2379_v38  ;;  %v3607_v32 = vld [vmem:[%s4570_s2 + $0x1] ss:$0 sm:$0xff]  ;;  %s3674_s2 = scalar_lea.vmem %s2684_s13, 32 }
 0xebd   :  { %v2794_v47 = vmul.f32 -1.442695, %v2369_v42  ;;  %p3675_p10 = scmp.ne.s32.totalorder %s2684_s13, %s3674_s2  ;;  %p3680_p12 = scmp.lt.s32.totalorder %s3674_s2, %s3674_s2 }
 0xebe   :  { %v2795_v48 = vmul.f32 -1.442695, %v2383_v46 }
 0xebf   :  { %3528 = vpow2.f32 %v2794_v47  ;;  %p3681_p13 = por %p3680_p12, %p3679_p11 }
 0xec0   :  { %3530 = vpow2.f32 %v2795_v48 }
 0xec1   :  { %p3682_p0 = pnand %p3681_p13, %p3675_p10 }
 0xec9   :  { %v3529_v50 = vpop.eup %3528 }
 0xeca   :  { %v3531_v51 = vpop.eup %3530  ;;  %v2373_v25 = vadd.f32 1.0, %v3529_v50 }
 0xecb   :  { %v2387_v7 = vadd.f32 1.0, %v3531_v51 }
 0xecc   :  { %3532 = vrcp.f32 %v2373_v25 }
 0xecd   :  { %3534 = vrcp.f32 %v2387_v7 }
 0xed6   :  { %v3533_v13 = vpop.eup %3532 }
 0xed7   :  { %v3535_v45 = vpop.eup %3534  ;;  %v2394_v17 = vmul.f32 %v3533_v13, %v2392_v12  ;;  %v2530_v12 = vrot.slane %v2410_v10, 4 }
 0xed8   :  { %v2406_v26 = vmul.f32 %v3535_v45, %v2404_v16  ;;  %v2401_v30 = vsub.f32 1.0, %v3535_v45 }
 0xed9   :  { %v2399_v2 = vadd.f32 %v2398_v61, %v2394_v17 }
 0xedb   :  { %3536 = vtanh.f32 %v2399_v2 }
 0xee5   :  { %v3537_v52 = vpop.eup %3536 }
 0xee6   :  { %v2402_v53 = vmul.f32 %v3537_v52, %v2401_v30 }
 0xee8   :  { %v4537_v54 = vadd.f32 %v2406_v26, %v2402_v53  ;;  %v2532_v26 = vunpack.c.l.bf16 %v2530_v12 }
 0xeea   :  { %v2411_v55 = vpack.c.bf16 %v4537_v54, %v4537_v54  ;;  %v2538_v45 = vrot.slane %v4537_v54, 6 }
 0xeec   :  { %v2413_v49 = vrot.slane %v2411_v55, 1 }
 0xeee   :  { %2448 = vmatmul.mubr.bf16.vlgmr.msra.gmra.mrb[60].mxu0 %v2413_v49  ;;  %3270 = vmatmul.mubr.bf16.vlgmr.msra.gmra.mrb[60].mxu1 %v2413_v49 }
 0xeef   :  { %2550 = vmatpush1.bf16.msra.mxu0 %v3584_v56  ;;  %3274 = vmatpush3.bf16.msra.mxu1 %v3585_v14 }
 0xef0   :  { %2551 = vmatprep.subr.bf16.mxu0 %v3586_v57  ;;  %3275 = vmatprep.subr.bf16.mxu1 %v3707_v0  ;;  %v2543_v57 = vld [vmem:[#allocation3 + $0x8] sm:$0x80] }
 0xef1   :  { %2581 = vmatprep.mubr.bf16.mxu0 %v3708_v1  ;;  %3289 = vmatprep.mubr.msk.bf16.mxu1 %vm3709_vm0, %v3707_v0  ;;  %v3593_v1 = vld [vmem:[#allocation7 + $0x108] ss:$12 sps:$4 sm:$0xff]  }
 0xef3   :  { %2552 = vmatpush1.bf16.msra.mxu0 %v3587_v20  ;;  %3276 = vmatpush3.bf16.msra.mxu1 %v3588_v23  ;;  %v2645_v23 = vrot.slane %v2543_v57, 4 }
 0xef4   :  { %2553 = vmatprep.subr.bf16.mxu0 %v3589_v60  ;;  %3277 = vmatprep.subr.bf16.mxu1 %v3707_v0 }
 0xef7   :  { %2554 = vmatpush1.bf16.msra.mxu0 %v3590_v58  ;;  %3278 = vmatpush3.bf16.msra.mxu1 %v3591_v62 }
 0xef8   :  { %2555 = vmatprep.subr.bf16.mxu0 %v3592_v59  ;;  %3279 = vmatprep.subr.bf16.mxu1 %v3707_v0 }
 0xefb   :  { %2556 = vmatpush1.bf16.msra.mxu0 %v3593_v1  ;;  %3280 = vmatpush3.bf16.msra.mxu1 %v3594_v19  ;;  %v2647_v19 = vunpack.c.l.bf16 %v2645_v23 }
 0xefc   :  { %2557 = vmatprep.subr.bf16.mxu0 %v3595_v63  ;;  %3281 = vmatprep.subr.bf16.mxu1 %v3707_v0 }
 0xeff   :  { %2558 = vmatpush1.bf16.msra.mxu0 %v3596_v24  ;;  %3282 = vmatpush3.bf16.msra.mxu1 %v3597_v3 }
 0xf00   :  { %2559 = vmatprep.subr.bf16.mxu0 %v3598_v21  ;;  %3283 = vmatprep.subr.bf16.mxu1 %v3707_v0 }
 0xf03   :  { %2560 = vmatpush1.bf16.msra.mxu0 %v3599_v4  ;;  %3284 = vmatpush3.bf16.msra.mxu1 %v3600_v22 }
 0xf04   :  { %2561 = vmatprep.subr.bf16.mxu0 %v3601_v5  ;;  %3285 = vmatprep.subr.bf16.mxu1 %v3707_v0 }
 0xf07   :  { %2562 = vmatpush1.bf16.msra.mxu0 %v3602_v6  ;;  %3286 = vmatpush3.bf16.msra.mxu1 %v3603_v8 }
 0xf08   :  { %2563 = vmatprep.subr.bf16.mxu0 %v3604_v27  ;;  %3287 = vmatprep.subr.bf16.mxu1 %v3707_v0 }
 0xf0b   :  { %2564 = vmatpush1.bf16.msra.mxu0 %v3605_v28  ;;  %3288 = vmatpush3.bf16.msra.mxu1 %v3606_v29 }
 0xfc1   :  { %v2449_v34 = vpop.f32.mrb[60].mxu0  ;;  %v2490_v35 = vpop.f32.mrb[60].mxu1 }
 0xfc2   :  { %v2501_v37 = vrot.slane %v2449_v34, 4  ;;  %v2451_v38 = vpop.f32.mrb[61].mxu0  ;;  %v3271_v39 = vpop.f32.mrb[61].mxu1  ;;  %v2524_v11 = vadd.f32 %v4330_v18, %v2490_v35  ;;  %v2542_v18 = vld [vmem:[#allocation3] sm:$0x80]  ;;  %v2664_v34 = vrot.slane %v2544_v31, 4 }
 0xfc3   :  { %v2515_v41 = vrot.slane %v2451_v38, 4  ;;  %v2453_v42 = vpop.f32.mrb[62].mxu0  ;;  %v2493_v43 = vpop.f32.mrb[62].mxu1  ;;  %v2631_v20 = vrot.slane %v2542_v18, 4 }
 0xfc4   :  { %v2503_v44 = vadd.f32 %v2501_v37, %v2499_v36  ;;  %v2454_v0 = vpop.f32.mrb[63].mxu0  ;;  %v3272_v46 = vpop.f32.mrb[63].mxu1  ;;  %v2526_v13 = vrot.slane %v2524_v11, 4 }
 0xfc5   :  { %v2517_v47 = vadd.f32 %v2515_v41, %v2513_v40  ;;  %v2633_v58 = vunpack.c.l.bf16 %v2631_v20  ;;  %v2666_v40 = vunpack.c.l.bf16 %v2664_v34 }
 0xfc6   :  { %v2796_v48 = vmul.f32 -1.442695, %v2503_v44 }
 0xfc7   :  { %v2797_v50 = vmul.f32 -1.442695, %v2517_v47 }
 0xfc8   :  { %3538 = vpow2.f32 %v2796_v48 }
 0xfc9   :  { %3540 = vpow2.f32 %v2797_v50 }
 0xfd2   :  { %v3539_v51 = vpop.eup %3538 }
 0xfd3   :  { %v3541_v25 = vpop.eup %3540  ;;  %v2507_v7 = vadd.f32 1.0, %v3539_v51 }
 0xfd4   :  { %v2521_v9 = vadd.f32 1.0, %v3541_v25 }
 0xfd5   :  { %3542 = vrcp.f32 %v2507_v7 }
 0xfd6   :  { %3544 = vrcp.f32 %v2521_v9 }
 0xfdf   :  { %v3543_v16 = vpop.eup %3542 }
 0xfe0   :  { %v3545_v17 = vpop.eup %3544  ;;  %v2528_v61 = vmul.f32 %v3543_v16, %v2526_v13 }
 0xfe1   :  { %v2540_v2 = vmul.f32 %v3545_v17, %v2538_v45  ;;  %v2535_v52 = vsub.f32 1.0, %v3545_v17 }
 0xfe2   :  { %v2533_v30 = vadd.f32 %v2532_v26, %v2528_v61 }
 0xfe4   :  { %3546 = vtanh.f32 %v2533_v30 }
 0xfee   :  { %v3547_v53 = vpop.eup %3546 }
 0xfef   :  { %v2536_v55 = vmul.f32 %v3547_v53, %v2535_v52 }
 0xff1   :  { %v2541_v49 = vadd.f32 %v2540_v2, %v2536_v55 }
 0xff3   :  { %v2545_v56 = vpack.c.bf16 %v2541_v49, %v2541_v49  ;;  %v2672_v37 = vrot.slane %v2541_v49, 6 }
 0xff5   :  { %v2547_v14 = vrot.slane %v2545_v56, 2 }
 0xff7   :  { %2582 = vmatmul.mubr.bf16.vlgmr.msra.gmra.mrb[64].mxu0 %v2547_v14  ;;  %3290 = vmatmul.mubr.bf16.vlgmr.msra.gmra.mrb[64].mxu1 %v2547_v14 }
0x10ca   :  { %v2583_v60 = vpop.f32.mrb[64].mxu0  ;;  %v2624_v54 = vpop.f32.mrb[64].mxu1 }
0x10cb   :  { %v2635_v62 = vrot.slane %v2583_v60, 2  ;;  %v2585_v59 = vpop.f32.mrb[65].mxu0  ;;  %v3291_v1 = vpop.f32.mrb[65].mxu1  ;;  %v2658_v33 = vadd.f32 %v3607_v32, %v2624_v54 }
0x10cc   :  { %v2649_v63 = vrot.slane %v2585_v59, 2  ;;  %v2587_v24 = vpop.f32.mrb[66].mxu0  ;;  %v2627_v3 = vpop.f32.mrb[66].mxu1 }
0x10cd   :  { %v2637_v21 = vadd.f32 %v2635_v62, %v2633_v58  ;;  %v2588_v4 = vpop.f32.mrb[67].mxu0  ;;  %v3292_v22 = vpop.f32.mrb[67].mxu1  ;;  %v2660_v35 = vrot.slane %v2658_v33, 2 }
0x10ce   :  { %v2651_v5 = vadd.f32 %v2649_v63, %v2647_v19 }
0x10cf   :  { %v2798_v6 = vmul.f32 -1.442695, %v2637_v21 }
0x10d0   :  { %v2799_v8 = vmul.f32 -1.442695, %v2651_v5 }
0x10d1   :  { %3548 = vpow2.f32 %v2798_v6 }
0x10d2   :  { %3550 = vpow2.f32 %v2799_v8 }
0x10db   :  { %v3549_v27 = vpop.eup %3548 }
0x10dc   :  { %v3551_v28 = vpop.eup %3550  ;;  %v2641_v29 = vadd.f32 1.0, %v3549_v27 }
0x10dd   :  { %v2655_v15 = vadd.f32 1.0, %v3551_v28 }
0x10de   :  { %3552 = vrcp.f32 %v2641_v29 }
0x10df   :  { %3554 = vrcp.f32 %v2655_v15 }
0x10e8   :  { %v3553_v36 = vpop.eup %3552 }
0x10e9   :  { %v3555_v38 = vpop.eup %3554  ;;  %v2662_v39 = vmul.f32 %v3553_v36, %v2660_v35 }
0x10ea   :  { %v2674_v41 = vmul.f32 %v3555_v38, %v2672_v37  ;;  %v2669_v43 = vsub.f32 1.0, %v3555_v38 }
0x10eb   :  { %v2667_v42 = vadd.f32 %v2666_v40, %v2662_v39 }
0x10ed   :  { %3556 = vtanh.f32 %v2667_v42 }
0x10f7   :  { %v3557_v44 = vpop.eup %3556 }
0x10f8   :  { %v2670_v0 = vmul.f32 %v3557_v44, %v2669_v43 }
0x10fa   :  { %v2675_v46 = vadd.f32 %v2674_v41, %v2670_v0 }
0x10fc   :  { %2676 = vst [vmem:[#allocation10 - $0x6] sm:$0xc0] %v2675_v46 }
0x10fd   :  { %3685 = shalt.err (!%p3682_p0)
}
0x10fe   :  { %s3686_s16 = scalar_lea.hbm %s4573_s5, 32 }
0x10ff   :  { %p3687_p1 = scmp.ne.s32.totalorder %s4573_s5, %s3686_s16  ;;  %p3690_p2 = scmp.lt.u32.totalorder %s3686_s16, %s4573_s5 }
0x1101   :  { %p3692_p3 = pnand %p3690_p2, %p3687_p1 }
0x1103   :  { %3695 = shalt.err (!%p3692_p3)
}
0x1104   :  { %2686 = dma.vmem_to_hbm [thread:$0]  %s2684_s13, 32, %s4573_s5, [#allocation6]  }
0x1105   :  { %3700 = dma.done.wait [#allocation6], 32  }
0x1106   :  { %3701 = vsyncadd [#allocation6], 4294967264 }
0x1107   :  { %2690 = vsyncpa [#allocation5], 1 }
0x1108   :  { %2691 = vsyncpa [#allocation8], 1 }
0x1109   :  { %2692 = vsyncpa [#allocation6], 1 }

</bundles_post_ra>
